<compile_context>
chip_gen: v5e
topology: v5e:2x2
jax: 0.10.0
libtpu: 0.0.40
codegen_flags: <defaults>
</compile_context>

<pallas_src>
import jax
import jax.numpy as jnp
from jax.experimental import pallas as pl
from jax.experimental.pallas import tpu as pltpu


def _round_up(x, m):
    return ((x + m - 1) // m) * m


# ----------------------------------------------------------------------------
# Glue: kNN + local covariance features (FoldingNet convention -> 3 + 9 = 12)
# ----------------------------------------------------------------------------
def compute_local_features(pts):
    """pts: [B, N, 3] -> [B, N, 12] = cat(point, outer(nbr0, nbr1)).

    Matches FoldingNet's local_cov: knn includes the point itself at index 0 and only
    neighbors 0 and 1 are consumed, so top-2 is sufficient (the PyTorch code asks the
    knn helper for k=16 but discards the rest).
    """
    # TODO(synk): data-dependent top-k + gather stays in plain-JAX/XLA; there is no clean
    # BlockSpec / DMA-gather equivalent for this preprocessing step.
    d = jnp.sum((pts[:, :, None, :] - pts[:, None, :, :]) ** 2, axis=-1)   # [B,N,N]
    _, idx = jax.lax.top_k(-d, 2)                                          # [B,N,2]
    gather = jax.vmap(lambda p, i: p[i])                                   # [N,3],[N] -> [N,3]
    p0 = gather(pts, idx[:, :, 0])                                         # self
    p1 = gather(pts, idx[:, :, 1])                                         # nearest neighbor
    outer = p0[:, :, :, None] * p1[:, :, None, :]                          # [B,N,3,3]
    B, N = pts.shape[0], pts.shape[1]
    return jnp.concatenate([pts, outer.reshape(B, N, 9)], axis=-1)         # [B,N,12]


# ----------------------------------------------------------------------------
# Pallas kernel: three-stage MLP refinement over one tile of points
# ----------------------------------------------------------------------------
def _variance_mlp_kernel(lat_ref, loc_ref, w_lat_ref, w_loc_ref, b1_ref,
                         we_ref, wr_ref, br_ref, wc_ref, bc_ref, out_ref):
    tm = lat_ref.shape[0]
    S = wc_ref.shape[1]       # lane-aligned hidden width (output width of every layer)
    Fp = wr_ref.shape[1]      # real (sublane-padded) contraction rows of the residual layer

    lat = lat_ref[...].astype(jnp.bfloat16)                              # (tm, F) bf16
    # Fused first Linear of all three stages: one MXU matmul over the latent rows.
    h_all = (jnp.dot(lat, w_lat_ref[...], preferred_element_type=jnp.float32)
             + b1_ref[...])                                              # (tm, 3S) f32
    # Stage 1 additionally consumes the 12 local-covariance features.
    h1 = h_all[:, 0:S] + jnp.dot(loc_ref[...], w_loc_ref[...],
                                 preferred_element_type=jnp.float32)     # (tm, S) f32

    def stage(pre, s):
        h = jnp.maximum(pre, 0.0)                                        # ReLU
        # ResidualLinear: contract over only the Fp real rows (lanes >= F of h are 0).
        res = jnp.dot(h[:, 0:Fp].astype(jnp.bfloat16), wr_ref[s],
                      preferred_element_type=jnp.float32)                # (tm, S) f32
        h = jnp.maximum(h + res + br_ref[s:s + 1, :], 0.0)               # ReLU
        # Linear(F -> 1): VPU multiply + lane reduce, bias added to the (tm,1) column.
        return (jnp.sum(h * wc_ref[s:s + 1, :], axis=-1, keepdims=True)
                + bc_ref[s:s + 1, :])                                    # (tm, 1) f32

    # Stages 2/3: the K=1 "extra" matmul is a VPU broadcast multiply with the std column.
    std1 = stage(h1, 0)
    std2 = std1 + stage(h_all[:, S:2 * S] + std1 * we_ref[0:1, :], 1)
    std3 = std2 + stage(h_all[:, 2 * S:3 * S] + std2 * we_ref[1:2, :], 2)

    # Lane-dense output: relay the (tm, 1) column onto lanes in 128-row chunks so the
    # live broadcast/transpose intermediate stays at 64 KB (rides the idle XLU slot).
    for c in range(tm // 128):
        col = std3[c * 128:(c + 1) * 128, :]                             # (128, 1)
        row = jnp.transpose(jnp.broadcast_to(col, (128, 128)))[0:1, :]   # (1, 128)
        out_ref[0:1, c * 128:(c + 1) * 128] = row


# ----------------------------------------------------------------------------
# Weight packing: 18 tensors -> 8 lane-aligned VMEM operands
# ----------------------------------------------------------------------------
def _pack_params(params, F, S, Fp):
    w1a, b1, wr1, br1, wc1, bc1 = params["s1"]   # w1a: [F+12, F]
    w2a, b2, wr2, br2, wc2, bc2 = params["s2"]   # w2a: [F+1, F]
    w3a, b3, wr3, br3, wc3, bc3 = params["s3"]

    def pad_cols(w):                              # [r, F] -> [r, S] (zero lanes beyond F)
        return jnp.pad(w, ((0, 0), (0, S - F)))

    # First-Linear latent rows of all three stages, fused along lanes.
    w_lat = jnp.concatenate([pad_cols(w1a[:F]), pad_cols(w2a[:F]), pad_cols(w3a[:F])],
                            axis=1).astype(jnp.bfloat16)                        # [F, 3S]
    # Stage-1 local-feature rows only (stage-2/3 local rows would be all zero).
    w_loc = pad_cols(w1a[F:]).astype(jnp.bfloat16)                              # [12, S]
    b1_all = jnp.concatenate([pad_cols(b1[None]), pad_cols(b2[None]),
                              pad_cols(b3[None])], axis=1)                      # [1, 3S] f32
    # Extra-column (previous-std) weights of stages 2/3.
    we_all = jnp.concatenate([pad_cols(w2a[F:]), pad_cols(w3a[F:])], axis=0)    # [2, S] f32
    # Residual weights: keep only the F real contraction rows (sublane-padded to Fp for
    # bf16); the remaining S-F rows are structural zeros. Output width stays S.
    def pad_res(w):                               # [F, F] -> [Fp, S]
        return jnp.pad(w, ((0, Fp - F), (0, S - F)))
    wr_all = jnp.stack([pad_res(wr1), pad_res(wr2), pad_res(wr3)]).astype(jnp.bfloat16)  # [3,Fp,S]
    br_all = jnp.concatenate([pad_cols(br1[None]), pad_cols(br2[None]),
                              pad_cols(br3[None])], axis=0)                     # [3, S] f32
    wc_all = jnp.concatenate([pad_cols(wc1.T), pad_cols(wc2.T), pad_cols(wc3.T)],
                             axis=0)                                            # [3, S] f32
    bc_all = jnp.stack([bc1, bc2, bc3]).reshape(3, 1)                           # [3, 1] f32
    return w_lat, w_loc, b1_all, we_all, wr_all, br_all, wc_all, bc_all


def _pick_tile(M, max_tm=512):
    # tm in 128..512: (tm,128) f32 stage temps mostly fit the 64-entry vreg file (tm=1024
    # spills and contends the single vst slot, worst on v5e) while per-step compute still
    # dwarfs the ~0.35us grid-step overhead.  Small inputs get a single grid step: on the
    # 1-TC v5e/v6e a forced multi-step split is pure overhead.
    # TODO(synk): generation-aware refinement (even step count for v7x's 2 TensorCores)
    # would need a device query; tm stays overridable via the wrapper argument.
    if M <= max_tm:
        return max(128, _round_up(M, 128))
    return max_tm


def variance_network_pallas(latent, points_bcn, params, tm=None):
    """latent: [B,N,F] f32, points_bcn: [B,3,N] f32 -> std [B,N,1] f32."""
    B, N, F = latent.shape
    pts = jnp.transpose(points_bcn, (0, 2, 1))                 # [B,N,3]
    local = compute_local_features(pts)                        # [B,N,12]

    M = B * N
    # No concatenated HBM intermediate: latent stays f32 (reshape is a view; cast to bf16
    # happens in-kernel), the 12-wide local features are cast to bf16 inside their own
    # (fused) producer pass.
    lat = latent.reshape(M, F)                                  # [M, F] f32
    loc = local.reshape(M, 12).astype(jnp.bfloat16)             # [M, 12] bf16

    if tm is None:
        tm = _pick_tile(M)
    M_pad = _round_up(M, tm)
    if M_pad != M:                                              # pad instead of asserting
        lat = jnp.pad(lat, ((0, M_pad - M), (0, 0)))            # padded rows are discarded
        loc = jnp.pad(loc, ((0, M_pad - M), (0, 0)))
    grid = (M_pad // tm,)

    S = _round_up(F, 128)          # lane-aligned hidden width
    Fp = _round_up(F, 16)          # bf16 sublane-aligned residual contraction rows
    weights = _pack_params(params, F, S, Fp)

    def full_spec(a):
        # Invariant operands: fetched once, resident in VMEM (footprint is tiny here, so
        # the default double-buffering is not worth special-casing).
        nd = a.ndim
        return pl.BlockSpec(a.shape, lambda i, nd=nd: (0,) * nd)

    in_specs = ([pl.BlockSpec((tm, F), lambda i: (i, 0)),
                 pl.BlockSpec((tm, 12), lambda i: (i, 0))]
                + [full_spec(w) for w in weights])

    # Cost estimate matches the trimmed contraction (K=Fp residual matmuls, split first layer).
    flops = 2 * M_pad * (3 * F * S + 12 * S + 3 * Fp * S + 6 * S)
    weight_bytes = sum(int(w.size) * w.dtype.itemsize for w in weights)
    bytes_accessed = int(M_pad * F * 4 + M_pad * 12 * 2 + M_pad * 4 + weight_bytes)

    out = pl.pallas_call(
        _variance_mlp_kernel,
        out_shape=jax.ShapeDtypeStruct((1, M_pad), jnp.float32),
        grid=grid,
        in_specs=in_specs,
        out_specs=pl.BlockSpec((1, tm), lambda i: (0, i)),     # lane-dense output row
        compiler_params=pltpu.CompilerParams(dimension_semantics=("parallel",)),
        cost_estimate=pl.CostEstimate(flops=flops, transcendentals=0,
                                      bytes_accessed=bytes_accessed),
    )(lat, loc, *weights)

    return out[0, :M].reshape(B, N, 1)


# ----------------------------------------------------------------------------
# Pure-JAX reference (mirrors the PyTorch forward; same bf16 operand rounding)
# ----------------------------------------------------------------------------
def reference_forward(latent, points_bcn, params):
    F = latent.shape[-1]
    pts = jnp.transpose(points_bcn, (0, 2, 1))
    local = compute_local_features(pts)
    lat_b = latent.astype(jnp.bfloat16)

    def stage(extra, p, extra_is_feature):
        wa, ba, wr, br, wc, bc = p
        h = jnp.dot(lat_b, wa[:F].astype(jnp.bfloat16), preferred_element_type=jnp.float32)
        if extra_is_feature:          # stage 1: local geometric features (bf16 path)
            h = h + jnp.dot(extra.astype(jnp.bfloat16), wa[F:].astype(jnp.bfloat16),
                            preferred_element_type=jnp.float32)
        else:                         # stages 2/3: previous std estimate (kept f32)
            h = h + extra * wa[F:]
        h = jnp.maximum(h + ba, 0.0)
        h = jnp.maximum(h + jnp.dot(h.astype(jnp.bfloat16), wr.astype(jnp.bfloat16),
                                    preferred_element_type=jnp.float32) + br, 0.0)
        return jnp.sum(h * wc[:, 0], axis=-1, keepdims=True) + bc

    std1 = stage(local, params["s1"], True)
    std2 = std1 + stage(std1, params["s2"], False)
    std3 = std2 + stage(std2, params["s3"], False)
    return std3


# ----------------------------------------------------------------------------
# Deterministic parameter init (PyTorch nn.Linear-style uniform(-1/sqrt(in), ...))
# ----------------------------------------------------------------------------
def init_linear(key, in_dim, out_dim):
    kw, kb = jax.random.split(key)
    bound = 1.0 / jnp.sqrt(in_dim)
    w = jax.random.uniform(kw, (in_dim, out_dim), jnp.float32, -bound, bound)
    b = jax.random.uniform(kb, (out_dim,), jnp.float32, -bound, bound)
    return w, b


def init_params(key, feat_dims):
    params = {}
    in_dims = {"s1": feat_dims + 3 + 9, "s2": feat_dims + 1, "s3": feat_dims + 1}
    for name in ("s1", "s2", "s3"):
        key, k1, k2, k3 = jax.random.split(key, 4)
        wa, ba = init_linear(k1, in_dims[name], feat_dims)
        wr, br = init_linear(k2, feat_dims, feat_dims)
        wc, bc = init_linear(k3, feat_dims, 1)
        params[name] = (wa, ba, wr, br, wc, bc)
    return params


if __name__ == "__main__":
    B, N, F = 2, 128, 32   # batch, num_points, feat_dims

    key = jax.random.PRNGKey(0)
    k_lat, k_pts, k_par = jax.random.split(key, 3)
    latent = jax.random.normal(k_lat, (B, N, F), jnp.float32)
    reconstructed_points = jax.random.normal(k_pts, (B, 3, N), jnp.float32)
    params = init_params(k_par, F)

    out = jax.jit(variance_network_pallas)(latent, reconstructed_points, params)
    out = jax.block_until_ready(out)
    assert out.shape == (B, N, 1)

    ref = jax.block_until_ready(reference_forward(latent, reconstructed_points, params))
    if not jnp.allclose(out, ref, atol=5e-3, rtol=5e-3):
        max_err = float(jnp.max(jnp.abs(out - ref)))
        raise AssertionError(f"Pallas kernel mismatch vs reference (max abs err {max_err:.3e})")

    print("KERNEL_OK")
</pallas_src>

<mosaic_0001>
module attributes {stable_mosaic.version = 11 : i64} {
  func.func @_variance_mlp_kernel(%arg0: i32, %arg1: memref<256x32xf32, #tpu.memory_space<vmem>>, %arg2: memref<256x12xbf16, #tpu.memory_space<vmem>>, %arg3: memref<32x384xbf16, #tpu.memory_space<vmem>>, %arg4: memref<12x128xbf16, #tpu.memory_space<vmem>>, %arg5: memref<1x384xf32, #tpu.memory_space<vmem>>, %arg6: memref<2x128xf32, #tpu.memory_space<vmem>>, %arg7: memref<3x32x128xbf16, #tpu.memory_space<vmem>>, %arg8: memref<3x128xf32, #tpu.memory_space<vmem>>, %arg9: memref<3x128xf32, #tpu.memory_space<vmem>>, %arg10: memref<3x1xf32, #tpu.memory_space<vmem>>, %arg11: memref<1x256xf32, #tpu.memory_space<vmem>>) attributes {dimension_semantics = [#tpu.dimension_semantics<parallel>], iteration_bounds = array<i64: 1>, scalar_prefetch = 0 : i64, scratch_operands = 0 : i64, tpu.core_type = #tpu.core_type<tc>, window_params = [{transform_indices = @transform_0, window_bounds = array<i64: 256, 32>}, {transform_indices = @transform_1, window_bounds = array<i64: 256, 12>}, {pipeline_mode = #tpu.pipeline_mode<synchronous>, transform_indices = @transform_2, window_bounds = array<i64: 32, 384>}, {pipeline_mode = #tpu.pipeline_mode<synchronous>, transform_indices = @transform_3, window_bounds = array<i64: 12, 128>}, {pipeline_mode = #tpu.pipeline_mode<synchronous>, transform_indices = @transform_4, window_bounds = array<i64: 1, 384>}, {pipeline_mode = #tpu.pipeline_mode<synchronous>, transform_indices = @transform_5, window_bounds = array<i64: 2, 128>}, {pipeline_mode = #tpu.pipeline_mode<synchronous>, transform_indices = @transform_6, window_bounds = array<i64: 3, 32, 128>}, {pipeline_mode = #tpu.pipeline_mode<synchronous>, transform_indices = @transform_7, window_bounds = array<i64: 3, 128>}, {pipeline_mode = #tpu.pipeline_mode<synchronous>, transform_indices = @transform_8, window_bounds = array<i64: 3, 128>}, {pipeline_mode = #tpu.pipeline_mode<synchronous>, transform_indices = @transform_9, window_bounds = array<i64: 3, 1>}, {transform_indices = @transform_10, window_bounds = array<i64: 1, 256>}]} {
    %c0 = arith.constant 0 : index
    %c0_0 = arith.constant 0 : index
    %0 = vector.load %arg1[%c0, %c0_0] : memref<256x32xf32, #tpu.memory_space<vmem>>, vector<256x32xf32>
    %1 = arith.truncf %0 : vector<256x32xf32> to vector<256x32xbf16>
    %c0_1 = arith.constant 0 : index
    %c0_2 = arith.constant 0 : index
    %2 = vector.load %arg3[%c0_1, %c0_2] : memref<32x384xbf16, #tpu.memory_space<vmem>>, vector<32x384xbf16>
    %cst = arith.constant dense<0.000000e+00> : vector<256x384xf32>
    %3 = tpu.matmul %1, %2, %cst {dimension_numbers = #tpu.dot_dimension_numbers<[1], [0], [0], [1], [0, 0, 1, 1], [], []>} : vector<256x32xbf16>, vector<32x384xbf16>, vector<256x384xf32> -> vector<256x384xf32>
    %c0_3 = arith.constant 0 : index
    %c0_4 = arith.constant 0 : index
    %4 = vector.load %arg5[%c0_3, %c0_4] : memref<1x384xf32, #tpu.memory_space<vmem>>, vector<1x384xf32>
    %5 = vector.broadcast %4 : vector<1x384xf32> to vector<256x384xf32>
    %6 = arith.addf %3, %5 : vector<256x384xf32>
    %7 = vector.extract_strided_slice %6 {offsets = [0, 0], sizes = [256, 128], strides = [1, 1]} : vector<256x384xf32> to vector<256x128xf32>
    %c0_5 = arith.constant 0 : index
    %c0_6 = arith.constant 0 : index
    %8 = vector.load %arg2[%c0_5, %c0_6] : memref<256x12xbf16, #tpu.memory_space<vmem>>, vector<256x12xbf16>
    %c0_7 = arith.constant 0 : index
    %c0_8 = arith.constant 0 : index
    %9 = vector.load %arg4[%c0_7, %c0_8] : memref<12x128xbf16, #tpu.memory_space<vmem>>, vector<12x128xbf16>
    %cst_9 = arith.constant dense<0.000000e+00> : vector<256x128xf32>
    %10 = tpu.matmul %8, %9, %cst_9 {dimension_numbers = #tpu.dot_dimension_numbers<[1], [0], [0], [1], [0, 0, 1, 1], [], []>} : vector<256x12xbf16>, vector<12x128xbf16>, vector<256x128xf32> -> vector<256x128xf32>
    %11 = arith.addf %7, %10 : vector<256x128xf32>
    %cst_10 = arith.constant 0.000000e+00 : f32
    %12 = vector.broadcast %cst_10 : f32 to vector<256x128xf32>
    %13 = arith.maximumf %11, %12 : vector<256x128xf32>
    %14 = vector.extract_strided_slice %13 {offsets = [0, 0], sizes = [256, 32], strides = [1, 1]} : vector<256x128xf32> to vector<256x32xf32>
    %15 = arith.truncf %14 : vector<256x32xf32> to vector<256x32xbf16>
    %c0_11 = arith.constant 0 : index
    %c0_12 = arith.constant 0 : index
    %c0_13 = arith.constant 0 : index
    %16 = vector.load %arg7[%c0_11, %c0_12, %c0_13] : memref<3x32x128xbf16, #tpu.memory_space<vmem>>, vector<1x32x128xbf16>
    %17 = vector.shape_cast %16 : vector<1x32x128xbf16> to vector<32x128xbf16>
    %cst_14 = arith.constant dense<0.000000e+00> : vector<256x128xf32>
    %18 = tpu.matmul %15, %17, %cst_14 {dimension_numbers = #tpu.dot_dimension_numbers<[1], [0], [0], [1], [0, 0, 1, 1], [], []>} : vector<256x32xbf16>, vector<32x128xbf16>, vector<256x128xf32> -> vector<256x128xf32>
    %19 = arith.addf %13, %18 : vector<256x128xf32>
    %c0_15 = arith.constant 0 : index
    %c0_16 = arith.constant 0 : index
    %20 = vector.load %arg8[%c0_15, %c0_16] : memref<3x128xf32, #tpu.memory_space<vmem>>, vector<1x128xf32>
    %21 = vector.broadcast %20 : vector<1x128xf32> to vector<256x128xf32>
    %22 = arith.addf %19, %21 : vector<256x128xf32>
    %cst_17 = arith.constant 0.000000e+00 : f32
    %23 = vector.broadcast %cst_17 : f32 to vector<256x128xf32>
    %24 = arith.maximumf %22, %23 : vector<256x128xf32>
    %c0_18 = arith.constant 0 : index
    %c0_19 = arith.constant 0 : index
    %25 = vector.load %arg9[%c0_18, %c0_19] : memref<3x128xf32, #tpu.memory_space<vmem>>, vector<1x128xf32>
    %26 = vector.broadcast %25 : vector<1x128xf32> to vector<256x128xf32>
    %27 = arith.mulf %24, %26 : vector<256x128xf32>
    %cst_20 = arith.constant dense<0.000000e+00> : vector<256xf32>
    %28 = vector.multi_reduction <add>, %27, %cst_20 [1] : vector<256x128xf32> to vector<256xf32>
    %29 = vector.shape_cast %28 : vector<256xf32> to vector<256x1xf32>
    %c0_21 = arith.constant 0 : index
    %c0_22 = arith.constant 0 : index
    %30 = vector.load %arg10[%c0_21, %c0_22] : memref<3x1xf32, #tpu.memory_space<vmem>>, vector<1x1xf32>
    %31 = vector.broadcast %30 : vector<1x1xf32> to vector<256x1xf32>
    %32 = arith.addf %29, %31 : vector<256x1xf32>
    %33 = vector.extract_strided_slice %6 {offsets = [0, 128], sizes = [256, 128], strides = [1, 1]} : vector<256x384xf32> to vector<256x128xf32>
    %c0_23 = arith.constant 0 : index
    %c0_24 = arith.constant 0 : index
    %34 = vector.load %arg6[%c0_23, %c0_24] : memref<2x128xf32, #tpu.memory_space<vmem>>, vector<1x128xf32>
    %35 = vector.broadcast %32 : vector<256x1xf32> to vector<256x128xf32>
    %36 = vector.broadcast %34 : vector<1x128xf32> to vector<256x128xf32>
    %37 = arith.mulf %35, %36 : vector<256x128xf32>
    %38 = arith.addf %33, %37 : vector<256x128xf32>
    %cst_25 = arith.constant 0.000000e+00 : f32
    %39 = vector.broadcast %cst_25 : f32 to vector<256x128xf32>
    %40 = arith.maximumf %38, %39 : vector<256x128xf32>
    %41 = vector.extract_strided_slice %40 {offsets = [0, 0], sizes = [256, 32], strides = [1, 1]} : vector<256x128xf32> to vector<256x32xf32>
    %42 = arith.truncf %41 : vector<256x32xf32> to vector<256x32xbf16>
    %c1 = arith.constant 1 : index
    %c0_26 = arith.constant 0 : index
    %c0_27 = arith.constant 0 : index
    %43 = vector.load %arg7[%c1, %c0_26, %c0_27] : memref<3x32x128xbf16, #tpu.memory_space<vmem>>, vector<1x32x128xbf16>
    %44 = vector.shape_cast %43 : vector<1x32x128xbf16> to vector<32x128xbf16>
    %cst_28 = arith.constant dense<0.000000e+00> : vector<256x128xf32>
    %45 = tpu.matmul %42, %44, %cst_28 {dimension_numbers = #tpu.dot_dimension_numbers<[1], [0], [0], [1], [0, 0, 1, 1], [], []>} : vector<256x32xbf16>, vector<32x128xbf16>, vector<256x128xf32> -> vector<256x128xf32>
    %46 = arith.addf %40, %45 : vector<256x128xf32>
    %c1_29 = arith.constant 1 : index
    %c0_30 = arith.constant 0 : index
    %47 = vector.load %arg8[%c1_29, %c0_30] : memref<3x128xf32, #tpu.memory_space<vmem>>, vector<1x128xf32>
    %48 = vector.broadcast %47 : vector<1x128xf32> to vector<256x128xf32>
    %49 = arith.addf %46, %48 : vector<256x128xf32>
    %cst_31 = arith.constant 0.000000e+00 : f32
    %50 = vector.broadcast %cst_31 : f32 to vector<256x128xf32>
    %51 = arith.maximumf %49, %50 : vector<256x128xf32>
    %c1_32 = arith.constant 1 : index
    %c0_33 = arith.constant 0 : index
    %52 = vector.load %arg9[%c1_32, %c0_33] : memref<3x128xf32, #tpu.memory_space<vmem>>, vector<1x128xf32>
    %53 = vector.broadcast %52 : vector<1x128xf32> to vector<256x128xf32>
    %54 = arith.mulf %51, %53 : vector<256x128xf32>
    %cst_34 = arith.constant dense<0.000000e+00> : vector<256xf32>
    %55 = vector.multi_reduction <add>, %54, %cst_34 [1] : vector<256x128xf32> to vector<256xf32>
    %56 = vector.shape_cast %55 : vector<256xf32> to vector<256x1xf32>
    %c1_35 = arith.constant 1 : index
    %c0_36 = arith.constant 0 : index
    %57 = vector.load %arg10[%c1_35, %c0_36] : memref<3x1xf32, #tpu.memory_space<vmem>>, vector<1x1xf32>
    %58 = vector.broadcast %57 : vector<1x1xf32> to vector<256x1xf32>
    %59 = arith.addf %56, %58 : vector<256x1xf32>
    %60 = arith.addf %32, %59 : vector<256x1xf32>
    %61 = vector.extract_strided_slice %6 {offsets = [0, 256], sizes = [256, 128], strides = [1, 1]} : vector<256x384xf32> to vector<256x128xf32>
    %c1_37 = arith.constant 1 : index
    %c0_38 = arith.constant 0 : index
    %62 = vector.load %arg6[%c1_37, %c0_38] : memref<2x128xf32, #tpu.memory_space<vmem>>, vector<1x128xf32>
    %63 = vector.broadcast %60 : vector<256x1xf32> to vector<256x128xf32>
    %64 = vector.broadcast %62 : vector<1x128xf32> to vector<256x128xf32>
    %65 = arith.mulf %63, %64 : vector<256x128xf32>
    %66 = arith.addf %61, %65 : vector<256x128xf32>
    %cst_39 = arith.constant 0.000000e+00 : f32
    %67 = vector.broadcast %cst_39 : f32 to vector<256x128xf32>
    %68 = arith.maximumf %66, %67 : vector<256x128xf32>
    %69 = vector.extract_strided_slice %68 {offsets = [0, 0], sizes = [256, 32], strides = [1, 1]} : vector<256x128xf32> to vector<256x32xf32>
    %70 = arith.truncf %69 : vector<256x32xf32> to vector<256x32xbf16>
    %c2 = arith.constant 2 : index
    %c0_40 = arith.constant 0 : index
    %c0_41 = arith.constant 0 : index
    %71 = vector.load %arg7[%c2, %c0_40, %c0_41] : memref<3x32x128xbf16, #tpu.memory_space<vmem>>, vector<1x32x128xbf16>
    %72 = vector.shape_cast %71 : vector<1x32x128xbf16> to vector<32x128xbf16>
    %cst_42 = arith.constant dense<0.000000e+00> : vector<256x128xf32>
    %73 = tpu.matmul %70, %72, %cst_42 {dimension_numbers = #tpu.dot_dimension_numbers<[1], [0], [0], [1], [0, 0, 1, 1], [], []>} : vector<256x32xbf16>, vector<32x128xbf16>, vector<256x128xf32> -> vector<256x128xf32>
    %74 = arith.addf %68, %73 : vector<256x128xf32>
    %c2_43 = arith.constant 2 : index
    %c0_44 = arith.constant 0 : index
    %75 = vector.load %arg8[%c2_43, %c0_44] : memref<3x128xf32, #tpu.memory_space<vmem>>, vector<1x128xf32>
    %76 = vector.broadcast %75 : vector<1x128xf32> to vector<256x128xf32>
    %77 = arith.addf %74, %76 : vector<256x128xf32>
    %cst_45 = arith.constant 0.000000e+00 : f32
    %78 = vector.broadcast %cst_45 : f32 to vector<256x128xf32>
    %79 = arith.maximumf %77, %78 : vector<256x128xf32>
    %c2_46 = arith.constant 2 : index
    %c0_47 = arith.constant 0 : index
    %80 = vector.load %arg9[%c2_46, %c0_47] : memref<3x128xf32, #tpu.memory_space<vmem>>, vector<1x128xf32>
    %81 = vector.broadcast %80 : vector<1x128xf32> to vector<256x128xf32>
    %82 = arith.mulf %79, %81 : vector<256x128xf32>
    %cst_48 = arith.constant dense<0.000000e+00> : vector<256xf32>
    %83 = vector.multi_reduction <add>, %82, %cst_48 [1] : vector<256x128xf32> to vector<256xf32>
    %84 = vector.shape_cast %83 : vector<256xf32> to vector<256x1xf32>
    %c2_49 = arith.constant 2 : index
    %c0_50 = arith.constant 0 : index
    %85 = vector.load %arg10[%c2_49, %c0_50] : memref<3x1xf32, #tpu.memory_space<vmem>>, vector<1x1xf32>
    %86 = vector.broadcast %85 : vector<1x1xf32> to vector<256x1xf32>
    %87 = arith.addf %84, %86 : vector<256x1xf32>
    %88 = arith.addf %60, %87 : vector<256x1xf32>
    %89 = vector.extract_strided_slice %88 {offsets = [0, 0], sizes = [128, 1], strides = [1, 1]} : vector<256x1xf32> to vector<128x1xf32>
    %90 = vector.shape_cast %89 : vector<128x1xf32> to vector<128x1xf32>
    %91 = vector.broadcast %90 : vector<128x1xf32> to vector<128x128xf32>
    %92 = tpu.transpose %91, [1, 0] : vector<128x128xf32> -> vector<128x128xf32>
    %93 = vector.extract_strided_slice %92 {offsets = [0, 0], sizes = [1, 128], strides = [1, 1]} : vector<128x128xf32> to vector<1x128xf32>
    %c0_51 = arith.constant 0 : index
    %c0_52 = arith.constant 0 : index
    %94 = vector.load %arg11[%c0_51, %c0_52] : memref<1x256xf32, #tpu.memory_space<vmem>>, vector<1x128xf32>
    tpu.vector_store %arg11[%c0_51, %c0_52], %93 {strides = array<i32>} : memref<1x256xf32, #tpu.memory_space<vmem>>, vector<1x128xf32>,
    %95 = vector.extract_strided_slice %88 {offsets = [128, 0], sizes = [128, 1], strides = [1, 1]} : vector<256x1xf32> to vector<128x1xf32>
    %96 = vector.shape_cast %95 : vector<128x1xf32> to vector<128x1xf32>
    %97 = vector.broadcast %96 : vector<128x1xf32> to vector<128x128xf32>
    %98 = tpu.transpose %97, [1, 0] : vector<128x128xf32> -> vector<128x128xf32>
    %99 = vector.extract_strided_slice %98 {offsets = [0, 0], sizes = [1, 128], strides = [1, 1]} : vector<128x128xf32> to vector<1x128xf32>
    %c0_53 = arith.constant 0 : index
    %c128 = arith.constant 128 : index
    %100 = vector.load %arg11[%c0_53, %c128] : memref<1x256xf32, #tpu.memory_space<vmem>>, vector<1x128xf32>
    tpu.vector_store %arg11[%c0_53, %c128], %99 {strides = array<i32>} : memref<1x256xf32, #tpu.memory_space<vmem>>, vector<1x128xf32>,
    return
  }
  func.func @transform_0(%arg0: i32) -> (i32, i32) {
    %c0_i32 = arith.constant 0 : i32
    %c0_i32_0 = arith.constant 0 : i32
    return %arg0, %c0_i32 : i32, i32
  }
  func.func @transform_1(%arg0: i32) -> (i32, i32) {
    %c0_i32 = arith.constant 0 : i32
    %c0_i32_0 = arith.constant 0 : i32
    return %arg0, %c0_i32 : i32, i32
  }
  func.func @transform_2(%arg0: i32) -> (i32, i32) {
    %c0_i32 = arith.constant 0 : i32
    %c0_i32_0 = arith.constant 0 : i32
    %c0_i32_1 = arith.constant 0 : i32
    return %c0_i32, %c0_i32_0 : i32, i32
  }
  func.func @transform_3(%arg0: i32) -> (i32, i32) {
    %c0_i32 = arith.constant 0 : i32
    %c0_i32_0 = arith.constant 0 : i32
    %c0_i32_1 = arith.constant 0 : i32
    return %c0_i32, %c0_i32_0 : i32, i32
  }
  func.func @transform_4(%arg0: i32) -> (i32, i32) {
    %c0_i32 = arith.constant 0 : i32
    %c0_i32_0 = arith.constant 0 : i32
    %c0_i32_1 = arith.constant 0 : i32
    return %c0_i32, %c0_i32_0 : i32, i32
  }
  func.func @transform_5(%arg0: i32) -> (i32, i32) {
    %c0_i32 = arith.constant 0 : i32
    %c0_i32_0 = arith.constant 0 : i32
    %c0_i32_1 = arith.constant 0 : i32
    return %c0_i32, %c0_i32_0 : i32, i32
  }
  func.func @transform_6(%arg0: i32) -> (i32, i32, i32) {
    %c0_i32 = arith.constant 0 : i32
    %c0_i32_0 = arith.constant 0 : i32
    %c0_i32_1 = arith.constant 0 : i32
    %c0_i32_2 = arith.constant 0 : i32
    return %c0_i32, %c0_i32_0, %c0_i32_1 : i32, i32, i32
  }
  func.func @transform_7(%arg0: i32) -> (i32, i32) {
    %c0_i32 = arith.constant 0 : i32
    %c0_i32_0 = arith.constant 0 : i32
    %c0_i32_1 = arith.constant 0 : i32
    return %c0_i32, %c0_i32_0 : i32, i32
  }
  func.func @transform_8(%arg0: i32) -> (i32, i32) {
    %c0_i32 = arith.constant 0 : i32
    %c0_i32_0 = arith.constant 0 : i32
    %c0_i32_1 = arith.constant 0 : i32
    return %c0_i32, %c0_i32_0 : i32, i32
  }
  func.func @transform_9(%arg0: i32) -> (i32, i32) {
    %c0_i32 = arith.constant 0 : i32
    %c0_i32_0 = arith.constant 0 : i32
    %c0_i32_1 = arith.constant 0 : i32
    return %c0_i32, %c0_i32_0 : i32, i32
  }
  func.func @transform_10(%arg0: i32) -> (i32, i32) {
    %c0_i32 = arith.constant 0 : i32
    %c0_i32_0 = arith.constant 0 : i32
    return %c0_i32, %arg0 : i32, i32
  }
}

</mosaic_0001>

<bundles_post_ra>
// kernel: neg.1
= control target key start
LH: loop header
LB: loop body
LE: loop exit
PB: predicated region body
PF: predicated region fallthrough
CT: control target
= control target key end

     0   :  { %s520_s0 = inlined_call_operand.vmem [shape: f32[2,128,128], index: 0, kind: input, shape index: {}]   ;;  %s521_s1 = inlined_call_operand.vmem [shape: f32[2,128,128], index: 1, kind: output, shape index: {}]  }
   0x1   :  { %v2_v0 = vld [vmem:[%s520_s0] sm:$0xff]  ;;  %v258_v2 = vld [vmem:[%s520_s0 + $0x8] sm:$0xff]  ;;  %v262_v7 = vld [vmem:[%s520_s0 + $0x10] sm:$0xff] }
   0x2   :  { %v256_v1 = vld [vmem:[%s520_s0 + $0x80] sm:$0xff]  ;;  %v5_v3 = vxor.u32 2147483648, %v2_v0  ;;  %v20_v5 = vxor.u32 2147483648, %v258_v2  ;;  %v260_v6 = vld [vmem:[%s520_s0 + $0x88] sm:$0xff]  ;;  %v264_v8 = vld [vmem:[%s520_s0 + $0x90] sm:$0xff]  ;;  %v36_v11 = vxor.u32 2147483648, %v262_v7 }
   0x3   :  { %v12_v4 = vxor.u32 2147483648, %v256_v1  ;;  %v28_v9 = vxor.u32 2147483648, %v260_v6  ;;  %v266_v10 = vld [vmem:[%s520_s0 + $0x18] sm:$0xff]  ;;  %v44_v13 = vxor.u32 2147483648, %v264_v8  ;;  %v270_v14 = vld [vmem:[%s520_s0 + $0x20] sm:$0xff]  ;;  %v274_v18 = vld [vmem:[%s520_s0 + $0x28] sm:$0xff] }
   0x4   :  { %7 = vst [vmem:[%s521_s1] sm:$0xff] %v5_v3  ;;  %v268_v12 = vld [vmem:[%s520_s0 + $0x98] sm:$0xff]  ;;  %v52_v15 = vxor.u32 2147483648, %v266_v10  ;;  %v272_v16 = vld [vmem:[%s520_s0 + $0xa0] sm:$0xff]  ;;  %v68_v19 = vxor.u32 2147483648, %v270_v14  ;;  %v276_v20 = vld [vmem:[%s520_s0 + $0xa8] sm:$0xff]  ;;  %v84_v23 = vxor.u32 2147483648, %v274_v18 }
   0x5   :  { %257 = vst [vmem:[%s521_s1 + $0x80] sm:$0xff] %v12_v4  ;;  %v60_v17 = vxor.u32 2147483648, %v268_v12  ;;  %v76_v21 = vxor.u32 2147483648, %v272_v16  ;;  %v278_v22 = vld [vmem:[%s520_s0 + $0x30] sm:$0xff]  ;;  %v92_v25 = vxor.u32 2147483648, %v276_v20  ;;  %v282_v26 = vld [vmem:[%s520_s0 + $0x38] sm:$0xff] }
   0x6   :  { %259 = vst [vmem:[%s521_s1 + $0x8] sm:$0xff] %v20_v5  ;;  %v280_v24 = vld [vmem:[%s520_s0 + $0xb0] sm:$0xff]  ;;  %v100_v27 = vxor.u32 2147483648, %v278_v22  ;;  %v284_v28 = vld [vmem:[%s520_s0 + $0xb8] sm:$0xff]  ;;  %v286_v30 = vld [vmem:[%s520_s0 + $0x40] sm:$0xff]  ;;  %v116_v31 = vxor.u32 2147483648, %v282_v26 }
   0x7   :  { %261 = vst [vmem:[%s521_s1 + $0x88] sm:$0xff] %v28_v9  ;;  %v108_v29 = vxor.u32 2147483648, %v280_v24  ;;  %v288_v32 = vld [vmem:[%s520_s0 + $0xc0] sm:$0xff]  ;;  %v124_v33 = vxor.u32 2147483648, %v284_v28  ;;  %v290_v34 = vld [vmem:[%s520_s0 + $0x48] sm:$0xff]  ;;  %v132_v35 = vxor.u32 2147483648, %v286_v30 }
   0x8   :  { %263 = vst [vmem:[%s521_s1 + $0x10] sm:$0xff] %v36_v11  ;;  %v292_v36 = vld [vmem:[%s520_s0 + $0xc8] sm:$0xff]  ;;  %v140_v37 = vxor.u32 2147483648, %v288_v32  ;;  %v294_v38 = vld [vmem:[%s520_s0 + $0x50] sm:$0xff]  ;;  %v148_v39 = vxor.u32 2147483648, %v290_v34  ;;  %v298_v42 = vld [vmem:[%s520_s0 + $0x58] sm:$0xff] }
   0x9   :  { %265 = vst [vmem:[%s521_s1 + $0x90] sm:$0xff] %v44_v13  ;;  %v296_v40 = vld [vmem:[%s520_s0 + $0xd0] sm:$0xff]  ;;  %v156_v41 = vxor.u32 2147483648, %v292_v36  ;;  %v164_v43 = vxor.u32 2147483648, %v294_v38  ;;  %v300_v44 = vld [vmem:[%s520_s0 + $0xd8] sm:$0xff]  ;;  %v302_v46 = vld [vmem:[%s520_s0 + $0x60] sm:$0xff] }
   0xa   :  { %267 = vst [vmem:[%s521_s1 + $0x18] sm:$0xff] %v52_v15  ;;  %v172_v45 = vxor.u32 2147483648, %v296_v40  ;;  %v180_v47 = vxor.u32 2147483648, %v298_v42  ;;  %v304_v48 = vld [vmem:[%s520_s0 + $0xe0] sm:$0xff]  ;;  %v188_v49 = vxor.u32 2147483648, %v300_v44  ;;  %v306_v50 = vld [vmem:[%s520_s0 + $0x68] sm:$0xff] }
   0xb   :  { %269 = vst [vmem:[%s521_s1 + $0x98] sm:$0xff] %v60_v17  ;;  %v196_v51 = vxor.u32 2147483648, %v302_v46  ;;  %v308_v52 = vld [vmem:[%s520_s0 + $0xe8] sm:$0xff]  ;;  %v204_v53 = vxor.u32 2147483648, %v304_v48  ;;  %v310_v54 = vld [vmem:[%s520_s0 + $0x70] sm:$0xff]  ;;  %v212_v55 = vxor.u32 2147483648, %v306_v50 }
   0xc   :  { %271 = vst [vmem:[%s521_s1 + $0x20] sm:$0xff] %v68_v19  ;;  %v312_v56 = vld [vmem:[%s520_s0 + $0xf0] sm:$0xff]  ;;  %v220_v57 = vxor.u32 2147483648, %v308_v52  ;;  %v314_v58 = vld [vmem:[%s520_s0 + $0x78] sm:$0xff]  ;;  %v228_v59 = vxor.u32 2147483648, %v310_v54 }
   0xd   :  { %273 = vst [vmem:[%s521_s1 + $0xa0] sm:$0xff] %v76_v21  ;;  %v316_v60 = vld [vmem:[%s520_s0 + $0xf8] sm:$0xff]  ;;  %v236_v61 = vxor.u32 2147483648, %v312_v56  ;;  %v244_v62 = vxor.u32 2147483648, %v314_v58 }
   0xe   :  { %275 = vst [vmem:[%s521_s1 + $0x28] sm:$0xff] %v84_v23  ;;  %v252_v63 = vxor.u32 2147483648, %v316_v60 }
   0xf   :  { %277 = vst [vmem:[%s521_s1 + $0xa8] sm:$0xff] %v92_v25 }
  0x10   :  { %279 = vst [vmem:[%s521_s1 + $0x30] sm:$0xff] %v100_v27 }
  0x11   :  { %281 = vst [vmem:[%s521_s1 + $0xb0] sm:$0xff] %v108_v29 }
  0x12   :  { %283 = vst [vmem:[%s521_s1 + $0x38] sm:$0xff] %v116_v31 }
  0x13   :  { %285 = vst [vmem:[%s521_s1 + $0xb8] sm:$0xff] %v124_v33 }
  0x14   :  { %287 = vst [vmem:[%s521_s1 + $0x40] sm:$0xff] %v132_v35 }
  0x15   :  { %289 = vst [vmem:[%s521_s1 + $0xc0] sm:$0xff] %v140_v37 }
  0x16   :  { %291 = vst [vmem:[%s521_s1 + $0x48] sm:$0xff] %v148_v39 }
  0x17   :  { %293 = vst [vmem:[%s521_s1 + $0xc8] sm:$0xff] %v156_v41 }
  0x18   :  { %295 = vst [vmem:[%s521_s1 + $0x50] sm:$0xff] %v164_v43 }
  0x19   :  { %297 = vst [vmem:[%s521_s1 + $0xd0] sm:$0xff] %v172_v45 }
  0x1a   :  { %299 = vst [vmem:[%s521_s1 + $0x58] sm:$0xff] %v180_v47 }
  0x1b   :  { %301 = vst [vmem:[%s521_s1 + $0xd8] sm:$0xff] %v188_v49 }
  0x1c   :  { %303 = vst [vmem:[%s521_s1 + $0x60] sm:$0xff] %v196_v51 }
  0x1d   :  { %305 = vst [vmem:[%s521_s1 + $0xe0] sm:$0xff] %v204_v53 }
  0x1e   :  { %307 = vst [vmem:[%s521_s1 + $0x68] sm:$0xff] %v212_v55 }
  0x1f   :  { %309 = vst [vmem:[%s521_s1 + $0xe8] sm:$0xff] %v220_v57 }
  0x20   :  { %311 = vst [vmem:[%s521_s1 + $0x70] sm:$0xff] %v228_v59 }
  0x21   :  { %313 = vst [vmem:[%s521_s1 + $0xf0] sm:$0xff] %v236_v61 }
  0x22   :  { %315 = vst [vmem:[%s521_s1 + $0x78] sm:$0xff] %v244_v62 }
  0x23   :  { %317 = vst [vmem:[%s521_s1 + $0xf8] sm:$0xff] %v252_v63 }

// kernel: variance_network_pallas.1
= control target key start
LH: loop header
LB: loop body
LE: loop exit
PB: predicated region body
PF: predicated region fallthrough
CT: control target
= control target key end

     0   :  { %vm617_vm0 = vcmask 1045504   ;;  %vm568_vm1 = vcmask 97280   ;;  %vm133_vm2 = vcmask 261120   ;;  %s5248_s0 = inlined_call_operand.vmem [shape: f32[256,32], index: 0, kind: input, shape index: {}]   ;;  %s5249_s1 = inlined_call_operand.vmem [shape: bf16[256,12], index: 1, kind: input, shape index: {}]   ;;  %s5250_s2 = inlined_call_operand.vmem [shape: bf16[32,384], index: 2, kind: input, shape index: {}]   ;;  %s5251_s3 = inlined_call_operand.vmem [shape: bf16[12,128], index: 3, kind: input, shape index: {}]   ;;  %s5252_s4 = inlined_call_operand.vmem [shape: f32[1,384], index: 4, kind: input, shape index: {}]   ;;  %s5253_s5 = inlined_call_operand.vmem [shape: f32[2,128], index: 5, kind: input, shape index: {}]   ;;  %s5254_s6 = inlined_call_operand.vmem [shape: bf16[3,32,128], index: 6, kind: input, shape index: {}]   ;;  %s5255_s7 = inlined_call_operand.vmem [shape: f32[3,128], index: 7, kind: input, shape index: {}]   ;;  %s5256_s8 = inlined_call_operand.vmem [shape: f32[3,128], index: 8, kind: input, shape index: {}]   ;;  %s5257_s9 = inlined_call_operand.vmem [shape: f32[3,1], index: 9, kind: input, shape index: {}]   ;;  %s5258_s10 = inlined_call_operand.hbm [shape: f32[1,256], index: 10, kind: output, shape index: {}]  }
   0x1   :  { %v2813_v0 = vld [vmem:[%s5250_s2 + $0x18] sm:$0xf]  ;;  %v3039_v1 = vld [vmem:[%s5250_s2 + $0x20] sm:$0xf0]  ;;  %v2937_v2 = vld [vmem:[%s5251_s3] sm:$0xf] }
   0x2   :  { %v2814_v3 = vor.u32 %v3039_v1, %v2813_v0  ;;  %v3057_v4 = vld [vmem:[%s5251_s3] sm:$0x30]  ;;  %v2801_v5 = vld [vmem:[%s5250_s2] sm:$0xf]  ;;  %v3036_v7 = vld [vmem:[%s5250_s2 + $0x8] sm:$0xf0] }
   0x3   :  { %v2938_v6 = vor.u32 %v3057_v4, %v2937_v2  ;;  %v61_v8 = vld [vmem:[%s5248_s0 + $0xc0] sm:$0xff]  ;;  %v2802_v9 = vor.u32 %v3036_v7, %v2801_v5  ;;  %v62_v10 = vld [vmem:[%s5248_s0 + $0xc8] sm:$0xff]  ;;  %v3038_v11 = vld [vmem:[%s5250_s2 + $0x1c] sm:$0xf] }
   0x4   :  { %3064 = vmatpush.bf16.msra.mxu2 %v2814_v3  ;;  %v2815_v12 = vld [vmem:[%s5250_s2 + $0x24] sm:$0xf0]  ;;  %188 = vmatpush.bf16.msra.mxu0 %v2814_v3  ;;  %v3044_v14 = vld [vmem:[%s5249_s1 + $0x18] sm:$0xff]  ;;  %v3202_v16 = vpack.c.bf16 %v62_v10, %v61_v8 }
   0x5   :  { %v619_v13 = vsel %vm617_vm0, %v2938_v6, 0  ;;  %v2818_v15 = vor.u32 %v3038_v11, %v2815_v12 }
   0x6   :  { %3068 = vmatpush.bf16.msra.mxu3 %v619_v13 }
   0x7   :  { %277 = vmatpush.bf16.msra.mxu1 %v2818_v15 }
   0x8   :  { %3065 = vmatpush.bf16.msra.mxu2 %v2802_v9  ;;  %189 = vmatpush.bf16.msra.mxu0 %v2802_v9 }
   0x9   :  { %2942 = vmatmul.msk.bf16.vlgmr.msra.gmra.mxu3 %vm568_vm1, %v3044_v14 }
   0xc   :  { %3066 = vmatpush.bf16.msrb.mxu2 %v2818_v15 }
   0xd   :  { %15 = vsyncpa [#allocation3], 0  ;;  %2835 = vmatmul.msk.bf16.vlgmr.msra.gmra.mxu2 %vm133_vm2, %v3202_v16  ;;  %v3035_v17 = vld [vmem:[%s5250_s2 + $0x4] sm:$0xf]  ;;  %v2803_v18 = vld [vmem:[%s5250_s2 + $0xc] sm:$0xf0] }
   0xe   :  { %v2806_v19 = vor.u32 %v3035_v17, %v2803_v18  ;;  %v63_v20 = vld [vmem:[%s5248_s0 + $0xd0] sm:$0xff]  ;;  %v64_v21 = vld [vmem:[%s5248_s0 + $0xd8] sm:$0xff]  ;;  %v3045_v22 = vld [vmem:[%s5249_s1 + $0x20] sm:$0xff]  ;;  %s2790_s17 = sshll.u32 %s5258_s10, 4  ;;  %s2791_s17 = int_to_ptr.hbm [resolvable:$true] %s2790_s17 }
   0xf   :  { %v3222_v23 = vpack.c.bf16 %v64_v21, %v63_v20  ;;  %v65_v24 = vld [vmem:[%s5248_s0 + $0xe0] sm:$0xff]  ;;  %v66_v25 = vld [vmem:[%s5248_s0 + $0xe8] sm:$0xff]  ;;  %v67_v31 = vld [vmem:[%s5248_s0 + $0xf0] sm:$0xff] }
  0x10   :  { %3067 = vmatpush.bf16.msrb.mxu2 %v2806_v19  ;;  %278 = vmatpush.bf16.msra.mxu1 %v2806_v19  ;;  %v3046_v26 = vld [vmem:[%s5249_s1 + $0x28] sm:$0xff]  ;;  %v3236_v27 = vpack.c.bf16 %v66_v25, %v65_v24  ;;  %v2821_v28 = vld [vmem:[%s5250_s2 + $0x20] sm:$0xf]  ;;  %v68_v32 = vld [vmem:[%s5248_s0 + $0xf8] sm:$0xff] }
  0x11   :  { %v3040_v29 = vld [vmem:[%s5250_s2 + $0x28] sm:$0xf0]  ;;  %v3047_v33 = vld [vmem:[%s5249_s1 + $0x30] sm:$0xff]  ;;  %v3256_v34 = vpack.c.bf16 %v68_v32, %v67_v31  ;;  %v3048_v35 = vld [vmem:[%s5249_s1 + $0x38] sm:$0xff] }
  0x12   :  { %v2822_v30 = vor.u32 %v3040_v29, %v2821_v28  ;;  %v2809_v36 = vld [vmem:[%s5250_s2 + $0x8] sm:$0xf]  ;;  %v3037_v37 = vld [vmem:[%s5250_s2 + $0x10] sm:$0xf0]  ;;  %v3049_v39 = vld [vmem:[%s5249_s1 + $0x40] sm:$0xff] }
  0x13   :  { %v2810_v38 = vor.u32 %v3037_v37, %v2809_v36  ;;  %v3050_v40 = vld [vmem:[%s5249_s1 + $0x48] sm:$0xff]  ;;  %v37_v41 = vld [vmem:[%s5248_s0] sm:$0xff]  ;;  %v3051_v44 = vld [vmem:[%s5249_s1 + $0x50] sm:$0xff] }
  0x14   :  { %366 = vmatpush.bf16.msra.mxu2 %v2822_v30  ;;  %v38_v42 = vld [vmem:[%s5248_s0 + $0x8] sm:$0xff]  ;;  %v39_v45 = vld [vmem:[%s5248_s0 + $0x10] sm:$0xff]  ;;  %v40_v46 = vld [vmem:[%s5248_s0 + $0x18] sm:$0xff] }
  0x15   :  { %v69_v43 = vpack.c.bf16 %v38_v42, %v37_v41  ;;  %v70_v47 = vpack.c.bf16 %v40_v46, %v39_v45  ;;  %v3052_v48 = vld [vmem:[%s5249_s1 + $0x58] sm:$0xff]  ;;  %v41_v49 = vld [vmem:[%s5248_s0 + $0x20] sm:$0xff]  ;;  %v42_v50 = vld [vmem:[%s5248_s0 + $0x28] sm:$0xff] }
  0x16   :  { %v71_v51 = vpack.c.bf16 %v42_v50, %v41_v49  ;;  %v3053_v55 = vld [vmem:[%s5249_s1 + $0x60] sm:$0xff]  ;;  %v43_v57 = vld [vmem:[%s5248_s0 + $0x30] sm:$0xff]  ;;  %v44_v58 = vld [vmem:[%s5248_s0 + $0x38] sm:$0xff] }
  0x17   :  { %2823 = vmatmul.msk.bf16.vlgmr.msra.gmra.mxu0 %vm133_vm2, %v69_v43  ;;  %2839 = vmatmul.msk.bf16.vlgmr.msra.gmra.mxu1 %vm133_vm2, %v69_v43  ;;  %v72_v59 = vpack.c.bf16 %v44_v58, %v43_v57  ;;  %v3054_v63 = vld [vmem:[%s5249_s1 + $0x68] sm:$0xff]  ;;  %v45_v1 = vld [vmem:[%s5248_s0 + $0x40] sm:$0xff]  ;;  %v3055_v7 = vld [vmem:[%s5249_s1 + $0x70] sm:$0xff] }
  0x18   :  { %367 = vmatpush.bf16.msra.mxu2 %v2810_v38  ;;  %v46_v2 = vld [vmem:[%s5248_s0 + $0x48] sm:$0xff]  ;;  %v47_v9 = vld [vmem:[%s5248_s0 + $0x50] sm:$0xff]  ;;  %v48_v10 = vld [vmem:[%s5248_s0 + $0x58] sm:$0xff] }
  0x19   :  { %2943 = vmatmul.msk.bf16.gmra.mxu3 %vm568_vm1, %v3045_v22  ;;  %v73_v3 = vpack.c.bf16 %v46_v2, %v45_v1  ;;  %v74_v11 = vpack.c.bf16 %v48_v10, %v47_v9  ;;  %v3056_v15 = vld [vmem:[%s5249_s1 + $0x78] sm:$0xff]  ;;  %v49_v18 = vld [vmem:[%s5248_s0 + $0x60] sm:$0xff]  ;;  %v50_v19 = vld [vmem:[%s5248_s0 + $0x68] sm:$0xff] }
  0x1a   :  { %v75_v20 = vpack.c.bf16 %v50_v19, %v49_v18  ;;  %v52_v28 = vld [vmem:[%s5248_s0 + $0x78] sm:$0xff]  ;;  %v54_v36 = vld [vmem:[%s5248_s0 + $0x88] sm:$0xff]  ;;  %v55_v42 = vld [vmem:[%s5248_s0 + $0x90] sm:$0xff] }
  0x1b   :  { %v57_v49 = vld [vmem:[%s5248_s0 + $0xa0] sm:$0xff]  ;;  %v58_v50 = vld [vmem:[%s5248_s0 + $0xa8] sm:$0xff]  ;;  %v59_v2 = vld [vmem:[%s5248_s0 + $0xb0] sm:$0xff] }
  0x1c   :  { %v3479_v58 = vld [vmem:[%s5252_s4] sm:$0x7] }
  0x1d   :  { %2836 = vmatmul.msk.bf16.gmra.mxu2 %vm133_vm2, %v3222_v23  ;;  %v3486_v1 = vperm.slane %v3479_v58, 0 }
  0x27   :  { %2824 = vmatmul.msk.bf16.gmra.mxu0 %vm133_vm2, %v70_v47  ;;  %2840 = vmatmul.msk.bf16.gmra.mxu1 %vm133_vm2, %v70_v47 }
  0x29   :  { %2944 = vmatmul.msk.bf16.gmra.mxu3 %vm568_vm1, %v3046_v26  ;;  %v51_v26 = vld [vmem:[%s5248_s0 + $0x70] sm:$0xff] }
  0x2a   :  { %v76_v29 = vpack.c.bf16 %v52_v28, %v51_v26 }
  0x2d   :  { %2837 = vmatmul.msk.bf16.gmra.mxu2 %vm133_vm2, %v3236_v27 }
  0x37   :  { %2825 = vmatmul.msk.bf16.gmra.mxu0 %vm133_vm2, %v71_v51  ;;  %2841 = vmatmul.msk.bf16.gmra.mxu1 %vm133_vm2, %v71_v51 }
  0x39   :  { %2945 = vmatmul.msk.bf16.gmra.mxu3 %vm568_vm1, %v3047_v33 }
  0x3d   :  { %2838 = vmatmul.msk.bf16.gmra.mxu2 %vm133_vm2, %v3256_v34 }
  0x47   :  { %2826 = vmatmul.msk.bf16.gmra.mxu0 %vm133_vm2, %v72_v59  ;;  %2842 = vmatmul.msk.bf16.gmra.mxu1 %vm133_vm2, %v72_v59 }
  0x49   :  { %2946 = vmatmul.msk.bf16.gmra.mxu3 %vm568_vm1, %v3048_v35  ;;  %v53_v35 = vld [vmem:[%s5248_s0 + $0x80] sm:$0xff] }
  0x4a   :  { %v77_v37 = vpack.c.bf16 %v54_v36, %v53_v35 }
  0x4d   :  { %2851 = vmatmul.msk.bf16.vlgmr.msrb.gmra.mxu2 %vm133_vm2, %v3202_v16 }
  0x4e   :  { %628 = vmatpush.bf16.msrb.mxu2 %v619_v13 }
  0x57   :  { %2827 = vmatmul.msk.bf16.gmra.mxu0 %vm133_vm2, %v73_v3  ;;  %2843 = vmatmul.msk.bf16.gmra.mxu1 %vm133_vm2, %v73_v3 }
  0x59   :  { %2947 = vmatmul.msk.bf16.gmra.mxu3 %vm568_vm1, %v3049_v39 }
  0x5d   :  { %2852 = vmatmul.msk.bf16.gmra.mxu2 %vm133_vm2, %v3222_v23 }
  0x67   :  { %2828 = vmatmul.msk.bf16.gmra.mxu0 %vm133_vm2, %v74_v11  ;;  %2844 = vmatmul.msk.bf16.gmra.mxu1 %vm133_vm2, %v74_v11 }
  0x69   :  { %2948 = vmatmul.msk.bf16.gmra.mxu3 %vm568_vm1, %v3050_v40 }
  0x6d   :  { %2853 = vmatmul.msk.bf16.gmra.mxu2 %vm133_vm2, %v3236_v27 }
  0x77   :  { %2829 = vmatmul.msk.bf16.gmra.mxu0 %vm133_vm2, %v75_v20  ;;  %2845 = vmatmul.msk.bf16.gmra.mxu1 %vm133_vm2, %v75_v20 }
  0x79   :  { %2949 = vmatmul.msk.bf16.gmra.mxu3 %vm568_vm1, %v3051_v44 }
  0x7d   :  { %2854 = vmatmul.msk.bf16.gmra.mxu2 %vm133_vm2, %v3256_v34 }
  0x87   :  { %2830 = vmatmul.msk.bf16.gmra.mxu0 %vm133_vm2, %v76_v29  ;;  %2846 = vmatmul.msk.bf16.gmra.mxu1 %vm133_vm2, %v76_v29 }
  0x89   :  { %2950 = vmatmul.msk.bf16.gmra.mxu3 %vm568_vm1, %v3052_v48 }
  0x8c   :  { %v3318_v52 = vpop.f32.mrf.mxu3 }
  0x8d   :  { %2855 = vmatmul.msk.bf16.vlgmr.msra.gmra.mxu2 %vm133_vm2, %v69_v43  ;;  %v56_v43 = vld [vmem:[%s5248_s0 + $0x98] sm:$0xff] }
  0x8e   :  { %v78_v44 = vpack.c.bf16 %v56_v43, %v55_v42 }
  0x90   :  { %v3322_v53 = vpop.f32.mrf.mxu2 }
  0x91   :  { %v252_v9 = vadd.f32 %v3322_v53, %v3486_v1 }
  0x94   :  { %v3324_v54 = vpop.f32.mrf.mxu3 }
  0x97   :  { %2831 = vmatmul.msk.bf16.gmra.mxu0 %vm133_vm2, %v77_v37  ;;  %2847 = vmatmul.msk.bf16.gmra.mxu1 %vm133_vm2, %v77_v37 }
  0x98   :  { %v3329_v56 = vpop.f32.mrf.mxu2 }
  0x99   :  { %2951 = vmatmul.msk.bf16.gmra.mxu3 %vm568_vm1, %v3053_v55 }
  0x9c   :  { %v3339_v60 = vpop.f32.mrf.mxu3 }
  0x9d   :  { %2856 = vmatmul.msk.bf16.gmra.mxu2 %vm133_vm2, %v70_v47 }
  0xa0   :  { %v3343_v61 = vpop.f32.mrf.mxu2 }
  0xa4   :  { %v3345_v62 = vpop.f32.mrf.mxu3 }
  0xa7   :  { %2832 = vmatmul.msk.bf16.gmra.mxu0 %vm133_vm2, %v78_v44  ;;  %2848 = vmatmul.msk.bf16.gmra.mxu1 %vm133_vm2, %v78_v44 }
  0xa8   :  { %v3350_v0 = vpop.f32.mrf.mxu2 }
  0xa9   :  { %2952 = vmatmul.msk.bf16.gmra.mxu3 %vm568_vm1, %v3054_v63 }
  0xac   :  { %v3360_v4 = vpop.f32.mrf.mxu3 }
  0xad   :  { %2857 = vmatmul.msk.bf16.gmra.mxu2 %vm133_vm2, %v71_v51  ;;  %v79_v51 = vpack.c.bf16 %v58_v50, %v57_v49 }
  0xb0   :  { %v3364_v5 = vpop.f32.mrf.mxu2 }
  0xb4   :  { %v3366_v6 = vpop.f32.mrf.mxu3 }
  0xb7   :  { %2833 = vmatmul.msk.bf16.gmra.mxu0 %vm133_vm2, %v79_v51  ;;  %2849 = vmatmul.msk.bf16.gmra.mxu1 %vm133_vm2, %v79_v51 }
  0xb8   :  { %v3371_v8 = vpop.f32.mrf.mxu2 }
  0xb9   :  { %2953 = vmatmul.msk.bf16.gmra.mxu3 %vm568_vm1, %v3055_v7 }
  0xbc   :  { %v3381_v12 = vpop.f32.mrf.mxu3 }
  0xbd   :  { %2858 = vmatmul.msk.bf16.gmra.mxu2 %vm133_vm2, %v72_v59 }
  0xc0   :  { %v3385_v13 = vpop.f32.mrf.mxu2 }
  0xc1   :  { %v267_v50 = vadd.f32 %v3385_v13, %v3486_v1 }
  0xc4   :  { %v3387_v14 = vpop.f32.mrf.mxu3 }
  0xc8   :  { %v3392_v17 = vpop.f32.mrf.mxu2 }
  0xc9   :  { %2954 = vmatmul.msk.bf16.gmra.mxu3 %vm568_vm1, %v3056_v15 }
  0xcc   :  { %v3402_v21 = vpop.f32.mrf.mxu3 }
  0xcd   :  { %2859 = vmatmul.msk.bf16.gmra.mxu2 %vm133_vm2, %v73_v3  ;;  %v60_v3 = vld [vmem:[%s5248_s0 + $0xb8] sm:$0xff] }
  0xce   :  { %v80_v7 = vpack.c.bf16 %v60_v3, %v59_v2 }
  0xd0   :  { %v3406_v22 = vpop.f32.mrf.mxu2  ;;  %2834 = vmatmul.msk.bf16.gmra.mxu0 %vm133_vm2, %v80_v7  ;;  %2850 = vmatmul.msk.bf16.gmra.mxu1 %vm133_vm2, %v80_v7 }
  0xd4   :  { %v3408_v24 = vpop.f32.mrf.mxu3 }
  0xd8   :  { %v3410_v25 = vpop.f32.mrf.mxu2 }
  0xdc   :  { %v3419_v30 = vpop.f32.mrf.mxu3 }
  0xdd   :  { %2860 = vmatmul.msk.bf16.gmra.mxu2 %vm133_vm2, %v74_v11 }
  0xe0   :  { %v3423_v31 = vpop.f32.mrf.mxu2 }
  0xe4   :  { %v3425_v32 = vpop.f32.mrf.mxu3 }
  0xe8   :  { %v3427_v33 = vpop.f32.mrf.mxu2 }
  0xec   :  { %v3436_v38 = vpop.f32.mrf.mxu3 }
  0xed   :  { %2861 = vmatmul.msk.bf16.gmra.mxu2 %vm133_vm2, %v75_v20  ;;  %v257_v20 = vadd.f32 %v3343_v61, %v3486_v1 }
  0xf0   :  { %v3440_v39 = vpop.f32.mrf.mxu2 }
  0xf4   :  { %v3442_v40 = vpop.f32.mrf.mxu3 }
  0xf8   :  { %v3444_v41 = vpop.f32.mrf.mxu2 }
  0xfc   :  { %v3453_v45 = vpop.f32.mrf.mxu3 }
  0xfd   :  { %2862 = vmatmul.msk.bf16.gmra.mxu2 %vm133_vm2, %v76_v29  ;;  %v3059_v29 = vld [vmem:[%s5254_s6 + $0x8] sm:$0xff] }
  0xfe   :  { %860 = vmatpush.bf16.msrb.mxu3 %v3059_v29 }
 0x100   :  { %v3457_v46 = vpop.f32.mrf.mxu2 }
 0x104   :  { %v3459_v47 = vpop.f32.mrf.mxu3 }
 0x108   :  { %v3461_v48 = vpop.f32.mrf.mxu2 }
 0x10c   :  { %v3470_v55 = vpop.f32.mrf.mxu3 }
 0x10d   :  { %2863 = vmatmul.msk.bf16.gmra.mxu2 %vm133_vm2, %v77_v37  ;;  %v262_v37 = vadd.f32 %v3364_v5, %v3486_v1 }
 0x110   :  { %v3474_v57 = vpop.f32.mrf.mxu2 }
 0x114   :  { %v3481_v59 = vpop.f32.mrf.mxu3 }
 0x118   :  { %v3483_v63 = vpop.f32.mrf.mxu2 }
 0x11c   :  { %v690_v10 = vpop.f32.mrf.mxu3 }
 0x11d   :  { %2864 = vmatmul.msk.bf16.gmra.mxu2 %vm133_vm2, %v78_v44  ;;  %v3499_v11 = vadd.f32 %v690_v10, %v252_v9 }
 0x120   :  { %v3501_v15 = vpop.f32.mrf.mxu2 }
 0x121   :  { %5350 = vst [vmem:[#allocation5_spill] sm:$0xff] %v3501_v15 }
 0x124   :  { %v3503_v18 = vpop.f32.mrf.mxu3 }
 0x128   :  { %v3505_v19 = vpop.f32.mrf.mxu2 }
 0x129   :  { %5351 = vst [vmem:[#allocation6_spill] sm:$0xff] %v3505_v19 }
 0x12c   :  { %v695_v53 = vpop.f32.mrf.mxu3 }
 0x12d   :  { %2865 = vmatmul.msk.bf16.gmra.mxu2 %vm133_vm2, %v79_v51  ;;  %v3510_v26 = vadd.f32 %v695_v53, %v257_v20 }
 0x130   :  { %v3512_v28 = vpop.f32.mrf.mxu2 }
 0x131   :  { %5352 = vst [vmem:[#allocation7_spill] sm:$0xff] %v3512_v28 }
 0x134   :  { %v3517_v35 = vpop.f32.mrf.mxu3 }
 0x138   :  { %v3519_v36 = vpop.f32.mrf.mxu2 }
 0x139   :  { %5353 = vst [vmem:[#allocation8_spill] sm:$0xff] %v3519_v36 }
 0x13c   :  { %v700_v61 = vpop.f32.mrf.mxu3 }
 0x13d   :  { %2866 = vmatmul.msk.bf16.gmra.mxu2 %vm133_vm2, %v80_v7  ;;  %v3524_v42 = vadd.f32 %v700_v61, %v262_v37 }
 0x140   :  { %v3526_v43 = vpop.f32.mrf.mxu2 }
 0x141   :  { %5354 = vst [vmem:[#allocation9_spill] sm:$0xff] %v3526_v43 }
 0x144   :  { %v3528_v44 = vpop.f32.mrf.mxu3 }
 0x148   :  { %v3530_v49 = vpop.f32.mrf.mxu2 }
 0x149   :  { %5355 = vst [vmem:[#allocation10_spill] sm:$0xff] %v3530_v49 }
 0x14c   :  { %v705_v51 = vpop.f32.mrf.mxu3 }
 0x14d   :  { %2867 = vmatmul.msk.bf16.gmra.mxu2 %vm133_vm2, %v3202_v16  ;;  %v3536_v2 = vadd.f32 %v705_v51, %v267_v50  ;;  %v3043_v50 = vld [vmem:[%s5249_s1 + $0x10] sm:$0xff] }
 0x150   :  { %v3538_v5 = vpop.f32.mrf.mxu2 }
 0x151   :  { %5356 = vst [vmem:[#allocation11_spill] sm:$0xff] %v3538_v5 }
 0x158   :  { %v3540_v3 = vpop.f32.mrf.mxu2 }
 0x159   :  { %5357 = vst [vmem:[#allocation12_spill] sm:$0xff] %v3540_v3 }
 0x15d   :  { %2868 = vmatmul.msk.bf16.gmra.mxu2 %vm133_vm2, %v3222_v23  ;;  %v3041_v23 = vld [vmem:[%s5249_s1] sm:$0xff] }
 0x160   :  { %v3544_v7 = vpop.f32.mrf.mxu2 }
 0x161   :  { %5358 = vst [vmem:[#allocation13_spill] sm:$0xff] %v3544_v7 }
 0x168   :  { %v3546_v9 = vpop.f32.mrf.mxu2 }
 0x169   :  { %5359 = vst [vmem:[#allocation14_spill] sm:$0xff] %v3546_v9 }
 0x16d   :  { %2869 = vmatmul.msk.bf16.gmra.mxu2 %vm133_vm2, %v3236_v27  ;;  %v3058_v27 = vld [vmem:[%s5254_s6] sm:$0xff] }
 0x16e   :  { %861 = vmatpush.bf16.msrb.mxu3 %v3058_v27 }
 0x170   :  { %v3550_v13 = vpop.f32.mrf.mxu2 }
 0x171   :  { %5360 = vst [vmem:[#allocation15_spill] sm:$0xff] %v3550_v13 }
 0x178   :  { %v3552_v16 = vpop.f32.mrf.mxu2 }
 0x179   :  { %5361 = vst [vmem:[#allocation16_spill] sm:$0xff] %v3552_v16 }
 0x17d   :  { %2870 = vmatmul.msk.bf16.gmra.mxu2 %vm133_vm2, %v3256_v34  ;;  %v3042_v34 = vld [vmem:[%s5249_s1 + $0x8] sm:$0xff] }
 0x180   :  { %v3556_v10 = vpop.f32.mrf.mxu2 }
 0x181   :  { %5362 = vst [vmem:[#allocation17_spill] sm:$0xff] %v3556_v10 }
 0x188   :  { %v3558_v20 = vpop.f32.mrf.mxu2 }
 0x189   :  { %5363 = vst [vmem:[#allocation18_spill] sm:$0xff] %v3558_v20 }
 0x18d   :  { %2939 = vmatmul.msk.bf16.vlgmr.msrb.gmra.mxu2 %vm568_vm1, %v3041_v23 }
 0x190   :  { %v3564_v53 = vpop.f32.mrf.mxu2 }
 0x191   :  { %5364 = vst [vmem:[#allocation19_spill] sm:$0xff] %v3564_v53 }
 0x198   :  { %v3569_v29 = vpop.f32.mrf.mxu2 }
 0x199   :  { %5365 = vst [vmem:[#allocation20_spill] sm:$0xff] %v3569_v29 }
 0x19d   :  { %2940 = vmatmul.msk.bf16.gmra.mxu2 %vm568_vm1, %v3042_v34  ;;  %v191_v34 = vpop.f32.mrf.mxu0 }
 0x1a0   :  { %v3575_v37 = vpop.f32.mrf.mxu2 }
 0x1a1   :  { %5366 = vst [vmem:[#allocation21_spill] sm:$0xff] %v3575_v37 }
 0x1a5   :  { %v193_v20 = vpop.f32.mrf.mxu0 }
 0x1a8   :  { %v3577_v61 = vpop.f32.mrf.mxu2 }
 0x1a9   :  { %5367 = vst [vmem:[#allocation22_spill] sm:$0xff] %v3577_v61 }
 0x1ad   :  { %2941 = vmatmul.msk.bf16.gmra.mxu2 %vm568_vm1, %v3043_v50  ;;  %v196_v13 = vpop.f32.mrf.mxu0 }
 0x1b0   :  { %v3583_v51 = vpop.f32.mrf.mxu2 }
 0x1b1   :  { %5368 = vst [vmem:[#allocation23_spill] sm:$0xff] %v3583_v51 }
 0x1b5   :  { %v198_v51 = vpop.f32.mrf.mxu0 }
 0x1b8   :  { %v3585_v23 = vpop.f32.mrf.mxu2 }
 0x1b9   :  { %5369 = vst [vmem:[#allocation24_spill] sm:$0xff] %v3585_v23 }
 0x1bd   :  { %v201_v23 = vpop.f32.mrf.mxu0 }
 0x1c0   :  { %v3587_v27 = vpop.f32.mrf.mxu2 }
 0x1c1   :  { %5370 = vst [vmem:[#allocation25_spill] sm:$0xff] %v3587_v27 }
 0x1c8   :  { %v3589_v29 = vpop.f32.mrf.mxu2 }
 0x1c9   :  { %5371 = vst [vmem:[#allocation26_spill] sm:$0xff] %v3589_v29 }
 0x1d0   :  { %v3591_v53 = vpop.f32.mrf.mxu2 }
 0x1d1   :  { %5372 = vst [vmem:[#allocation27_spill] sm:$0xff] %v3591_v53  ;;  %v203_v53 = vpop.f32.mrf.mxu0 }
 0x1d8   :  { %v3593_v37 = vpop.f32.mrf.mxu2 }
 0x1d9   :  { %5373 = vst [vmem:[#allocation28_spill] sm:$0xff] %v3593_v37  ;;  %v192_v37 = vadd.f32 %v191_v34, %v3486_v1  ;;  %v206_v7 = vpop.f32.mrf.mxu0 }
 0x1e0   :  { %v3595_v61 = vpop.f32.mrf.mxu2 }
 0x1e1   :  { %5374 = vst [vmem:[#allocation29_spill] sm:$0xff] %v3595_v61  ;;  %v194_v61 = vadd.f32 %v193_v20, %v3486_v1  ;;  %v197_v20 = vadd.f32 %v196_v13, %v3486_v1 }
 0x1e8   :  { %v3597_v10 = vpop.f32.mrf.mxu2 }
 0x1e9   :  { %5375 = vst [vmem:[#allocation30_spill] sm:$0xff] %v3597_v10 }
 0x1f0   :  { %v3599_v50 = vpop.f32.mrf.mxu2 }
 0x1f1   :  { %5376 = vst [vmem:[#allocation31_spill] sm:$0xff] %v3599_v50 }
 0x1f8   :  { %v3601_v16 = vpop.f32.mrf.mxu2 }
 0x1f9   :  { %5377 = vst [vmem:[#allocation32_spill] sm:$0xff] %v3601_v16 }
 0x200   :  { %v3603_v27 = vpop.f32.mrf.mxu2 }
 0x201   :  { %5378 = vst [vmem:[#allocation33_spill] sm:$0xff] %v3603_v27  ;;  %v208_v27 = vpop.f32.mrf.mxu0 }
 0x208   :  { %v3605_v29 = vpop.f32.mrf.mxu2 }
 0x209   :  { %5379 = vst [vmem:[#allocation34_spill] sm:$0xff] %v3605_v29 }
 0x210   :  { %v630_v9 = vpop.f32.mrf.mxu2 }
 0x211   :  { %v3609_v3 = vadd.f32 %v630_v9, %v192_v37  ;;  %v199_v9 = vadd.f32 %v198_v51, %v3486_v1  ;;  %v202_v51 = vadd.f32 %v201_v23, %v3486_v1  ;;  %v207_v23 = vadd.f32 %v206_v7, %v3486_v1 }
 0x213   :  { %v5260_v50 = vmax.f32 %v3609_v3, 0.0 }
 0x218   :  { %v632_v10 = vpop.f32.mrf.mxu2 }
 0x219   :  { %v3611_v5 = vadd.f32 %v632_v10, %v194_v61  ;;  %v211_v10 = vpop.f32.mrf.mxu0 }
 0x21b   :  { %v5259_v16 = vmax.f32 %v3611_v5, 0.0 }
 0x21d   :  { %v774_v29 = vpack.c.bf16 %v5259_v16, %v5260_v50 }
 0x21f   :  { %2963 = vmatmul.msk.bf16.vlgmr.msrb.gmra.mxu3 %vm133_vm2, %v774_v29 }
 0x220   :  { %v635_v34 = vpop.f32.mrf.mxu2 }
 0x221   :  { %v3622_v37 = vadd.f32 %v635_v34, %v197_v20  ;;  %v213_v16 = vpop.f32.mrf.mxu0  ;;  %v204_v34 = vadd.f32 %v203_v53, %v3486_v1  ;;  %v209_v53 = vadd.f32 %v208_v27, %v3486_v1  ;;  %v212_v27 = vadd.f32 %v211_v10, %v3486_v1 }
 0x223   :  { %v5276_v43 = vmax.f32 %v3622_v37, 0.0 }
 0x228   :  { %v637_v61 = vpop.f32.mrf.mxu2 }
 0x229   :  { %v3624_v49 = vadd.f32 %v637_v61, %v199_v9  ;;  %v216_v19 = vpop.f32.mrf.mxu0 }
 0x22b   :  { %v5261_v36 = vmax.f32 %v3624_v49, 0.0 }
 0x22d   :  { %v775_v29 = vpack.c.bf16 %v5261_v36, %v5276_v43 }
 0x22f   :  { %2964 = vmatmul.msk.bf16.gmra.mxu3 %vm133_vm2, %v775_v29 }
 0x230   :  { %v640_v13 = vpop.f32.mrf.mxu2 }
 0x231   :  { %v3635_v20 = vadd.f32 %v640_v13, %v202_v51  ;;  %v3649_v13 = vadd.f32 %v3318_v52, %v207_v23  ;;  %v3652_v51 = vadd.f32 %v3324_v54, %v209_v53  ;;  %v214_v52 = vadd.f32 %v213_v16, %v3486_v1 }
 0x232   :  { %v3664_v54 = vadd.f32 %v3339_v60, %v212_v27  ;;  %v217_v16 = vadd.f32 %v216_v19, %v3486_v1 }
 0x233   :  { %v5263_v50 = vmax.f32 %v3635_v20, 0.0  ;;  %v5264_v36 = vmax.f32 %v3652_v51, 0.0  ;;  %v3667_v23 = vadd.f32 %v3345_v62, %v214_v52 }
 0x234   :  { %v5266_v53 = vmax.f32 %v3664_v54, 0.0  ;;  %v3679_v62 = vadd.f32 %v3360_v4, %v217_v16 }
 0x236   :  { %v5268_v52 = vmax.f32 %v3679_v62, 0.0 }
 0x238   :  { %v642_v9 = vpop.f32.mrf.mxu2 }
 0x239   :  { %v3637_v61 = vadd.f32 %v642_v9, %v204_v34  ;;  %v218_v34 = vpop.f32.mrf.mxu0  ;;  %v5275_v9 = vmax.f32 %v3649_v13, 0.0 }
 0x23a   :  { %v219_v60 = vadd.f32 %v218_v34, %v3486_v1 }
 0x23b   :  { %v5262_v28 = vmax.f32 %v3637_v61, 0.0 }
 0x23c   :  { %v3682_v27 = vadd.f32 %v3366_v6, %v219_v60 }
 0x23d   :  { %v776_v29 = vpack.c.bf16 %v5262_v28, %v5263_v50  ;;  %v5265_v28 = vmax.f32 %v3667_v23, 0.0 }
 0x23f   :  { %2965 = vmatmul.msk.bf16.gmra.mxu3 %vm133_vm2, %v776_v29  ;;  %v777_v29 = vpack.c.bf16 %v5264_v36, %v5275_v9  ;;  %v5267_v36 = vmax.f32 %v3682_v27, 0.0 }
 0x241   :  { %v221_v7 = vpop.f32.mrf.mxu0 }
 0x242   :  { %v222_v19 = vadd.f32 %v221_v7, %v3486_v1 }
 0x244   :  { %v3694_v34 = vadd.f32 %v3381_v12, %v222_v19 }
 0x246   :  { %v5270_v60 = vmax.f32 %v3694_v34, 0.0 }
 0x249   :  { %v223_v50 = vpop.f32.mrf.mxu0 }
 0x24a   :  { %v224_v4 = vadd.f32 %v223_v50, %v3486_v1 }
 0x24c   :  { %v3697_v6 = vadd.f32 %v3387_v14, %v224_v4 }
 0x24f   :  { %2966 = vmatmul.msk.bf16.gmra.mxu3 %vm133_vm2, %v777_v29  ;;  %v778_v29 = vpack.c.bf16 %v5265_v28, %v5266_v53  ;;  %v5269_v53 = vmax.f32 %v3697_v6, 0.0 }
 0x251   :  { %v226_v10 = vpop.f32.mrf.mxu0 }
 0x252   :  { %v227_v50 = vadd.f32 %v226_v10, %v3486_v1 }
 0x254   :  { %v3709_v14 = vadd.f32 %v3402_v21, %v227_v50 }
 0x256   :  { %v5272_v4 = vmax.f32 %v3709_v14, 0.0 }
 0x259   :  { %v228_v28 = vpop.f32.mrf.mxu0 }
 0x25a   :  { %v229_v12 = vadd.f32 %v228_v28, %v3486_v1 }
 0x25c   :  { %v3712_v19 = vadd.f32 %v3408_v24, %v229_v12 }
 0x25f   :  { %2967 = vmatmul.msk.bf16.gmra.mxu3 %vm133_vm2, %v778_v29  ;;  %v779_v29 = vpack.c.bf16 %v5267_v36, %v5268_v52  ;;  %v5271_v36 = vmax.f32 %v3712_v19, 0.0 }
 0x261   :  { %v231_v16 = vpop.f32.mrf.mxu0 }
 0x262   :  { %v232_v28 = vadd.f32 %v231_v16, %v3486_v1 }
 0x264   :  { %v3724_v10 = vadd.f32 %v3419_v30, %v232_v28 }
 0x266   :  { %v5274_v12 = vmax.f32 %v3724_v10, 0.0 }
 0x269   :  { %v233_v7 = vpop.f32.mrf.mxu0 }
 0x26a   :  { %v234_v21 = vadd.f32 %v233_v7, %v3486_v1 }
 0x26c   :  { %v3727_v24 = vadd.f32 %v3425_v32, %v234_v21  ;;  %v5380_v21 = vmax.f32 %v3609_v3, 0.0 }
 0x26f   :  { %2968 = vmatmul.msk.bf16.gmra.mxu3 %vm133_vm2, %v779_v29  ;;  %v780_v29 = vpack.c.bf16 %v5269_v53, %v5270_v60  ;;  %v5273_v53 = vmax.f32 %v3727_v24, 0.0  ;;  %v3731_v60 = vpop.f32.mrf.mxu3 }
 0x271   :  { %v236_v52 = vpop.f32.mrf.mxu0  ;;  %v782_v16 = vpack.c.bf16 %v5273_v53, %v5274_v12 }
 0x272   :  { %v237_v30 = vadd.f32 %v236_v52, %v3486_v1  ;;  %v3757_v52 = vld [vmem:[%s5256_s8] ss:$0 sm:$0xff] }
 0x279   :  { %v238_v50 = vpop.f32.mrf.mxu0 }
 0x27a   :  { %v239_v32 = vadd.f32 %v238_v50, %v3486_v1 }
 0x27c   :  { %v3751_v53 = vadd.f32 %v3442_v40, %v239_v32 }
 0x27e   :  { %v5277_v9 = vmax.f32 %v3751_v53, 0.0 }
 0x27f   :  { %2969 = vmatmul.msk.bf16.gmra.mxu3 %vm133_vm2, %v780_v29  ;;  %v781_v29 = vpack.c.bf16 %v5271_v36, %v5272_v4  ;;  %v3748_v4 = vadd.f32 %v3436_v38, %v237_v30  ;;  %v5381_v30 = vmax.f32 %v3611_v5, 0.0  ;;  %v5382_v5 = vmax.f32 %v3622_v37, 0.0 }
 0x281   :  { %v241_v7 = vpop.f32.mrf.mxu0  ;;  %v760_v12 = vmax.f32 %v3748_v4, 0.0 }
 0x28f   :  { %2970 = vmatmul.msk.bf16.gmra.mxu3 %vm133_vm2, %v781_v29  ;;  %v3743_v29 = vld [vmem:[%s5255_s7] ss:$0 sm:$0xff] }
 0x29f   :  { %2971 = vmatmul.msk.bf16.gmra.mxu3 %vm133_vm2, %v782_v16 }
 0x2a2   :  { %v863_v28 = vpop.f32.mrf.mxu3 }
 0x2a3   :  { %v943_v36 = vadd.f32 %v863_v28, %v5380_v21  ;;  %v243_v28 = vpop.f32.mrf.mxu0 }
 0x2a5   :  { %v977_v16 = vadd.f32 %v3743_v29, %v943_v36  ;;  %v783_v36 = vpack.c.bf16 %v5277_v9, %v760_v12 }
 0x2a7   :  { %v1009_v50 = vmax.f32 %v977_v16, 0.0  ;;  %v242_v16 = vadd.f32 %v241_v7, %v3486_v1 }
 0x2a9   :  { %v1043_v3 = vmul.f32 %v3757_v52, %v1009_v50  ;;  %v244_v50 = vadd.f32 %v243_v28, %v3486_v1 }
 0x2aa   :  { %v865_v38 = vpop.f32.mrf.mxu3 }
 0x2ab   :  { %v944_v40 = vadd.f32 %v865_v38, %v5381_v30  ;;  %1075 = vadd.xlane.f32.xlu0 %v1043_v3  ;;  %v246_v38 = vpop.f32.mrf.mxu0  ;;  %v3776_v30 = vadd.f32 %v3453_v45, %v242_v16 }
 0x2ad   :  { %v978_v32 = vadd.f32 %v3743_v29, %v944_v40  ;;  %v3779_v40 = vadd.f32 %v3459_v47, %v244_v50  ;;  %v762_v7 = vmax.f32 %v3776_v30, 0.0  ;;  %v247_v50 = vadd.f32 %v246_v38, %v3486_v1  ;;  %v3987_v30 = vld [vmem:[%s5253_s5] ss:$0 sm:$0xff] }
 0x2af   :  { %2972 = vmatmul.msk.bf16.gmra.mxu3 %vm133_vm2, %v783_v36  ;;  %v1010_v21 = vmax.f32 %v978_v32, 0.0  ;;  %v763_v28 = vmax.f32 %v3779_v40, 0.0 }
 0x2b1   :  { %v1044_v43 = vmul.f32 %v3757_v52, %v1010_v21  ;;  %v784_v45 = vpack.c.bf16 %v763_v28, %v762_v7 }
 0x2b2   :  { %v868_v15 = vpop.f32.mrf.mxu3 }
 0x2b3   :  { %v945_v3 = vadd.f32 %v868_v15, %v5382_v5  ;;  %1077 = vadd.xlane.f32.xlu0 %v1044_v43  ;;  %v5383_v15 = vmax.f32 %v3624_v49, 0.0  ;;  %v248_v37 = vpop.f32.mrf.mxu0 }
 0x2b4   :  { %v249_v5 = vadd.f32 %v248_v37, %v3486_v1 }
 0x2b5   :  { %v979_v36 = vadd.f32 %v3743_v29, %v945_v3 }
 0x2b7   :  { %v1011_v32 = vmax.f32 %v979_v36, 0.0 }
 0x2b9   :  { %v1045_v21 = vmul.f32 %v3757_v52, %v1011_v32  ;;  %v3799_v32 = vadd.f32 %v3470_v55, %v247_v50 }
 0x2ba   :  { %v870_v9 = vpop.f32.mrf.mxu3 }
 0x2bb   :  { %v946_v43 = vadd.f32 %v870_v9, %v5383_v15  ;;  %1079 = vadd.xlane.f32.xlu1 %v1045_v21  ;;  %v5384_v9 = vmax.f32 %v3635_v20, 0.0  ;;  %v3802_v21 = vadd.f32 %v3481_v59, %v249_v5  ;;  %v764_v38 = vmax.f32 %v3799_v32, 0.0 }
 0x2bc   :  { %v5385_v20 = vmax.f32 %v3637_v61, 0.0  ;;  %v5386_v61 = vmax.f32 %v3649_v13, 0.0 }
 0x2bd   :  { %v980_v47 = vadd.f32 %v3743_v29, %v946_v43 }
 0x2bf   :  { %2973 = vmatmul.msk.bf16.gmra.mxu3 %vm133_vm2, %v784_v45  ;;  %v1012_v16 = vmax.f32 %v980_v47, 0.0  ;;  %v765_v45 = vmax.f32 %v3802_v21, 0.0 }
 0x2c1   :  { %v1046_v3 = vmul.f32 %v3757_v52, %v1012_v16  ;;  %v785_v55 = vpack.c.bf16 %v765_v45, %v764_v38 }
 0x2c2   :  { %v873_v49 = vpop.f32.mrf.mxu3 }
 0x2c3   :  { %v947_v36 = vadd.f32 %v873_v49, %v5384_v9  ;;  %1081 = vadd.xlane.f32.xlu1 %v1046_v3  ;;  %v254_v49 = vadd.f32 %v3329_v56, %v3486_v1 }
 0x2c5   :  { %v981_v15 = vadd.f32 %v3743_v29, %v947_v36  ;;  %v3822_v36 = vadd.f32 %v3503_v18, %v254_v49 }
 0x2c7   :  { %v1013_v43 = vmax.f32 %v981_v15, 0.0 }
 0x2c9   :  { %v1047_v47 = vmul.f32 %v3757_v52, %v1013_v43 }
 0x2ca   :  { %v875_v37 = vpop.f32.mrf.mxu3 }
 0x2cb   :  { %v948_v16 = vadd.f32 %v875_v37, %v5385_v20  ;;  %1083 = vadd.xlane.f32.xlu2 %v1047_v47  ;;  %v767_v47 = vmax.f32 %v3822_v36, 0.0 }
 0x2cd   :  { %v982_v59 = vadd.f32 %v3743_v29, %v948_v16  ;;  %v766_v16 = vmax.f32 %v3499_v11, 0.0 }
 0x2cf   :  { %2974 = vmatmul.msk.bf16.gmra.mxu3 %vm133_vm2, %v785_v55  ;;  %v1014_v50 = vmax.f32 %v982_v59, 0.0  ;;  %v5387_v55 = vmax.f32 %v3652_v51, 0.0  ;;  %v786_v18 = vpack.c.bf16 %v767_v47, %v766_v16  ;;  %v5388_v51 = vmax.f32 %v3664_v54, 0.0 }
 0x2d1   :  { %v1048_v5 = vmul.f32 %v3757_v52, %v1014_v50 }
 0x2d2   :  { %v878_v3 = vpop.f32.mrf.mxu3 }
 0x2d3   :  { %v949_v9 = vadd.f32 %v878_v3, %v5386_v61  ;;  %1085 = vadd.xlane.f32.xlu2 %v1048_v5  ;;  %v259_v3 = vadd.f32 %v3350_v0, %v3486_v1 }
 0x2d5   :  { %v983_v15 = vadd.f32 %v3743_v29, %v949_v9  ;;  %v3842_v61 = vadd.f32 %v3517_v35, %v259_v3 }
 0x2d7   :  { %v1015_v43 = vmax.f32 %v983_v15, 0.0 }
 0x2d9   :  { %v1049_v37 = vmul.f32 %v3757_v52, %v1015_v43  ;;  %v769_v43 = vmax.f32 %v3842_v61, 0.0 }
 0x2da   :  { %v880_v20 = vpop.f32.mrf.mxu3 }
 0x2db   :  { %v950_v56 = vadd.f32 %v880_v20, %v5387_v55  ;;  %1087 = vadd.xlane.f32.xlu0 %v1049_v37  ;;  %v768_v55 = vmax.f32 %v3510_v26, 0.0 }
 0x2dd   :  { %v984_v13 = vadd.f32 %v3743_v29, %v950_v56  ;;  %v5389_v56 = vmax.f32 %v3667_v23, 0.0  ;;  %v787_v35 = vpack.c.bf16 %v769_v43, %v768_v55  ;;  %v5390_v23 = vmax.f32 %v3679_v62, 0.0 }
 0x2df   :  { %2975 = vmatmul.msk.bf16.gmra.mxu3 %vm133_vm2, %v786_v18  ;;  %v1016_v59 = vmax.f32 %v984_v13, 0.0 }
 0x2e1   :  { %v1050_v50 = vmul.f32 %v3757_v52, %v1016_v59 }
 0x2e2   :  { %v883_v5 = vpop.f32.mrf.mxu3 }
 0x2e3   :  { %v951_v49 = vadd.f32 %v883_v5, %v5388_v51  ;;  %1089 = vadd.xlane.f32.xlu1 %v1050_v50  ;;  %v264_v50 = vadd.f32 %v3371_v8, %v3486_v1 }
 0x2e5   :  { %v985_v9 = vadd.f32 %v3743_v29, %v951_v49  ;;  %v3862_v3 = vadd.f32 %v3528_v44, %v264_v50 }
 0x2e7   :  { %v1017_v15 = vmax.f32 %v985_v9, 0.0  ;;  %v5281_v9 = vmax.f32 %v3862_v3, 0.0 }
 0x2e9   :  { %v1051_v37 = vmul.f32 %v3757_v52, %v1017_v15 }
 0x2ea   :  { %v885_v20 = vpop.f32.mrf.mxu3 }
 0x2eb   :  { %v952_v0 = vadd.f32 %v885_v20, %v5389_v56  ;;  %1091 = vadd.xlane.f32.xlu2 %v1051_v37  ;;  %v5282_v20 = vmax.f32 %v3524_v42, 0.0  ;;  %v5391_v56 = vmax.f32 %v3682_v27, 0.0  ;;  %v5392_v27 = vmax.f32 %v3694_v34, 0.0 }
 0x2ed   :  { %v986_v54 = vadd.f32 %v3743_v29, %v952_v0  ;;  %v788_v44 = vpack.c.bf16 %v5281_v9, %v5282_v20 }
 0x2ef   :  { %v1018_v18 = vmax.f32 %v986_v54, 0.0  ;;  %2976 = vmatmul.msk.bf16.gmra.mxu3 %vm133_vm2, %v787_v35 }
 0x2f1   :  { %v1052_v13 = vmul.f32 %v3757_v52, %v1018_v18  ;;  %v269_v18 = vadd.f32 %v3392_v17, %v3486_v1 }
 0x2f2   :  { %v888_v59 = vpop.f32.mrf.mxu3 }
 0x2f3   :  { %v953_v5 = vadd.f32 %v888_v59, %v5390_v23  ;;  %1093 = vadd.xlane.f32.xlu0 %v1052_v13  ;;  %v3882_v59 = vadd.f32 %v3731_v60, %v269_v18 }
 0x2f5   :  { %v987_v51 = vadd.f32 %v3743_v29, %v953_v5  ;;  %v5280_v5 = vmax.f32 %v3882_v59, 0.0 }
 0x2f7   :  { %v1019_v49 = vmax.f32 %v987_v51, 0.0 }
 0x2f9   :  { %v1053_v15 = vmul.f32 %v3757_v52, %v1019_v49 }
 0x2fa   :  { %v890_v37 = vpop.f32.mrf.mxu3 }
 0x2fb   :  { %v954_v8 = vadd.f32 %v890_v37, %v5391_v56  ;;  %1095 = vadd.xlane.f32.xlu1 %v1053_v15  ;;  %v772_v15 = vmax.f32 %v3536_v2, 0.0  ;;  %v5393_v37 = vmax.f32 %v3697_v6, 0.0  ;;  %v3112_v56 = vmov 0  }
 0x2fc   :  { %3071 = vset.pattern.permute.xlu2 %v3112_v56  ;;  %3072 = vset.pattern.permute.xlu0 %v3112_v56  ;;  %v5394_v6 = vmax.f32 %v3709_v14, 0.0  ;;  %v5396_v14 = vmax.f32 %v3724_v10, 0.0 }
 0x2fd   :  { %v988_v62 = vadd.f32 %v3743_v29, %v954_v8  ;;  %v789_v1 = vpack.c.bf16 %v5280_v5, %v772_v15  ;;  %3073 = vset.pattern.permute.xlu1 %v3112_v56 }
 0x2ff   :  { %v1020_v0 = vmax.f32 %v988_v62, 0.0  ;;  %2977 = vmatmul.msk.bf16.gmra.mxu3 %vm133_vm2, %v788_v44 }
 0x301   :  { %v1054_v35 = vmul.f32 %v3757_v52, %v1020_v0 }
 0x302   :  { %v893_v54 = vpop.f32.mrf.mxu3 }
 0x303   :  { %v955_v13 = vadd.f32 %v893_v54, %v5392_v27  ;;  %1097 = vadd.xlane.f32.xlu2 %v1054_v35  ;;  %v5395_v27 = vmax.f32 %v3712_v19, 0.0  ;;  %v3912_v19 = vld [vmem:[%s5257_s9] ss:$0 sm:$0xff] }
 0x305   :  { %v989_v50 = vadd.f32 %v3743_v29, %v955_v13 }
 0x307   :  { %v1021_v23 = vmax.f32 %v989_v50, 0.0 }
 0x309   :  { %v1055_v51 = vmul.f32 %v3757_v52, %v1021_v23 }
 0x30a   :  { %v895_v49 = vpop.f32.mrf.mxu3 }
 0x30b   :  { %v956_v17 = vadd.f32 %v895_v49, %v5393_v37  ;;  %1099 = vadd.xlane.f32.xlu0 %v1055_v51 }
 0x30d   :  { %v990_v34 = vadd.f32 %v3743_v29, %v956_v17 }
 0x30f   :  { %v1022_v60 = vmax.f32 %v990_v34, 0.0  ;;  %2978 = vmatmul.msk.bf16.gmra.mxu3 %vm133_vm2, %v789_v1 }
 0x311   :  { %v1056_v8 = vmul.f32 %v3757_v52, %v1022_v60 }
 0x312   :  { %v898_v44 = vpop.f32.mrf.mxu3 }
 0x313   :  { %v957_v62 = vadd.f32 %v898_v44, %v5394_v6  ;;  %1101 = vadd.xlane.f32.xlu1 %v1056_v8 }
 0x315   :  { %v991_v0 = vadd.f32 %v3743_v29, %v957_v62 }
 0x317   :  { %v1023_v35 = vmax.f32 %v991_v0, 0.0 }
 0x319   :  { %v1057_v54 = vmul.f32 %v3757_v52, %v1023_v35 }
 0x31a   :  { %v900_v18 = vpop.f32.mrf.mxu3 }
 0x31b   :  { %v958_v13 = vadd.f32 %v900_v18, %v5395_v27  ;;  %1103 = vadd.xlane.f32.xlu2 %v1057_v54  ;;  %v5397_v54 = vmax.f32 %v3727_v24, 0.0 }
 0x31d   :  { %v992_v50 = vadd.f32 %v3743_v29, %v958_v13 }
 0x31e   :  { %v1076_v34 = vpop.xlane.xlu0 %1075 }
 0x31f   :  { %v1024_v23 = vmax.f32 %v992_v50, 0.0  ;;  %v3915_v8 = vadd.f32 %v3912_v19, %v1076_v34  ;;  %v5398_v34 = vmax.f32 %v3751_v53, 0.0 }
 0x321   :  { %v1058_v51 = vmul.f32 %v3757_v52, %v1024_v23 }
 0x322   :  { %v903_v49 = vpop.f32.mrf.mxu3 }
 0x323   :  { %v959_v37 = vadd.f32 %v903_v49, %v5396_v14  ;;  %1105 = vadd.xlane.f32.xlu0 %v1058_v51 }
 0x325   :  { %v993_v17 = vadd.f32 %v3743_v29, %v959_v37 }
 0x326   :  { %v1078_v44 = vpop.xlane.xlu0 %1077 }
 0x327   :  { %v1025_v1 = vmax.f32 %v993_v17, 0.0  ;;  %v3919_v10 = vadd.f32 %v3912_v19, %v1078_v44 }
 0x329   :  { %v1059_v60 = vmul.f32 %v3757_v52, %v1025_v1 }
 0x32a   :  { %v905_v56 = vpop.f32.mrf.mxu3 }
 0x32b   :  { %1107 = vadd.xlane.f32.xlu1 %v1059_v60  ;;  %v960_v18 = vadd.f32 %v905_v56, %v5397_v54 }
 0x32d   :  { %v994_v13 = vadd.f32 %v3743_v29, %v960_v18 }
 0x32e   :  { %v1080_v62 = vpop.xlane.xlu1 %1079 }
 0x32f   :  { %v3923_v0 = vadd.f32 %v3912_v19, %v1080_v62  ;;  %v1026_v23 = vmax.f32 %v994_v13, 0.0 }
 0x331   :  { %v1060_v14 = vmul.f32 %v3757_v52, %v1026_v23 }
 0x332   :  { %v908_v6 = vpop.f32.mrf.mxu3 }
 0x333   :  { %1176 = vperm.xlu2 %3071, %v3915_v8   ;;  %v961_v50 = vadd.f32 %v908_v6, %v760_v12 }
 0x335   :  { %v995_v51 = vadd.f32 %v3743_v29, %v961_v50 }
 0x337   :  { %1181 = vperm.xlu0 %3072, %v3919_v10   ;;  %v1027_v37 = vmax.f32 %v995_v51, 0.0 }
 0x339   :  { %v1061_v1 = vmul.f32 %v3757_v52, %v1027_v37 }
 0x33a   :  { %v910_v35 = vpop.f32.mrf.mxu3 }
 0x33b   :  { %v962_v60 = vadd.f32 %v910_v35, %v5398_v34 }
 0x33d   :  { %v996_v12 = vadd.f32 %v3743_v29, %v962_v60 }
 0x33e   :  { %v1084_v56 = vpop.xlane.xlu2 %1083 }
 0x33f   :  { %v1028_v6 = vmax.f32 %v996_v12, 0.0  ;;  %v3947_v35 = vadd.f32 %v3912_v19, %v1084_v56 }
 0x341   :  { %v1062_v40 = vmul.f32 %v3757_v52, %v1028_v6 }
 0x342   :  { %v913_v27 = vpop.f32.mrf.mxu3 }
 0x343   :  { %v963_v60 = vadd.f32 %v913_v27, %v762_v7 }
 0x344   :  { %1186 = vperm.xlu1 %3073, %v3923_v0  }
 0x346   :  { %v1086_v62 = vpop.xlane.xlu2 %1085 }
 0x347   :  { %v3955_v50 = vadd.f32 %v3912_v19, %v1086_v62 }
 0x34a   :  { %v915_v49 = vpop.f32.mrf.mxu3 }
 0x34b   :  { %v964_v17 = vadd.f32 %v915_v49, %v763_v28  ;;  %v1082_v28 = vpop.xlane.xlu1 %1081  ;;  %v3061_v49 = vld [vmem:[%s5254_s6 + $0x18] sm:$0xff] }
 0x34c   :  { %v3943_v54 = vadd.f32 %v3912_v19, %v1082_v28  ;;  %1518 = vmatpush.bf16.msrb.mxu0 %v3061_v49 }
 0x34d   :  { %v998_v24 = vadd.f32 %v3743_v29, %v964_v17  ;;  %v3060_v17 = vld [vmem:[%s5254_s6 + $0x10] sm:$0xff] }
 0x34e   :  { %v1088_v23 = vpop.xlane.xlu0 %1087 }
 0x34f   :  { %v1030_v4 = vmax.f32 %v998_v24, 0.0 }
 0x350   :  { %1519 = vmatpush.bf16.msrb.mxu0 %v3060_v17 }
 0x351   :  { %v1064_v44 = vmul.f32 %v3757_v52, %v1030_v4 }
 0x352   :  { %v918_v13 = vpop.f32.mrf.mxu3 }
 0x356   :  { %v1090_v51 = vpop.xlane.xlu1 %1089 }
 0x357   :  { %v3964_v37 = vadd.f32 %v3912_v19, %v1090_v51 }
 0x35c   :  { %1109 = vadd.xlane.f32.xlu2 %v1060_v14  ;;  %v3961_v14 = vpop.f32.mrf.mxu3 }
 0x35e   :  { %v1092_v53 = vpop.xlane.xlu2 %1091 }
 0x35f   :  { %v3950_v18 = vadd.f32 %v3912_v19, %v1092_v53 }
 0x361   :  { %1111 = vadd.xlane.f32.xlu0 %v1061_v1 }
 0x364   :  { %v923_v34 = vpop.f32.mrf.mxu3 }
 0x365   :  { %v967_v4 = vadd.f32 %v923_v34, %v766_v16  ;;  %v3991_v16 = vperm.slane %v3479_v58, 1  ;;  %v965_v58 = vadd.f32 %v918_v13, %v764_v38  ;;  %v4017_v13 = vadd.f32 %v3912_v19, %v1088_v23 }
 0x366   :  { %v3970_v24 = vpop.xlane.xlu0 %1093 }
 0x367   :  { %v1001_v6 = vadd.f32 %v3743_v29, %v967_v4 }
 0x369   :  { %1117 = vadd.xlane.f32.xlu0 %v1064_v44  ;;  %v997_v44 = vadd.f32 %v3743_v29, %v963_v60  ;;  %v1033_v62 = vmax.f32 %v1001_v6, 0.0 }
 0x36b   :  { %v1029_v28 = vmax.f32 %v997_v44, 0.0  ;;  %v1067_v27 = vmul.f32 %v3757_v52, %v1033_v62 }
 0x36d   :  { %v1063_v7 = vmul.f32 %v3757_v52, %v1029_v28 }
 0x36e   :  { %1113 = vadd.xlane.f32.xlu1 %v1062_v40  ;;  %v280_v40 = vpop.f32.mrf.mxu1  ;;  %v1096_v32 = vpop.xlane.xlu1 %1095 }
 0x36f   :  { %v281_v49 = vadd.f32 %v280_v40, %v3991_v16  ;;  %v999_v40 = vadd.f32 %v3743_v29, %v965_v58  ;;  %v4026_v58 = vadd.f32 %v3912_v19, %v1096_v32  ;;  %v966_v32 = vadd.f32 %v3961_v14, %v765_v45 }
 0x374   :  { %1191 = vperm.xlu2 %3071, %v3943_v54  }
 0x376   :  { %v1098_v1 = vpop.xlane.xlu2 %1097  ;;  %v282_v51 = vpop.f32.mrf.mxu1 }
 0x377   :  { %v283_v34 = vadd.f32 %v282_v51, %v3991_v16  ;;  %v4014_v38 = vadd.f32 %v3912_v19, %v1098_v1  ;;  %v925_v51 = vpop.f32.mrf.mxu3 }
 0x37c   :  { %1196 = vperm.xlu2 %3071, %v3947_v35  }
 0x37d   :  { %1216 = vperm.xlu0 %3072, %v3950_v18  }
 0x37e   :  { %v3976_v12 = vpop.xlane.xlu0 %1099 }
 0x387   :  { %1201 = vperm.xlu1 %3073, %v3955_v50  }
 0x38e   :  { %v3978_v56 = vpop.xlane.xlu2 %1103 }
 0x38f   :  { %1211 = vperm.xlu1 %3073, %v3964_v37  }
 0x396   :  { %v3982_v53 = vpop.xlane.xlu0 %1105  ;;  %v1177_v11 = vpop.permute.xlu2 %1176 }
 0x397   :  { %v1335_v17 = vmul.f32 %v3987_v30, %v1177_v11 }
 0x399   :  { %v3997_v4 = vadd.f32 %v1335_v17, %v281_v49  ;;  %v1102_v49 = vpop.xlane.xlu1 %1101 }
 0x39b   :  { %v5278_v28 = vmax.f32 %v3997_v4, 0.0 }
 0x3a1   :  { %v4021_v17 = vpop.xlane.xlu1 %1107 }
 0x3a5   :  { %1115 = vadd.xlane.f32.xlu2 %v1063_v7  ;;  %v1031_v7 = vmax.f32 %v999_v40, 0.0 }
 0x3a7   :  { %1123 = vadd.xlane.f32.xlu0 %v1067_v27  ;;  %v1065_v27 = vmul.f32 %v3757_v52, %v1031_v7 }
 0x3a9   :  { %v1182_v60 = vpop.permute.xlu0 %1181 }
 0x3aa   :  { %v1336_v44 = vmul.f32 %v3987_v30, %v1182_v60  ;;  %v285_v60 = vpop.f32.mrf.mxu1 }
 0x3ab   :  { %v286_v40 = vadd.f32 %v285_v60, %v3991_v16 }
 0x3ac   :  { %v4002_v6 = vadd.f32 %v1336_v44, %v283_v34  ;;  %v928_v34 = vpop.f32.mrf.mxu3 }
 0x3ae   :  { %v5279_v62 = vmax.f32 %v4002_v6, 0.0 }
 0x3b0   :  { %v1431_v11 = vpack.c.bf16 %v5279_v62, %v5278_v28 }
 0x3b2   :  { %2991 = vmatmul.msk.bf16.vlgmr.msrb.gmra.mxu0 %vm133_vm2, %v1431_v11  ;;  %v287_v7 = vpop.f32.mrf.mxu1 }
 0x3b4   :  { %v930_v23 = vpop.f32.mrf.mxu3 }
 0x3b5   :  { %v970_v28 = vadd.f32 %v930_v23, %v769_v43 }
 0x3b6   :  { %v1187_v1 = vpop.permute.xlu1 %1186 }
 0x3b7   :  { %v1337_v11 = vmul.f32 %v3987_v30, %v1187_v1  ;;  %v1004_v60 = vadd.f32 %v3743_v29, %v970_v28  ;;  %v1000_v1 = vadd.f32 %v3743_v29, %v966_v32 }
 0x3b9   :  { %1119 = vadd.xlane.f32.xlu1 %v1065_v27  ;;  %v288_v27 = vadd.f32 %v287_v7, %v3991_v16  ;;  %v4037_v5 = vadd.f32 %v1337_v11, %v286_v40  ;;  %v1036_v45 = vmax.f32 %v1004_v60, 0.0  ;;  %v1032_v43 = vmax.f32 %v1000_v1, 0.0 }
 0x3ba   :  { %v290_v28 = vpop.f32.mrf.mxu1  ;;  %v4062_v1 = vadd.f32 %v3912_v19, %v3978_v56 }
 0x3bb   :  { %1231 = vperm.xlu0 %3072, %v4014_v38   ;;  %v5284_v7 = vmax.f32 %v4037_v5, 0.0  ;;  %v1066_v14 = vmul.f32 %v3757_v52, %v1032_v43  ;;  %v291_v32 = vadd.f32 %v290_v28, %v3991_v16 }
 0x3bc   :  { %5399 = vst [vmem:[#allocation35_spill] sm:$0xff] %v4062_v1  ;;  %v933_v56 = vpop.f32.mrf.mxu3 }
 0x3bd   :  { %1206 = vperm.xlu2 %3071, %v4017_v13  }
 0x3cf   :  { %v4023_v44 = vpop.xlane.xlu2 %1109 }
 0x3d2   :  { %1226 = vperm.xlu1 %3073, %v4026_v58  }
 0x3d7   :  { %v1192_v62 = vpop.permute.xlu2 %1191 }
 0x3d8   :  { %v1338_v9 = vmul.f32 %v3987_v30, %v1192_v62  ;;  %v968_v62 = vadd.f32 %v925_v51, %v767_v47 }
 0x3da   :  { %v4040_v20 = vadd.f32 %v1338_v9, %v288_v27  ;;  %v1070_v9 = vmul.f32 %v3757_v52, %v1036_v45  ;;  %v1002_v40 = vadd.f32 %v3743_v29, %v968_v62 }
 0x3dc   :  { %v5288_v61 = vmax.f32 %v4040_v20, 0.0  ;;  %v1034_v27 = vmax.f32 %v1002_v40, 0.0 }
 0x3de   :  { %v1432_v21 = vpack.c.bf16 %v5288_v61, %v5284_v7  ;;  %v1068_v51 = vmul.f32 %v3757_v52, %v1034_v27 }
 0x3df   :  { %v1197_v11 = vpop.permute.xlu2 %1196 }
 0x3e0   :  { %2992 = vmatmul.msk.bf16.gmra.mxu0 %vm133_vm2, %v1432_v21  ;;  %v1339_v60 = vmul.f32 %v3987_v30, %v1197_v11  ;;  %v292_v21 = vpop.f32.mrf.mxu1  ;;  %v935_v11 = vpop.f32.mrf.mxu3 }
 0x3e1   :  { %v4055_v23 = vpop.xlane.xlu1 %1113  ;;  %v293_v45 = vadd.f32 %v292_v21, %v3991_v16 }
 0x3e2   :  { %v4066_v36 = vadd.f32 %v1339_v60, %v291_v32  ;;  %v4085_v32 = vadd.f32 %v3912_v19, %v1102_v49 }
 0x3e4   :  { %v5285_v28 = vmax.f32 %v4066_v36, 0.0 }
 0x3e5   :  { %1129 = vadd.xlane.f32.xlu0 %v1070_v9  ;;  %v4072_v9 = vadd.f32 %v3912_v19, %v3970_v24 }
 0x3e6   :  { %1121 = vadd.xlane.f32.xlu2 %v1066_v14 }
 0x3e8   :  { %v938_v24 = vpop.f32.mrf.mxu3  ;;  %v295_v27 = vpop.f32.mrf.mxu1 }
 0x3e9   :  { %v973_v60 = vadd.f32 %v938_v24, %v772_v15  ;;  %v296_v2 = vadd.f32 %v295_v27, %v3991_v16 }
 0x3f9   :  { %v1202_v43 = vpop.permute.xlu1 %1201  ;;  %1246 = vperm.xlu0 %3072, %v4062_v1  }
 0x3fa   :  { %v1340_v47 = vmul.f32 %v3987_v30, %v1202_v43  ;;  %v1007_v43 = vadd.f32 %v3743_v29, %v973_v60 }
 0x3fc   :  { %v4074_v14 = vadd.f32 %v1340_v47, %v293_v45  ;;  %1125 = vadd.xlane.f32.xlu1 %v1068_v51  ;;  %v969_v45 = vadd.f32 %v928_v34, %v768_v55  ;;  %v297_v51 = vpop.f32.mrf.mxu1 }
 0x3fd   :  { %v298_v7 = vadd.f32 %v297_v51, %v3991_v16  ;;  %v4116_v51 = vadd.f32 %v3912_v19, %v4023_v44 }
 0x3fe   :  { %v5283_v62 = vmax.f32 %v4074_v14, 0.0  ;;  %1221 = vperm.xlu2 %3071, %v4072_v9  }
 0x3ff   :  { %5401 = vst [vmem:[#allocation36_spill] sm:$0xff] %v4116_v51 }
 0x400   :  { %v1433_v40 = vpack.c.bf16 %v5283_v62, %v5285_v28  ;;  %v1039_v62 = vmax.f32 %v1007_v43, 0.0 }
 0x401   :  { %v1212_v47 = vpop.permute.xlu1 %1211 }
 0x402   :  { %2993 = vmatmul.msk.bf16.gmra.mxu0 %vm133_vm2, %v1433_v40  ;;  %v1003_v40 = vadd.f32 %v3743_v29, %v969_v45  ;;  %v1342_v49 = vmul.f32 %v3987_v30, %v1212_v47  ;;  %v1073_v55 = vmul.f32 %v3757_v52, %v1039_v62 }
 0x404   :  { %v1035_v24 = vmax.f32 %v1003_v40, 0.0  ;;  %v4097_v28 = vadd.f32 %v1342_v49, %v298_v7  ;;  %v5400_v7 = vmax.f32 %v3524_v42, 0.0  ;;  %v4121_v49 = vadd.f32 %v3912_v19, %v3976_v12  ;;  %v1112_v42 = vpop.xlane.xlu0 %1111  ;;  %v300_v44 = vpop.f32.mrf.mxu1 }
 0x406   :  { %v5286_v60 = vmax.f32 %v4097_v28, 0.0  ;;  %v1069_v43 = vmul.f32 %v3757_v52, %v1035_v24  ;;  %v971_v62 = vadd.f32 %v933_v56, %v5400_v7  ;;  %5402 = vst [vmem:[#allocation37_spill] sm:$0xff] %v4121_v49  ;;  %v4131_v24 = vadd.f32 %v3912_v19, %v4021_v17 }
 0x408   :  { %v1005_v47 = vadd.f32 %v3743_v29, %v971_v62  ;;  %5404 = vst [vmem:[#allocation39_spill] sm:$0xff] %v4131_v24  ;;  %v301_v62 = vadd.f32 %v300_v44, %v3991_v16 }
 0x40a   :  { %v1037_v40 = vmax.f32 %v1005_v47, 0.0 }
 0x40c   :  { %v1118_v56 = vpop.xlane.xlu0 %1117 }
 0x415   :  { %1241 = vperm.xlu1 %3073, %v4085_v32  }
 0x418   :  { %v1116_v21 = vpop.xlane.xlu2 %1115 }
 0x420   :  { %v1207_v15 = vpop.permute.xlu2 %1206 }
 0x421   :  { %v1341_v26 = vmul.f32 %v3987_v30, %v1207_v15  ;;  %v4125_v15 = vadd.f32 %v3912_v19, %v1116_v21 }
 0x423   :  { %v4101_v34 = vadd.f32 %v1341_v26, %v296_v2  ;;  %1135 = vadd.xlane.f32.xlu0 %v1073_v55  ;;  %v1071_v2 = vmul.f32 %v3757_v52, %v1037_v40  ;;  %5403 = vst [vmem:[#allocation38_spill] sm:$0xff] %v4125_v15  ;;  %v302_v26 = vpop.f32.mrf.mxu1  ;;  %v5405_v55 = vmax.f32 %v3862_v3, 0.0 }
 0x424   :  { %v303_v47 = vadd.f32 %v302_v26, %v3991_v16 }
 0x425   :  { %v5287_v45 = vmax.f32 %v4101_v34, 0.0  ;;  %v972_v21 = vadd.f32 %v935_v11, %v5405_v55 }
 0x427   :  { %v1434_v27 = vpack.c.bf16 %v5286_v60, %v5287_v45  ;;  %1127 = vadd.xlane.f32.xlu2 %v1069_v43  ;;  %v1006_v7 = vadd.f32 %v3743_v29, %v972_v21 }
 0x429   :  { %2994 = vmatmul.msk.bf16.gmra.mxu0 %vm133_vm2, %v1434_v27  ;;  %v1217_v27 = vpop.permute.xlu0 %1216  ;;  %v1038_v45 = vmax.f32 %v1006_v7, 0.0 }
 0x42a   :  { %v1343_v17 = vmul.f32 %v3987_v30, %v1217_v27 }
 0x42b   :  { %v305_v40 = vpop.f32.mrf.mxu1  ;;  %v1072_v44 = vmul.f32 %v3757_v52, %v1038_v45 }
 0x42c   :  { %v4144_v3 = vadd.f32 %v1343_v17, %v301_v62  ;;  %v306_v62 = vadd.f32 %v305_v40, %v3991_v16 }
 0x42e   :  { %v5291_v61 = vmax.f32 %v4144_v3, 0.0 }
 0x433   :  { %v307_v7 = vpop.f32.mrf.mxu1 }
 0x437   :  { %1261 = vperm.xlu0 %3072, %v4116_v51  }
 0x43f   :  { %1236 = vperm.xlu2 %3071, %v4121_v49   ;;  %1131 = vadd.xlane.f32.xlu1 %v1071_v2  ;;  %v1120_v2 = vpop.xlane.xlu1 %1119 }
 0x440   :  { %1276 = vperm.xlu0 %3072, %v4125_v15  }
 0x447   :  { %v1227_v27 = vpop.permute.xlu1 %1226 }
 0x448   :  { %v1345_v17 = vmul.f32 %v3987_v30, %v1227_v27 }
 0x44a   :  { %v4161_v45 = vadd.f32 %v1345_v17, %v306_v62  ;;  %v310_v62 = vpop.f32.mrf.mxu1 }
 0x458   :  { %1256 = vperm.xlu1 %3073, %v4131_v24  }
 0x459   :  { %v1122_v12 = vpop.xlane.xlu2 %1121 }
 0x45a   :  { %v4137_v43 = vadd.f32 %v3912_v19, %v1122_v12  ;;  %v1124_v12 = vpop.xlane.xlu0 %1123 }
 0x45c   :  { %5406 = vst [vmem:[#allocation40_spill] sm:$0xff] %v4137_v43  ;;  %1291 = vperm.xlu0 %3072, %v4137_v43   ;;  %v940_v43 = vpop.f32.mrf.mxu3 }
 0x461   :  { %v1222_v60 = vpop.permute.xlu2 %1221 }
 0x462   :  { %v1344_v11 = vmul.f32 %v3987_v30, %v1222_v60  ;;  %v1232_v60 = vpop.permute.xlu0 %1231 }
 0x464   :  { %v4147_v55 = vadd.f32 %v1344_v11, %v303_v47  ;;  %v308_v47 = vadd.f32 %v307_v7, %v3991_v16  ;;  %v1346_v11 = vmul.f32 %v3987_v30, %v1232_v60  ;;  %v4177_v60 = vadd.f32 %v3912_v19, %v3982_v53 }
 0x465   :  { %v4190_v53 = vadd.f32 %v3912_v19, %v1124_v12 }
 0x466   :  { %v5292_v21 = vmax.f32 %v4147_v55, 0.0  ;;  %v4163_v15 = vadd.f32 %v1346_v11, %v308_v47  ;;  %5408 = vst [vmem:[#allocation41_spill] sm:$0xff] %v4177_v60 }
 0x467   :  { %5411 = vst [vmem:[#allocation44_spill] sm:$0xff] %v4190_v53 }
 0x468   :  { %v1435_v26 = vpack.c.bf16 %v5292_v21, %v5291_v61  ;;  %1133 = vadd.xlane.f32.xlu2 %v1072_v44  ;;  %v5407_v44 = vmax.f32 %v3882_v59, 0.0  ;;  %v5293_v21 = vmax.f32 %v4163_v15, 0.0 }
 0x46a   :  { %2995 = vmatmul.msk.bf16.gmra.mxu0 %vm133_vm2, %v1435_v26  ;;  %v974_v61 = vadd.f32 %v940_v43, %v5407_v44  ;;  %v5294_v26 = vmax.f32 %v4161_v45, 0.0  ;;  %v4182_v43 = vadd.f32 %v3912_v19, %v1112_v42  ;;  %v4197_v42 = vpop.f32.mrf.mxu0 }
 0x46c   :  { %v1008_v40 = vadd.f32 %v3743_v29, %v974_v61  ;;  %v1436_v27 = vpack.c.bf16 %v5293_v21, %v5294_v26  ;;  %5409 = vst [vmem:[#allocation42_spill] sm:$0xff] %v4182_v43  ;;  %v4186_v29 = vadd.f32 %v3912_v19, %v1118_v56  ;;  %v1130_v61 = vpop.xlane.xlu0 %1129 }
 0x46d   :  { %v4205_v12 = vadd.f32 %v3912_v19, %v1130_v61 }
 0x46e   :  { %v1040_v7 = vmax.f32 %v1008_v40, 0.0  ;;  %5410 = vst [vmem:[#allocation43_spill] sm:$0xff] %v4186_v29  ;;  %v312_v40 = vpop.f32.mrf.mxu1 }
 0x46f   :  { %v1126_v17 = vpop.xlane.xlu1 %1125  ;;  %5414 = vst [vmem:[#allocation47_spill] sm:$0xff] %v4205_v12 }
 0x470   :  { %v1074_v59 = vmul.f32 %v3757_v52, %v1040_v7  ;;  %v4195_v52 = vadd.f32 %v3912_v19, %v4055_v23  ;;  %v4211_v7 = vadd.f32 %v3912_v19, %v1120_v2 }
 0x472   :  { %5412 = vst [vmem:[#allocation45_spill] sm:$0xff] %v4195_v52  ;;  %v1523_v61 = vpop.f32.mrf.mxu0 }
 0x473   :  { %5415 = vst [vmem:[#allocation48_spill] sm:$0xff] %v4211_v7 }
 0x474   :  { %v1247_v11 = vpop.permute.xlu0 %1246 }
 0x47a   :  { %2996 = vmatmul.msk.bf16.gmra.mxu0 %vm133_vm2, %v1436_v27  ;;  %v313_v27 = vadd.f32 %v312_v40, %v3991_v16 }
 0x480   :  { %1251 = vperm.xlu2 %3071, %v4177_v60  }
 0x482   :  { %1137 = vadd.xlane.f32.xlu1 %v1074_v59  ;;  %v311_v59 = vadd.f32 %v310_v62, %v3991_v16  ;;  %v4227_v62 = vadd.f32 %v3912_v19, %v1126_v17 }
 0x484   :  { %5417 = vst [vmem:[#allocation50_spill] sm:$0xff] %v4227_v62 }
 0x487   :  { %v1242_v44 = vpop.permute.xlu1 %1241 }
 0x488   :  { %1266 = vperm.xlu2 %3071, %v4182_v43   ;;  %v1348_v23 = vmul.f32 %v3987_v30, %v1242_v44 }
 0x48a   :  { %v4214_v21 = vadd.f32 %v1348_v23, %v313_v27 }
 0x48c   :  { %v5298_v40 = vmax.f32 %v4214_v21, 0.0 }
 0x490   :  { %1281 = vperm.xlu2 %3071, %v4186_v29  }
 0x496   :  { %v1136_v26 = vpop.xlane.xlu0 %1135 }
 0x497   :  { %v4221_v44 = vadd.f32 %v3912_v19, %v1136_v26  ;;  %v4235_v26 = vpop.f32.mrf.mxu0 }
 0x498   :  { %1296 = vperm.xlu2 %3071, %v4190_v53  }
 0x499   :  { %5416 = vst [vmem:[#allocation49_spill] sm:$0xff] %v4221_v44 }
 0x49a   :  { %v1128_v47 = vpop.xlane.xlu2 %1127 }
 0x49b   :  { %v4200_v56 = vadd.f32 %v3912_v19, %v1128_v47  ;;  %1271 = vperm.xlu1 %3073, %v4195_v52  }
 0x49d   :  { %5413 = vst [vmem:[#allocation46_spill] sm:$0xff] %v4200_v56  ;;  %1306 = vperm.xlu0 %3072, %v4200_v56  }
 0x4a0   :  { %1311 = vperm.xlu2 %3071, %v4205_v12  }
 0x4a2   :  { %v1237_v47 = vpop.permute.xlu2 %1236 }
 0x4a3   :  { %v1347_v56 = vmul.f32 %v3987_v30, %v1237_v47  ;;  %1286 = vperm.xlu1 %3073, %v4211_v7   ;;  %v5419_v47 = vmax.f32 %v4002_v6, 0.0 }
 0x4a5   :  { %v4218_v53 = vadd.f32 %v1347_v56, %v311_v59  ;;  %v1528_v59 = vpop.f32.mrf.mxu0 }
 0x4a7   :  { %v5299_v2 = vmax.f32 %v4218_v53, 0.0 }
 0x4a8   :  { %1326 = vperm.xlu2 %3071, %v4221_v44   ;;  %v1602_v44 = vadd.f32 %v1523_v61, %v5419_v47 }
 0x4a9   :  { %v1437_v27 = vpack.c.bf16 %v5298_v40, %v5299_v2 }
 0x4ab   :  { %2997 = vmatmul.msk.bf16.gmra.mxu0 %vm133_vm2, %v1437_v27  ;;  %1301 = vperm.xlu1 %3073, %v4227_v62   ;;  %v4248_v27 = vld [vmem:[%s5255_s7 + $0x1] ss:$0 sm:$0xff]  ;;  %v315_v62 = vpop.f32.mrf.mxu1 }
 0x4ac   :  { %v1636_v40 = vadd.f32 %v4248_v27, %v1602_v44  ;;  %v5421_v44 = vmax.f32 %v4101_v34, 0.0  ;;  %v316_v34 = vadd.f32 %v315_v62, %v3991_v16 }
 0x4ad   :  { %v4241_v17 = vpop.f32.mrf.mxu0 }
 0x4ae   :  { %v1668_v29 = vmax.f32 %v1636_v40, 0.0 }
 0x4b2   :  { %v1132_v56 = vpop.xlane.xlu1 %1131 }
 0x4b3   :  { %v4238_v23 = vadd.f32 %v3912_v19, %v1132_v56  ;;  %v5420_v56 = vmax.f32 %v4040_v20, 0.0 }
 0x4b5   :  { %5418 = vst [vmem:[#allocation51_spill] sm:$0xff] %v4238_v23  ;;  %1316 = vperm.xlu1 %3073, %v4238_v23   ;;  %v4251_v2 = vpop.f32.mrf.mxu0  ;;  %v1604_v12 = vadd.f32 %v1528_v59, %v5420_v56  ;;  %v4258_v23 = vld [vmem:[%s5256_s8 + $0x1] ss:$0 sm:$0xff]  ;;  %v317_v59 = vpop.f32.mrf.mxu1 }
 0x4b6   :  { %v1702_v61 = vmul.f32 %v4258_v23, %v1668_v29 }
 0x4b7   :  { %v1638_v6 = vadd.f32 %v4248_v27, %v1604_v12 }
 0x4b9   :  { %v1670_v7 = vmax.f32 %v1638_v6, 0.0  ;;  %v1349_v6 = vmul.f32 %v3987_v30, %v1247_v11 }
 0x4bb   :  { %v1704_v40 = vmul.f32 %v4258_v23, %v1670_v7  ;;  %v4273_v7 = vadd.f32 %v1349_v6, %v316_v34 }
 0x4bd   :  { %v1536_v47 = vpop.f32.mrf.mxu0 }
 0x4be   :  { %v1607_v43 = vadd.f32 %v1536_v47, %v5421_v44  ;;  %v318_v47 = vadd.f32 %v317_v59, %v3991_v16  ;;  %v1262_v59 = vpop.permute.xlu0 %1261 }
 0x4c0   :  { %v1641_v20 = vadd.f32 %v4248_v27, %v1607_v43  ;;  %v320_v43 = vpop.f32.mrf.mxu1 }
 0x4c1   :  { %v321_v34 = vadd.f32 %v320_v43, %v3991_v16 }
 0x4c2   :  { %v1673_v56 = vmax.f32 %v1641_v20, 0.0 }
 0x4c4   :  { %v1707_v12 = vmul.f32 %v4258_v23, %v1673_v56 }
 0x4c5   :  { %v1538_v29 = vpop.f32.mrf.mxu0 }
 0x4ca   :  { %v1257_v62 = vpop.permute.xlu1 %1256 }
 0x4cb   :  { %v1351_v6 = vmul.f32 %v3987_v30, %v1257_v62 }
 0x4cd   :  { %v4294_v24 = vadd.f32 %v1351_v6, %v321_v34  ;;  %v5425_v34 = vmax.f32 %v4066_v36, 0.0 }
 0x4cf   :  { %v1415_v43 = vmax.f32 %v4294_v24, 0.0  ;;  %v1605_v6 = vadd.f32 %v4241_v17, %v5425_v34 }
 0x4d1   :  { %1735 = vadd.xlane.f32.xlu2 %v1702_v61 }
 0x4d9   :  { %1739 = vadd.xlane.f32.xlu2 %v1704_v40  ;;  %v5312_v40 = vmax.f32 %v4273_v7, 0.0 }
 0x4db   :  { %v1134_v60 = vpop.xlane.xlu2 %1133 }
 0x4dc   :  { %v4267_v52 = vadd.f32 %v3912_v19, %v1134_v60 }
 0x4de   :  { %5422 = vst [vmem:[#allocation52_spill] sm:$0xff] %v4267_v52  ;;  %1321 = vperm.xlu0 %3072, %v4267_v52   ;;  %v5423_v52 = vmax.f32 %v4147_v55, 0.0  ;;  %v5424_v55 = vmax.f32 %v3997_v4, 0.0 }
 0x4e1   :  { %1745 = vadd.xlane.f32.xlu2 %v1707_v12  ;;  %v322_v12 = vpop.f32.mrf.mxu1 }
 0x4e3   :  { %v1252_v61 = vpop.permute.xlu2 %1251 }
 0x4e4   :  { %v1350_v44 = vmul.f32 %v3987_v30, %v1252_v61 }
 0x4e6   :  { %v4277_v60 = vadd.f32 %v1350_v44, %v318_v47  ;;  %v323_v47 = vadd.f32 %v322_v12, %v3991_v16  ;;  %v1352_v44 = vmul.f32 %v3987_v30, %v1262_v59 }
 0x4e7   :  { %v4279_v20 = vpop.f32.mrf.mxu0 }
 0x4e8   :  { %v5311_v56 = vmax.f32 %v4277_v60, 0.0 }
 0x4e9   :  { %v325_v49 = vpop.f32.mrf.mxu1 }
 0x4ea   :  { %v1438_v11 = vpack.c.bf16 %v5311_v56, %v5312_v40  ;;  %v4297_v40 = vadd.f32 %v1352_v44, %v323_v47  ;;  %v326_v44 = vadd.f32 %v325_v49, %v3991_v16  ;;  %v5427_v49 = vmax.f32 %v4161_v45, 0.0 }
 0x4ec   :  { %2998 = vmatmul.msk.bf16.gmra.mxu0 %vm133_vm2, %v1438_v11  ;;  %v1416_v59 = vmax.f32 %v4297_v40, 0.0 }
 0x4ef   :  { %v1543_v61 = vpop.f32.mrf.mxu0 }
 0x4f0   :  { %v1610_v51 = vadd.f32 %v1543_v61, %v5423_v52  ;;  %v1439_v52 = vpack.c.bf16 %v1416_v59, %v1415_v43  ;;  %v1639_v61 = vadd.f32 %v4248_v27, %v1605_v6 }
 0x4f2   :  { %v1644_v56 = vadd.f32 %v4248_v27, %v1610_v51  ;;  %v1601_v51 = vadd.f32 %v4197_v42, %v5424_v55  ;;  %v1267_v42 = vpop.permute.xlu2 %1266  ;;  %v1671_v47 = vmax.f32 %v1639_v61, 0.0 }
 0x4f3   :  { %v1353_v55 = vmul.f32 %v3987_v30, %v1267_v42 }
 0x4f4   :  { %v1676_v11 = vmax.f32 %v1644_v56, 0.0  ;;  %v1705_v34 = vmul.f32 %v4258_v23, %v1671_v47 }
 0x4f5   :  { %v1138_v1 = vpop.xlane.xlu1 %1137 }
 0x4f6   :  { %v4301_v62 = vadd.f32 %v3912_v19, %v1138_v1  ;;  %v1710_v12 = vmul.f32 %v4258_v23, %v1676_v11  ;;  %v1635_v19 = vadd.f32 %v4248_v27, %v1601_v51  ;;  %v327_v1 = vpop.f32.mrf.mxu1  ;;  %v5426_v11 = vmax.f32 %v4097_v28, 0.0 }
 0x4f7   :  { %v1546_v6 = vpop.f32.mrf.mxu0 }
 0x4f8   :  { %1751 = vadd.xlane.f32.xlu2 %v1710_v12  ;;  %1331 = vperm.xlu1 %3073, %v4301_v62   ;;  %v1667_v56 = vmax.f32 %v1635_v19, 0.0  ;;  %v1608_v12 = vadd.f32 %v1538_v29, %v5426_v11  ;;  %v4326_v19 = vadd.f32 %v1353_v55, %v326_v44  ;;  %v1611_v29 = vadd.f32 %v1546_v6, %v5427_v49 }
 0x4f9   :  { %v5428_v44 = vmax.f32 %v4037_v5, 0.0  ;;  %v5429_v49 = vmax.f32 %v4074_v14, 0.0  ;;  %v5430_v14 = vmax.f32 %v4144_v3, 0.0 }
 0x4fa   :  { %v1701_v4 = vmul.f32 %v4258_v23, %v1667_v56  ;;  %v1642_v17 = vadd.f32 %v4248_v27, %v1608_v12  ;;  %v1417_v28 = vmax.f32 %v4326_v19, 0.0  ;;  %v1282_v12 = vpop.permute.xlu2 %1281  ;;  %v1645_v55 = vadd.f32 %v4248_v27, %v1611_v29 }
 0x4fb   :  { %v1603_v11 = vadd.f32 %v4235_v26, %v5428_v44  ;;  %v1356_v5 = vmul.f32 %v3987_v30, %v1282_v12  ;;  %v1606_v29 = vadd.f32 %v4251_v2, %v5429_v49  ;;  %v1609_v2 = vadd.f32 %v4279_v20, %v5430_v14 }
 0x4fc   :  { %2999 = vmatmul.msk.bf16.gmra.mxu0 %vm133_vm2, %v1439_v52  ;;  %v328_v52 = vadd.f32 %v327_v1, %v3991_v16  ;;  %v5431_v49 = vmax.f32 %v4218_v53, 0.0 }
 0x4fe   :  { %v330_v51 = vpop.f32.mrf.mxu1 }
 0x4ff   :  { %v331_v26 = vadd.f32 %v330_v51, %v3991_v16  ;;  %v1548_v51 = vpop.f32.mrf.mxu0 }
 0x506   :  { %v332_v42 = vpop.f32.mrf.mxu1 }
 0x508   :  { %1733 = vadd.xlane.f32.xlu0 %v1701_v4  ;;  %v1674_v4 = vmax.f32 %v1642_v17, 0.0  ;;  %v333_v17 = vadd.f32 %v332_v42, %v3991_v16 }
 0x50a   :  { %v1708_v45 = vmul.f32 %v4258_v23, %v1674_v4  ;;  %v4354_v44 = vadd.f32 %v1356_v5, %v333_v17 }
 0x50c   :  { %v5315_v12 = vmax.f32 %v4354_v44, 0.0 }
 0x50d   :  { %v1272_v36 = vpop.permute.xlu1 %1271 }
 0x50e   :  { %v1354_v56 = vmul.f32 %v3987_v30, %v1272_v36  ;;  %v1637_v36 = vadd.f32 %v4248_v27, %v1603_v11  ;;  %v335_v4 = vpop.f32.mrf.mxu1  ;;  %v1640_v11 = vadd.f32 %v4248_v27, %v1606_v29 }
 0x510   :  { %v4330_v61 = vadd.f32 %v1354_v56, %v328_v52  ;;  %1741 = vadd.xlane.f32.xlu0 %v1705_v34  ;;  %v1277_v52 = vpop.permute.xlu0 %1276  ;;  %v1677_v34 = vmax.f32 %v1645_v55, 0.0  ;;  %v1669_v6 = vmax.f32 %v1637_v36, 0.0  ;;  %v1672_v36 = vmax.f32 %v1640_v11, 0.0 }
 0x511   :  { %v1355_v56 = vmul.f32 %v3987_v30, %v1277_v52 }
 0x512   :  { %v1418_v1 = vmax.f32 %v4330_v61, 0.0  ;;  %v1711_v42 = vmul.f32 %v4258_v23, %v1677_v34  ;;  %v1703_v55 = vmul.f32 %v4258_v23, %v1669_v6  ;;  %v1643_v34 = vadd.f32 %v4248_v27, %v1609_v2 }
 0x513   :  { %v1706_v20 = vmul.f32 %v4258_v23, %v1672_v36 }
 0x514   :  { %v1440_v47 = vpack.c.bf16 %v1418_v1, %v1417_v28  ;;  %v1675_v14 = vmax.f32 %v1643_v34, 0.0 }
 0x515   :  { %v1287_v17 = vpop.permute.xlu1 %1286 }
 0x516   :  { %3000 = vmatmul.msk.bf16.gmra.mxu0 %vm133_vm2, %v1440_v47  ;;  %v4356_v47 = vadd.f32 %v1355_v56, %v331_v26  ;;  %v337_v5 = vpop.f32.mrf.mxu1  ;;  %v336_v56 = vadd.f32 %v335_v4, %v3991_v16  ;;  %v1357_v6 = vmul.f32 %v3987_v30, %v1287_v17  ;;  %v5432_v4 = vmax.f32 %v4163_v15, 0.0 }
 0x518   :  { %1747 = vadd.xlane.f32.xlu0 %v1708_v45  ;;  %v1419_v45 = vmax.f32 %v4356_v47, 0.0  ;;  %v1292_v26 = vpop.permute.xlu0 %1291  ;;  %v4382_v2 = vadd.f32 %v1357_v6, %v336_v56 }
 0x519   :  { %v1358_v11 = vmul.f32 %v3987_v30, %v1292_v26  ;;  %v1709_v26 = vmul.f32 %v4258_v23, %v1675_v14  ;;  %v343_v14 = vadd.f32 %v3410_v25, %v3991_v16 }
 0x51a   :  { %v1441_v52 = vpack.c.bf16 %v5315_v12, %v1419_v45 }
 0x520   :  { %1753 = vadd.xlane.f32.xlu0 %v1711_v42  ;;  %v338_v42 = vadd.f32 %v337_v5, %v3991_v16  ;;  %v1421_v5 = vmax.f32 %v4382_v2, 0.0  ;;  %v1307_v25 = vpop.permute.xlu0 %1306 }
 0x522   :  { %1737 = vadd.xlane.f32.xlu1 %v1703_v55  ;;  %v4384_v12 = vadd.f32 %v1358_v11, %v338_v42  ;;  %v1297_v42 = vpop.permute.xlu2 %1296 }
 0x524   :  { %v1422_v15 = vmax.f32 %v4384_v12, 0.0 }
 0x526   :  { %3001 = vmatmul.msk.bf16.gmra.mxu0 %vm133_vm2, %v1441_v52  ;;  %v1612_v52 = vadd.f32 %v1548_v51, %v5432_v4  ;;  %v1442_v6 = vpack.c.bf16 %v1422_v15, %v1421_v5  ;;  %v1359_v4 = vmul.f32 %v3987_v30, %v1297_v42 }
 0x528   :  { %v1551_v3 = vpop.f32.mrf.mxu0  ;;  %v1646_v53 = vadd.f32 %v4248_v27, %v1612_v52  ;;  %v341_v52 = vadd.f32 %v3406_v22, %v3991_v16  ;;  %v346_v22 = vadd.f32 %v3423_v31, %v3991_v16 }
 0x529   :  { %v1613_v29 = vadd.f32 %v1551_v3, %v5431_v49  ;;  %v1302_v49 = vpop.permute.xlu1 %1301 }
 0x52a   :  { %1743 = vadd.xlane.f32.xlu1 %v1706_v20  ;;  %v5433_v20 = vmax.f32 %v4214_v21, 0.0  ;;  %v1678_v56 = vmax.f32 %v1646_v53, 0.0  ;;  %v1360_v11 = vmul.f32 %v3987_v30, %v1302_v49 }
 0x52b   :  { %v1647_v55 = vadd.f32 %v4248_v27, %v1613_v29 }
 0x52d   :  { %v1679_v17 = vmax.f32 %v1647_v55, 0.0  ;;  %v1712_v55 = vmul.f32 %v4258_v23, %v1678_v56  ;;  %v348_v56 = vadd.f32 %v3427_v33, %v3991_v16  ;;  %v353_v33 = vadd.f32 %v3444_v41, %v3991_v16 }
 0x52f   :  { %v1713_v36 = vmul.f32 %v4258_v23, %v1679_v17  ;;  %v4407_v17 = vadd.f32 %v1360_v11, %v343_v14 }
 0x530   :  { %v1553_v3 = vpop.f32.mrf.mxu0 }
 0x531   :  { %v1614_v34 = vadd.f32 %v1553_v3, %v5433_v20  ;;  %1757 = vadd.xlane.f32.xlu2 %v1713_v36  ;;  %v4409_v36 = vadd.f32 %v1359_v4, %v341_v52  ;;  %v1424_v53 = vmax.f32 %v4407_v17, 0.0  ;;  %v1312_v20 = vpop.permute.xlu2 %1311  ;;  %v1317_v31 = vpop.permute.xlu1 %1316  ;;  %v351_v4 = vadd.f32 %v3440_v39, %v3991_v16 }
 0x532   :  { %1749 = vadd.xlane.f32.xlu1 %v1709_v26  ;;  %v1363_v14 = vmul.f32 %v3987_v30, %v1317_v31  ;;  %v5434_v39 = vmax.f32 %v4273_v7, 0.0 }
 0x533   :  { %v1648_v51 = vadd.f32 %v4248_v27, %v1614_v34  ;;  %v1423_v3 = vmax.f32 %v4409_v36, 0.0  ;;  %v1361_v34 = vmul.f32 %v3987_v30, %v1307_v25 }
 0x535   :  { %v1680_v29 = vmax.f32 %v1648_v51, 0.0  ;;  %v1443_v26 = vpack.c.bf16 %v1424_v53, %v1423_v3  ;;  %v1362_v51 = vmul.f32 %v3987_v30, %v1312_v20 }
 0x536   :  { %3002 = vmatmul.msk.bf16.gmra.mxu0 %vm133_vm2, %v1442_v6  ;;  %v4424_v6 = vadd.f32 %v1361_v34, %v346_v22 }
 0x537   :  { %v1714_v21 = vmul.f32 %v4258_v23, %v1680_v29  ;;  %v4426_v49 = vadd.f32 %v1362_v51, %v348_v56 }
 0x538   :  { %v1425_v29 = vmax.f32 %v4424_v6, 0.0 }
 0x539   :  { %1759 = vadd.xlane.f32.xlu0 %v1714_v21  ;;  %v1426_v42 = vmax.f32 %v4426_v49, 0.0  ;;  %v1327_v41 = vpop.permute.xlu2 %1326 }
 0x53a   :  { %1755 = vadd.xlane.f32.xlu1 %v1712_v55  ;;  %v1365_v51 = vmul.f32 %v3987_v30, %v1327_v41 }
 0x53b   :  { %v1444_v21 = vpack.c.bf16 %v1426_v42, %v1425_v29 }
 0x546   :  { %3003 = vmatmul.msk.bf16.gmra.mxu0 %vm133_vm2, %v1443_v26  ;;  %v4443_v26 = vadd.f32 %v1363_v14, %v351_v4 }
 0x548   :  { %v1427_v20 = vmax.f32 %v4443_v26, 0.0 }
 0x550   :  { %v1322_v11 = vpop.permute.xlu0 %1321 }
 0x551   :  { %v1364_v55 = vmul.f32 %v3987_v30, %v1322_v11  ;;  %v358_v11 = vadd.f32 %v3461_v48, %v3991_v16  ;;  %v5435_v48 = vmax.f32 %v4277_v60, 0.0 }
 0x553   :  { %v4441_v52 = vadd.f32 %v1364_v55, %v353_v33  ;;  %v356_v55 = vadd.f32 %v3457_v46, %v3991_v16 }
 0x555   :  { %v1428_v25 = vmax.f32 %v4441_v52, 0.0  ;;  %v4463_v4 = vadd.f32 %v1365_v51, %v356_v55 }
 0x556   :  { %3004 = vmatmul.msk.bf16.gmra.mxu0 %vm133_vm2, %v1444_v21 }
 0x557   :  { %v1445_v34 = vpack.c.bf16 %v1428_v25, %v1427_v20 }
 0x566   :  { %3005 = vmatmul.msk.bf16.gmra.mxu0 %vm133_vm2, %v1445_v34 }
 0x569   :  { %v1556_v22 = vpop.f32.mrf.mxu0 }
 0x56a   :  { %v1615_v56 = vadd.f32 %v1556_v22, %v5434_v39  ;;  %v1332_v21 = vpop.permute.xlu1 %1331  ;;  %v1429_v39 = vmax.f32 %v4463_v4, 0.0 }
 0x56b   :  { %v1366_v31 = vmul.f32 %v3987_v30, %v1332_v21 }
 0x56c   :  { %v1649_v33 = vadd.f32 %v4248_v27, %v1615_v56 }
 0x56d   :  { %v4461_v14 = vadd.f32 %v1366_v31, %v358_v11 }
 0x56e   :  { %v1681_v34 = vmax.f32 %v1649_v33, 0.0 }
 0x56f   :  { %v1430_v41 = vmax.f32 %v4461_v14, 0.0 }
 0x570   :  { %v1715_v7 = vmul.f32 %v4258_v23, %v1681_v34  ;;  %v4484_v34 = vld [vmem:[%s5257_s9 + $0x1] ss:$0 sm:$0xff] }
 0x571   :  { %v1558_v22 = vpop.f32.mrf.mxu0  ;;  %v1446_v46 = vpack.c.bf16 %v1430_v41, %v1429_v39 }
 0x572   :  { %v1616_v30 = vadd.f32 %v1558_v22, %v5435_v48  ;;  %1761 = vadd.xlane.f32.xlu1 %v1715_v7  ;;  %v1736_v22 = vpop.xlane.xlu2 %1735 }
 0x573   :  { %v1800_v24 = vadd.f32 %v4484_v34, %v1736_v22 }
 0x574   :  { %v1650_v16 = vadd.f32 %v4248_v27, %v1616_v30 }
 0x576   :  { %v1682_v51 = vmax.f32 %v1650_v16, 0.0  ;;  %3006 = vmatmul.msk.bf16.gmra.mxu0 %vm133_vm2, %v1446_v46 }
 0x578   :  { %v1716_v56 = vmul.f32 %v4258_v23, %v1682_v51 }
 0x579   :  { %v1561_v21 = vpop.f32.mrf.mxu0 }
 0x57a   :  { %v1617_v11 = vadd.f32 %v1561_v21, %v1415_v43  ;;  %1763 = vadd.xlane.f32.xlu2 %v1716_v56  ;;  %v4493_v43 = vadd.f32 %v1800_v24, %v3919_v10 }
 0x57b   :  { %v1734_v33 = vpop.xlane.xlu0 %1733 }
 0x57c   :  { %v1651_v60 = vadd.f32 %v4248_v27, %v1617_v11  ;;  %v1799_v7 = vadd.f32 %v4484_v34, %v1734_v33 }
 0x57e   :  { %v1683_v31 = vmax.f32 %v1651_v60, 0.0  ;;  %v4488_v48 = vadd.f32 %v1799_v7, %v3915_v8 }
 0x580   :  { %v1717_v55 = vmul.f32 %v4258_v23, %v1683_v31 }
 0x581   :  { %v1563_v51 = vpop.f32.mrf.mxu0 }
 0x582   :  { %1765 = vadd.xlane.f32.xlu0 %v1717_v55  ;;  %v1618_v8 = vadd.f32 %v1563_v51, %v1416_v59 }
 0x583   :  { %v1742_v61 = vpop.xlane.xlu0 %1741 }
 0x584   :  { %v1652_v21 = vadd.f32 %v4248_v27, %v1618_v8  ;;  %v1803_v51 = vadd.f32 %v4484_v34, %v1742_v61 }
 0x586   :  { %v1684_v11 = vmax.f32 %v1652_v21, 0.0 }
 0x588   :  { %v1718_v55 = vmul.f32 %v4258_v23, %v1684_v11 }
 0x58b   :  { %1866 = vperm.xlu1 %3073, %v4488_v48  }
 0x592   :  { %1871 = vperm.xlu2 %3071, %v4493_v43  }
 0x593   :  { %v1566_v56 = vpop.f32.mrf.mxu0 }
 0x594   :  { %v1619_v10 = vadd.f32 %v1566_v56, %v1417_v28  ;;  %v1740_v28 = vpop.xlane.xlu2 %1739  ;;  %v4525_v56 = vadd.f32 %v1803_v51, %v3947_v35  ;;  %v3085_v51 = vld [vmem:[%s5252_s4] sm:$0x7] }
 0x595   :  { %v1738_v30 = vpop.xlane.xlu1 %1737  ;;  %v1802_v22 = vadd.f32 %v4484_v34, %v1740_v28  ;;  %v4562_v2 = vperm.slane %v3085_v51, 2 }
 0x596   :  { %v1801_v46 = vadd.f32 %v4484_v34, %v1738_v30  ;;  %v1653_v60 = vadd.f32 %v4248_v27, %v1619_v10  ;;  %v3063_v10 = vld [vmem:[%s5254_s6 + $0x28] sm:$0xff] }
 0x597   :  { %v4515_v30 = vadd.f32 %v1802_v22, %v3943_v54  ;;  %2208 = vmatpush.bf16.msrb.mxu1 %v3063_v10  ;;  %v372_v10 = vadd.f32 %v3483_v63, %v4562_v2 }
 0x598   :  { %v4498_v16 = vadd.f32 %v1801_v46, %v3923_v0  ;;  %v1685_v0 = vmax.f32 %v1653_v60, 0.0 }
 0x59a   :  { %1876 = vperm.xlu0 %3072, %v4498_v16   ;;  %v1719_v40 = vmul.f32 %v4258_v23, %v1685_v0 }
 0x59b   :  { %v1568_v31 = vpop.f32.mrf.mxu0 }
 0x59c   :  { %v1620_v33 = vadd.f32 %v1568_v31, %v1418_v1  ;;  %v1746_v8 = vpop.xlane.xlu2 %1745 }
 0x59d   :  { %v1744_v24 = vpop.xlane.xlu1 %1743 }
 0x59e   :  { %v1654_v59 = vadd.f32 %v4248_v27, %v1620_v33  ;;  %v1804_v46 = vadd.f32 %v4484_v34, %v1744_v24 }
 0x5a0   :  { %v1686_v7 = vmax.f32 %v1654_v59, 0.0  ;;  %v4520_v1 = vadd.f32 %v1804_v46, %v3955_v50  ;;  %v3062_v50 = vld [vmem:[%s5254_s6 + $0x20] sm:$0xff] }
 0x5a1   :  { %2209 = vmatpush.bf16.msrb.mxu1 %v3062_v50 }
 0x5a2   :  { %v1720_v19 = vmul.f32 %v4258_v23, %v1686_v7 }
 0x5a3   :  { %v1571_v21 = vpop.f32.mrf.mxu0 }
 0x5a4   :  { %v4528_v54 = vpop.xlane.xlu2 %1751  ;;  %v1621_v31 = vadd.f32 %v1571_v21, %v1419_v45  ;;  %v4555_v45 = vld [vmem:[%s5253_s5 + $0x1] ss:$0 sm:$0xff] }
 0x5a5   :  { %v1750_v11 = vpop.xlane.xlu1 %1749 }
 0x5a6   :  { %v1655_v33 = vadd.f32 %v4248_v27, %v1621_v31  ;;  %v370_v31 = vadd.f32 %v3474_v57, %v4562_v2  ;;  %v1805_v57 = vadd.f32 %v4484_v34, %v1746_v8 }
 0x5ab   :  { %v1573_v35 = vpop.f32.mrf.mxu0 }
 0x5ac   :  { %v4536_v60 = vpop.xlane.xlu2 %1757 }
 0x5b3   :  { %v1576_v7 = vpop.f32.mrf.mxu0 }
 0x5b4   :  { %v1623_v22 = vadd.f32 %v1576_v7, %v1421_v5 }
 0x5b5   :  { %1767 = vadd.xlane.f32.xlu1 %v1718_v55  ;;  %v4540_v55 = vpop.xlane.xlu1 %1755 }
 0x5bb   :  { %1769 = vadd.xlane.f32.xlu2 %v1719_v40  ;;  %v5436_v40 = vmax.f32 %v4354_v44, 0.0  ;;  %v1657_v44 = vadd.f32 %v4248_v27, %v1623_v22  ;;  %v1748_v22 = vpop.xlane.xlu0 %1747  ;;  %v1578_v8 = vpop.f32.mrf.mxu0 }
 0x5bd   :  { %v1622_v59 = vadd.f32 %v1573_v35, %v5436_v40  ;;  %v1689_v50 = vmax.f32 %v1657_v44, 0.0 }
 0x5bf   :  { %v1656_v28 = vadd.f32 %v4248_v27, %v1622_v59  ;;  %v1723_v7 = vmul.f32 %v4258_v23, %v1689_v50 }
 0x5c1   :  { %v1688_v47 = vmax.f32 %v1656_v28, 0.0 }
 0x5c3   :  { %v1722_v21 = vmul.f32 %v4258_v23, %v1688_v47  ;;  %v1807_v47 = vadd.f32 %v4484_v34, %v1750_v11  ;;  %v1581_v11 = vpop.f32.mrf.mxu0 }
 0x5c4   :  { %1771 = vadd.xlane.f32.xlu0 %v1720_v19  ;;  %v1687_v19 = vmax.f32 %v1655_v33, 0.0 }
 0x5c5   :  { %v4591_v44 = vadd.f32 %v1807_v47, %v3950_v18 }
 0x5c6   :  { %v1721_v46 = vmul.f32 %v4258_v23, %v1687_v19 }
 0x5cb   :  { %v1583_v18 = vpop.f32.mrf.mxu0 }
 0x5ce   :  { %1881 = vperm.xlu1 %3073, %v4515_v30  }
 0x5d3   :  { %1891 = vperm.xlu2 %3071, %v4520_v1  }
 0x5d8   :  { %1886 = vperm.xlu0 %3072, %v4525_v56  }
 0x5e5   :  { %v4550_v24 = vpop.xlane.xlu1 %1761 }
 0x5ed   :  { %v4542_v0 = vpop.xlane.xlu2 %1763 }
 0x5f5   :  { %v1872_v61 = vpop.permute.xlu2 %1871 }
 0x5f6   :  { %v2026_v5 = vmul.f32 %v4555_v45, %v1872_v61  ;;  %v1806_v61 = vadd.f32 %v4484_v34, %v1748_v22  ;;  %v5437_v22 = vld [vmem:[#allocation5_spill] sm:$0xff] }
 0x5f7   :  { %v375_v47 = vadd.f32 %v5437_v22, %v4562_v2 }
 0x5f8   :  { %1773 = vadd.xlane.f32.xlu1 %v1721_v46  ;;  %v4570_v33 = vadd.f32 %v2026_v5, %v372_v10  ;;  %v4586_v46 = vadd.f32 %v1805_v57, %v4017_v13  ;;  %v4594_v51 = vadd.f32 %v1806_v61, %v3964_v37  ;;  %v1754_v5 = vpop.xlane.xlu0 %1753  ;;  %v1624_v13 = vadd.f32 %v1578_v8, %v1422_v15 }
 0x5f9   :  { %v1625_v10 = vadd.f32 %v1581_v11, %v1423_v3  ;;  %v1626_v37 = vadd.f32 %v1583_v18, %v1424_v53  ;;  %v5438_v11 = vld [vmem:[#allocation6_spill] sm:$0xff]  ;;  %v1809_v22 = vadd.f32 %v4484_v34, %v1754_v5 }
 0x5fa   :  { %v5325_v19 = vmax.f32 %v4570_v33, 0.0  ;;  %v1658_v50 = vadd.f32 %v4248_v27, %v1624_v13  ;;  %v377_v13 = vadd.f32 %v5438_v11, %v4562_v2  ;;  %v1810_v11 = vadd.f32 %v4484_v34, %v4540_v55 }
 0x5fc   :  { %1775 = vadd.xlane.f32.xlu2 %v1722_v21 }
 0x5fd   :  { %v1867_v35 = vpop.permute.xlu1 %1866 }
 0x5fe   :  { %v2025_v40 = vmul.f32 %v4555_v45, %v1867_v35 }
 0x600   :  { %v4573_v59 = vadd.f32 %v2025_v40, %v370_v31  ;;  %v4598_v21 = vpop.xlane.xlu0 %1759  ;;  %v1659_v31 = vadd.f32 %v4248_v27, %v1625_v10  ;;  %v1690_v40 = vmax.f32 %v1658_v50, 0.0 }
 0x602   :  { %v5326_v28 = vmax.f32 %v4573_v59, 0.0  ;;  %1777 = vadd.xlane.f32.xlu0 %v1723_v7  ;;  %v1660_v7 = vadd.f32 %v4248_v27, %v1626_v37  ;;  %v1724_v12 = vmul.f32 %v4258_v23, %v1690_v40 }
 0x604   :  { %v2121_v63 = vpack.c.bf16 %v5325_v19, %v5326_v28  ;;  %v1692_v15 = vmax.f32 %v1660_v7, 0.0 }
 0x606   :  { %3019 = vmatmul.msk.bf16.vlgmr.msrb.gmra.mxu1 %vm133_vm2, %v2121_v63  ;;  %v1691_v63 = vmax.f32 %v1659_v31, 0.0  ;;  %v1726_v53 = vmul.f32 %v4258_v23, %v1692_v15 }
 0x608   :  { %v4607_v35 = vpop.xlane.xlu0 %1765  ;;  %v1725_v3 = vmul.f32 %v4258_v23, %v1691_v63 }
 0x610   :  { %v1877_v36 = vpop.permute.xlu0 %1876 }
 0x611   :  { %1896 = vperm.xlu1 %3073, %v4586_v46   ;;  %v2027_v17 = vmul.f32 %v4555_v45, %v1877_v36  ;;  %v5439_v36 = vld [vmem:[#allocation7_spill] sm:$0xff] }
 0x613   :  { %v4623_v10 = vadd.f32 %v2027_v17, %v375_v47  ;;  %v5440_v47 = vld [vmem:[#allocation8_spill] sm:$0xff] }
 0x614   :  { %1906 = vperm.xlu2 %3071, %v4591_v44  }
 0x615   :  { %v5329_v31 = vmax.f32 %v4623_v10, 0.0 }
 0x616   :  { %1901 = vperm.xlu0 %3072, %v4594_v51  }
 0x628   :  { %v4611_v57 = vpop.xlane.xlu1 %1767 }
 0x62e   :  { %v4619_v61 = vpop.xlane.xlu2 %1769 }
 0x636   :  { %v1892_v63 = vpop.permute.xlu2 %1891 }
 0x637   :  { %v4626_v50 = vpop.xlane.xlu0 %1771  ;;  %v2030_v17 = vmul.f32 %v4555_v45, %v1892_v63  ;;  %v4656_v63 = vadd.f32 %v1809_v22, %v4026_v58  ;;  %v1586_v58 = vpop.f32.mrf.mxu0 }
 0x63b   :  { %1779 = vadd.xlane.f32.xlu1 %v1724_v12 }
 0x63d   :  { %1781 = vadd.xlane.f32.xlu2 %v1725_v3  ;;  %v380_v3 = vadd.f32 %v5439_v36, %v4562_v2 }
 0x640   :  { %1783 = vadd.xlane.f32.xlu0 %v1726_v53  ;;  %v1882_v8 = vpop.permute.xlu1 %1881  ;;  %v1808_v53 = vadd.f32 %v4484_v34, %v4528_v54  ;;  %v4659_v54 = vadd.f32 %v1810_v11, %v4014_v38  ;;  %v1588_v38 = vpop.f32.mrf.mxu0 }
 0x641   :  { %v2028_v18 = vmul.f32 %v4555_v45, %v1882_v8  ;;  %v382_v8 = vadd.f32 %v5440_v47, %v4562_v2 }
 0x643   :  { %v4628_v37 = vadd.f32 %v2028_v18, %v377_v13  ;;  %v4650_v18 = vadd.f32 %v2030_v17, %v382_v8 }
 0x645   :  { %v5323_v40 = vmax.f32 %v4628_v37, 0.0  ;;  %v5324_v55 = vmax.f32 %v4650_v18, 0.0 }
 0x647   :  { %v2122_v7 = vpack.c.bf16 %v5323_v40, %v5329_v31  ;;  %v5475_v31 = vld [vmem:[#allocation52_spill] sm:$0xff] }
 0x649   :  { %3020 = vmatmul.msk.bf16.gmra.mxu1 %vm133_vm2, %v2122_v7  ;;  %v4653_v7 = vadd.f32 %v1808_v53, %v4072_v9 }
 0x64a   :  { %v1887_v12 = vpop.permute.xlu0 %1886 }
 0x64b   :  { %v2029_v15 = vmul.f32 %v4555_v45, %v1887_v12  ;;  %v1591_v12 = vpop.f32.mrf.mxu0 }
 0x64c   :  { %v1629_v36 = vadd.f32 %v1591_v12, %v1427_v20 }
 0x64d   :  { %v4648_v13 = vadd.f32 %v2029_v15, %v380_v3  ;;  %v1627_v15 = vadd.f32 %v1586_v58, %v1425_v29  ;;  %v1628_v3 = vadd.f32 %v1588_v38, %v1426_v42  ;;  %v5441_v58 = vld [vmem:[#allocation9_spill] sm:$0xff] }
 0x64e   :  { %v1663_v53 = vadd.f32 %v4248_v27, %v1629_v36  ;;  %v385_v38 = vadd.f32 %v5441_v58, %v4562_v2 }
 0x64f   :  { %v5322_v5 = vmax.f32 %v4648_v13, 0.0  ;;  %v1661_v17 = vadd.f32 %v4248_v27, %v1627_v15  ;;  %v1662_v22 = vadd.f32 %v4248_v27, %v1628_v3  ;;  %v5442_v15 = vld [vmem:[#allocation10_spill] sm:$0xff] }
 0x650   :  { %v1695_v8 = vmax.f32 %v1663_v53, 0.0  ;;  %v387_v36 = vadd.f32 %v5442_v15, %v4562_v2 }
 0x651   :  { %v2123_v9 = vpack.c.bf16 %v5324_v55, %v5322_v5  ;;  %v1693_v47 = vmax.f32 %v1661_v17, 0.0  ;;  %v1694_v11 = vmax.f32 %v1662_v22, 0.0  ;;  %v1812_v22 = vadd.f32 %v4484_v34, %v4598_v21  ;;  %v5443_v21 = vld [vmem:[#allocation37_spill] sm:$0xff] }
 0x652   :  { %v1729_v29 = vmul.f32 %v4258_v23, %v1695_v8 }
 0x653   :  { %v1727_v6 = vmul.f32 %v4258_v23, %v1693_v47  ;;  %v1728_v26 = vmul.f32 %v4258_v23, %v1694_v11 }
 0x654   :  { %1911 = vperm.xlu1 %3073, %v4653_v7   ;;  %1916 = vperm.xlu0 %3072, %v4656_v63  }
 0x655   :  { %1921 = vperm.xlu2 %3071, %v4659_v54  }
 0x659   :  { %3021 = vmatmul.msk.bf16.gmra.mxu1 %vm133_vm2, %v2123_v9 }
 0x66b   :  { %v4680_v9 = vpop.xlane.xlu1 %1773 }
 0x675   :  { %v4685_v49 = vpop.xlane.xlu0 %1777 }
 0x67e   :  { %1785 = vadd.xlane.f32.xlu1 %v1727_v6  ;;  %1789 = vadd.xlane.f32.xlu0 %v1729_v29  ;;  %v4706_v6 = vadd.f32 %v1812_v22, %v4085_v32  ;;  %v1811_v29 = vadd.f32 %v4484_v34, %v4536_v60 }
 0x67f   :  { %1787 = vadd.xlane.f32.xlu2 %v1728_v26  ;;  %v1813_v26 = vadd.f32 %v4484_v34, %v4550_v24 }
 0x683   :  { %v1897_v42 = vpop.permute.xlu1 %1896 }
 0x684   :  { %v2031_v20 = vmul.f32 %v4555_v45, %v1897_v42  ;;  %v4715_v42 = vadd.f32 %v1811_v29, %v5443_v21 }
 0x686   :  { %v4692_v3 = vadd.f32 %v2031_v20, %v385_v38  ;;  %v5444_v20 = vld [vmem:[#allocation35_spill] sm:$0xff]  ;;  %v1593_v38 = vpop.f32.mrf.mxu0 }
 0x687   :  { %v4718_v58 = vadd.f32 %v1813_v26, %v5444_v20 }
 0x688   :  { %v1902_v12 = vpop.permute.xlu0 %1901  ;;  %v5320_v47 = vmax.f32 %v4692_v3, 0.0 }
 0x689   :  { %v2032_v17 = vmul.f32 %v4555_v45, %v1902_v12 }
 0x68b   :  { %v4695_v53 = vadd.f32 %v2032_v17, %v387_v36  ;;  %v1630_v36 = vadd.f32 %v1593_v38, %v1428_v25  ;;  %v1776_v17 = vpop.xlane.xlu2 %1775  ;;  %v5445_v25 = vld [vmem:[#allocation11_spill] sm:$0xff] }
 0x68c   :  { %v390_v38 = vadd.f32 %v5445_v25, %v4562_v2  ;;  %v5448_v25 = vld [vmem:[#allocation13_spill] sm:$0xff] }
 0x68d   :  { %v5319_v8 = vmax.f32 %v4695_v53, 0.0  ;;  %v1664_v29 = vadd.f32 %v4248_v27, %v1630_v36 }
 0x68e   :  { %v1596_v32 = vpop.f32.mrf.mxu0 }
 0x68f   :  { %v2124_v11 = vpack.c.bf16 %v5319_v8, %v5320_v47  ;;  %v1631_v12 = vadd.f32 %v1596_v32, %v1429_v39  ;;  %v1696_v20 = vmax.f32 %v1664_v29, 0.0 }
 0x691   :  { %3022 = vmatmul.msk.bf16.gmra.mxu1 %vm133_vm2, %v2124_v11  ;;  %v1665_v22 = vadd.f32 %v4248_v27, %v1631_v12  ;;  %v1730_v39 = vmul.f32 %v4258_v23, %v1696_v20 }
 0x692   :  { %1931 = vperm.xlu0 %3072, %v4706_v6  }
 0x693   :  { %v1697_v26 = vmax.f32 %v1665_v22, 0.0  ;;  %v1907_v14 = vpop.permute.xlu2 %1906 }
 0x694   :  { %v2033_v52 = vmul.f32 %v4555_v45, %v1907_v14 }
 0x695   :  { %v1731_v4 = vmul.f32 %v4258_v23, %v1697_v26  ;;  %v5447_v26 = vld [vmem:[#allocation39_spill] sm:$0xff] }
 0x696   :  { %v1598_v60 = vpop.f32.mrf.mxu0 }
 0x697   :  { %1936 = vperm.xlu2 %3071, %v4718_v58   ;;  %1926 = vperm.xlu1 %3073, %v4715_v42   ;;  %v1632_v24 = vadd.f32 %v1598_v60, %v1430_v41 }
 0x699   :  { %v1666_v15 = vadd.f32 %v4248_v27, %v1632_v24  ;;  %v5446_v24 = vld [vmem:[#allocation12_spill] sm:$0xff] }
 0x69a   :  { %v392_v12 = vadd.f32 %v5446_v24, %v4562_v2 }
 0x69b   :  { %v1698_v11 = vmax.f32 %v1666_v15, 0.0  ;;  %v4739_v15 = vadd.f32 %v2033_v52, %v390_v38  ;;  %v395_v38 = vadd.f32 %v5448_v25, %v4562_v2 }
 0x69d   :  { %v1732_v21 = vmul.f32 %v4258_v23, %v1698_v11  ;;  %v1815_v23 = vadd.f32 %v4484_v34, %v4607_v35  ;;  %v5321_v11 = vmax.f32 %v4739_v15, 0.0 }
 0x6ae   :  { %v1780_v41 = vpop.xlane.xlu1 %1779 }
 0x6b0   :  { %v1782_v32 = vpop.xlane.xlu2 %1781 }
 0x6b3   :  { %v1784_v27 = vpop.xlane.xlu0 %1783 }
 0x6b8   :  { %v1922_v35 = vpop.permute.xlu2 %1921 }
 0x6b9   :  { %v2036_v24 = vmul.f32 %v4555_v45, %v1922_v35 }
 0x6bc   :  { %1795 = vadd.xlane.f32.xlu0 %v1732_v21  ;;  %v4749_v21 = vadd.f32 %v1815_v23, %v5447_v26  ;;  %v5450_v23 = vld [vmem:[#allocation36_spill] sm:$0xff] }
 0x6c0   :  { %1793 = vadd.xlane.f32.xlu2 %v1731_v4  ;;  %v1816_v4 = vadd.f32 %v4484_v34, %v4611_v57  ;;  %v5451_v57 = vld [vmem:[#allocation45_spill] sm:$0xff] }
 0x6c1   :  { %1791 = vadd.xlane.f32.xlu1 %v1730_v39  ;;  %v1818_v39 = vadd.f32 %v4484_v34, %v4626_v50 }
 0x6c2   :  { %v4770_v26 = vadd.f32 %v1816_v4, %v5450_v23  ;;  %v1821_v4 = vadd.f32 %v4484_v34, %v4685_v49  ;;  %v1824_v49 = vadd.f32 %v4484_v34, %v1784_v27  ;;  %v5463_v27 = vld [vmem:[#allocation44_spill] sm:$0xff] }
 0x6c6   :  { %v1912_v60 = vpop.permute.xlu1 %1911  ;;  %v1917_v14 = vpop.permute.xlu0 %1916 }
 0x6c7   :  { %v2034_v36 = vmul.f32 %v4555_v45, %v1912_v60  ;;  %v2035_v52 = vmul.f32 %v4555_v45, %v1917_v14  ;;  %v1814_v60 = vadd.f32 %v4484_v34, %v4542_v0  ;;  %v5453_v14 = vld [vmem:[#allocation41_spill] sm:$0xff]  ;;  %v1819_v0 = vadd.f32 %v4484_v34, %v4680_v9 }
 0x6c9   :  { %v4744_v22 = vadd.f32 %v2034_v36, %v392_v12  ;;  %v5449_v12 = vld [vmem:[#allocation14_spill] sm:$0xff]  ;;  %v4775_v50 = vadd.f32 %v2035_v52, %v395_v38 }
 0x6ca   :  { %v397_v36 = vadd.f32 %v5449_v12, %v4562_v2  ;;  %v5454_v38 = vld [vmem:[#allocation38_spill] sm:$0xff] }
 0x6cb   :  { %v5316_v29 = vmax.f32 %v4744_v22, 0.0  ;;  %v5317_v35 = vmax.f32 %v4775_v50, 0.0 }
 0x6cc   :  { %v4780_v25 = vadd.f32 %v2036_v24, %v397_v36  ;;  %v5455_v24 = vld [vmem:[#allocation48_spill] sm:$0xff]  ;;  %v5456_v36 = vld [vmem:[#allocation42_spill] sm:$0xff] }
 0x6cd   :  { %v2125_v20 = vpack.c.bf16 %v5316_v29, %v5321_v11  ;;  %v4778_v29 = vadd.f32 %v1814_v60, %v5453_v14  ;;  %v4794_v60 = vadd.f32 %v1819_v0, %v5454_v38  ;;  %v4801_v12 = vadd.f32 %v1821_v4, %v5455_v24  ;;  %v5457_v14 = vld [vmem:[#allocation40_spill] sm:$0xff]  ;;  %v5459_v4 = vld [vmem:[#allocation50_spill] sm:$0xff]  ;;  %v5461_v38 = vld [vmem:[#allocation43_spill] sm:$0xff] }
 0x6ce   :  { %v5318_v52 = vmax.f32 %v4780_v25, 0.0 }
 0x6cf   :  { %3023 = vmatmul.msk.bf16.gmra.mxu1 %vm133_vm2, %v2125_v20  ;;  %v4773_v20 = vadd.f32 %v1818_v39, %v5451_v57  ;;  %v1817_v39 = vadd.f32 %v4484_v34, %v4619_v61  ;;  %v1822_v61 = vadd.f32 %v4484_v34, %v1780_v41  ;;  %v1820_v57 = vadd.f32 %v4484_v34, %v1776_v17 }
 0x6d0   :  { %1946 = vperm.xlu0 %3072, %v4749_v21   ;;  %v2126_v9 = vpack.c.bf16 %v5318_v52, %v5317_v35  ;;  %v1823_v41 = vadd.f32 %v4484_v34, %v1782_v32  ;;  %v5466_v35 = vld [vmem:[#allocation46_spill] sm:$0xff]  ;;  %v5468_v32 = vld [vmem:[#allocation47_spill] sm:$0xff] }
 0x6d1   :  { %5452 = vst [vmem:[#allocation5_spill] sm:$0xff] %v4773_v20  ;;  %v4804_v23 = vadd.f32 %v1817_v39, %v5456_v36  ;;  %v4814_v0 = vadd.f32 %v1822_v61, %v5457_v14  ;;  %v4817_v39 = vadd.f32 %v1824_v49, %v5459_v4  ;;  %v4820_v24 = vadd.f32 %v1820_v57, %v5461_v38  ;;  %v5464_v57 = vld [vmem:[#allocation51_spill] sm:$0xff] }
 0x6d3   :  { %5458 = vst [vmem:[#allocation6_spill] sm:$0xff] %v4814_v0 }
 0x6d4   :  { %5460 = vst [vmem:[#allocation7_spill] sm:$0xff] %v4817_v39 }
 0x6d5   :  { %5462 = vst [vmem:[#allocation8_spill] sm:$0xff] %v4820_v24 }
 0x6d8   :  { %1951 = vperm.xlu2 %3071, %v4770_v26   ;;  %1961 = vperm.xlu0 %3072, %v4773_v20  }
 0x6da   :  { %1941 = vperm.xlu1 %3073, %v4778_v29  }
 0x6df   :  { %3024 = vmatmul.msk.bf16.gmra.mxu1 %vm133_vm2, %v2126_v9  ;;  %v4827_v9 = vadd.f32 %v1823_v41, %v5463_v27  ;;  %v2211_v27 = vpop.f32.mrf.mxu1 }
 0x6e0   :  { %1966 = vperm.xlu2 %3071, %v4794_v60   ;;  %1976 = vperm.xlu0 %3072, %v4801_v12  }
 0x6e2   :  { %1956 = vperm.xlu1 %3073, %v4804_v23  }
 0x6e8   :  { %1981 = vperm.xlu2 %3071, %v4814_v0   ;;  %1991 = vperm.xlu0 %3072, %v4817_v39  }
 0x6ea   :  { %1971 = vperm.xlu1 %3073, %v4820_v24  }
 0x6f1   :  { %v1790_v17 = vpop.xlane.xlu0 %1789  ;;  %v1786_v36 = vpop.xlane.xlu1 %1785 }
 0x6f2   :  { %v1827_v61 = vadd.f32 %v4484_v34, %v1790_v17  ;;  %v1788_v49 = vpop.xlane.xlu2 %1787  ;;  %v1825_v14 = vadd.f32 %v4484_v34, %v1786_v36  ;;  %1986 = vperm.xlu1 %3073, %v4827_v9  }
 0x6f3   :  { %v1826_v38 = vadd.f32 %v4484_v34, %v1788_v49 }
 0x6f4   :  { %v4833_v4 = vadd.f32 %v1827_v61, %v5464_v57  ;;  %v4837_v52 = vadd.f32 %v1825_v14, %v5466_v35  ;;  %v5470_v61 = vld [vmem:[#allocation16_spill] sm:$0xff]  ;;  %v5471_v35 = vld [vmem:[#allocation15_spill] sm:$0xff] }
 0x6f5   :  { %v4842_v41 = vadd.f32 %v1826_v38, %v5468_v32  ;;  %v402_v57 = vadd.f32 %v5470_v61, %v4562_v2  ;;  %v400_v14 = vadd.f32 %v5471_v35, %v4562_v2  ;;  %v2213_v38 = vpop.f32.mrf.mxu1 }
 0x6f6   :  { %5465 = vst [vmem:[#allocation9_spill] sm:$0xff] %v4833_v4  ;;  %2006 = vperm.xlu0 %3072, %v4833_v4   ;;  %1996 = vperm.xlu2 %3071, %v4837_v52  }
 0x6f7   :  { %5467 = vst [vmem:[#allocation10_spill] sm:$0xff] %v4837_v52 }
 0x6f8   :  { %5469 = vst [vmem:[#allocation37_spill] sm:$0xff] %v4842_v41 }
 0x6fa   :  { %2001 = vperm.xlu1 %3073, %v4842_v41  }
 0x6fd   :  { %v2216_v61 = vpop.f32.mrf.mxu1 }
 0x704   :  { %v1932_v17 = vpop.permute.xlu0 %1931 }
 0x705   :  { %v2038_v36 = vmul.f32 %v4555_v45, %v1932_v17  ;;  %v2218_v35 = vpop.f32.mrf.mxu1 }
 0x707   :  { %v4850_v8 = vadd.f32 %v2038_v36, %v402_v57  ;;  %v1937_v57 = vpop.permute.xlu2 %1936 }
 0x709   :  { %v1927_v49 = vpop.permute.xlu1 %1926  ;;  %v5327_v32 = vmax.f32 %v4850_v8, 0.0 }
 0x70a   :  { %v2037_v47 = vmul.f32 %v4555_v45, %v1927_v49 }
 0x70c   :  { %v4853_v11 = vadd.f32 %v2037_v47, %v400_v14 }
 0x70d   :  { %v2221_v36 = vpop.f32.mrf.mxu1 }
 0x70e   :  { %v5328_v5 = vmax.f32 %v4853_v11, 0.0 }
 0x710   :  { %v2127_v17 = vpack.c.bf16 %v5327_v32, %v5328_v5 }
 0x712   :  { %3025 = vmatmul.msk.bf16.gmra.mxu1 %vm133_vm2, %v2127_v17  ;;  %v5473_v17 = vld [vmem:[#allocation49_spill] sm:$0xff] }
 0x715   :  { %v2223_v14 = vpop.f32.mrf.mxu1 }
 0x72f   :  { %v1796_v40 = vpop.xlane.xlu0 %1795 }
 0x730   :  { %v1830_v47 = vadd.f32 %v4484_v34, %v1796_v40 }
 0x732   :  { %v4864_v49 = vadd.f32 %v1830_v47, %v4301_v62  ;;  %v2226_v62 = vpop.f32.mrf.mxu1  ;;  %v2039_v47 = vmul.f32 %v4555_v45, %v1937_v57 }
 0x733   :  { %v1794_v55 = vpop.xlane.xlu2 %1793 }
 0x734   :  { %5472 = vst [vmem:[#allocation35_spill] sm:$0xff] %v4864_v49  ;;  %v1829_v19 = vadd.f32 %v4484_v34, %v1794_v55  ;;  %2021 = vperm.xlu0 %3072, %v4864_v49   ;;  %v1792_v28 = vpop.xlane.xlu1 %1791  ;;  %v5477_v55 = vld [vmem:[#allocation17_spill] sm:$0xff] }
 0x735   :  { %v1828_v32 = vadd.f32 %v4484_v34, %v1792_v28  ;;  %v405_v49 = vadd.f32 %v5477_v55, %v4562_v2  ;;  %v5478_v34 = vld [vmem:[#allocation18_spill] sm:$0xff]  ;;  %v4894_v55 = vld [vmem:[%s5255_s7 + $0x2] ss:$0 sm:$0xff] }
 0x736   :  { %v4870_v5 = vadd.f32 %v1829_v19, %v5473_v17  ;;  %v407_v28 = vadd.f32 %v5478_v34, %v4562_v2  ;;  %v5481_v34 = vmax.f32 %v4570_v33, 0.0 }
 0x737   :  { %v4873_v41 = vadd.f32 %v1828_v32, %v5475_v31  ;;  %v4882_v19 = vadd.f32 %v2039_v47, %v405_v49  ;;  %v5480_v49 = vmax.f32 %v4573_v59, 0.0 }
 0x738   :  { %5474 = vst [vmem:[#allocation11_spill] sm:$0xff] %v4870_v5  ;;  %2016 = vperm.xlu1 %3073, %v4870_v5   ;;  %v5479_v5 = vmax.f32 %v4623_v10, 0.0 }
 0x739   :  { %5476 = vst [vmem:[#allocation12_spill] sm:$0xff] %v4873_v41  ;;  %2011 = vperm.xlu2 %3071, %v4873_v41   ;;  %v5338_v4 = vmax.f32 %v4882_v19, 0.0  ;;  %v2291_v47 = vadd.f32 %v2211_v27, %v5480_v49 }
 0x73a   :  { %v2228_v40 = vpop.f32.mrf.mxu1  ;;  %v2293_v41 = vadd.f32 %v2216_v61, %v5479_v5 }
 0x73b   :  { %v2325_v0 = vadd.f32 %v4894_v55, %v2291_v47  ;;  %v5484_v47 = vld [vmem:[#allocation20_spill] sm:$0xff] }
 0x73c   :  { %v2327_v5 = vadd.f32 %v4894_v55, %v2293_v41 }
 0x73e   :  { %v2359_v33 = vmax.f32 %v2327_v5, 0.0 }
 0x742   :  { %v1947_v61 = vpop.permute.xlu0 %1946 }
 0x743   :  { %v2041_v27 = vmul.f32 %v4555_v45, %v1947_v61  ;;  %v5486_v61 = vmax.f32 %v4648_v13, 0.0  ;;  %v5487_v13 = vmax.f32 %v4739_v15, 0.0 }
 0x74c   :  { %v1942_v39 = vpop.permute.xlu1 %1941  ;;  %v2231_v17 = vpop.f32.mrf.mxu1 }
 0x74d   :  { %v2040_v31 = vmul.f32 %v4555_v45, %v1942_v39  ;;  %v2292_v39 = vadd.f32 %v2213_v38, %v5481_v34  ;;  %v5482_v38 = vmax.f32 %v4650_v18, 0.0  ;;  %v5483_v34 = vld [vmem:[#allocation19_spill] sm:$0xff]  ;;  %v5485_v18 = vmax.f32 %v4628_v37, 0.0 }
 0x74f   :  { %v4885_v32 = vadd.f32 %v2040_v31, %v407_v28  ;;  %v1952_v31 = vpop.permute.xlu2 %1951  ;;  %v2326_v59 = vadd.f32 %v4894_v55, %v2292_v39  ;;  %v2296_v49 = vadd.f32 %v2223_v14, %v5482_v38  ;;  %v2357_v39 = vmax.f32 %v2325_v0, 0.0 }
 0x750   :  { %v2042_v41 = vmul.f32 %v4555_v45, %v1952_v31  ;;  %v2294_v14 = vadd.f32 %v2218_v35, %v5485_v18  ;;  %v2295_v38 = vadd.f32 %v2221_v36, %v5486_v61  ;;  %v2299_v36 = vadd.f32 %v2231_v17, %v5487_v13 }
 0x751   :  { %v5337_v57 = vmax.f32 %v4885_v32, 0.0  ;;  %v2358_v5 = vmax.f32 %v2326_v59, 0.0  ;;  %v2330_v31 = vadd.f32 %v4894_v55, %v2296_v49  ;;  %v5489_v49 = vmax.f32 %v4695_v53, 0.0 }
 0x752   :  { %v2328_v37 = vadd.f32 %v4894_v55, %v2294_v14  ;;  %v2329_v35 = vadd.f32 %v4894_v55, %v2295_v38  ;;  %v2333_v15 = vadd.f32 %v4894_v55, %v2299_v36  ;;  %v5492_v36 = vld [vmem:[#allocation22_spill] sm:$0xff] }
 0x753   :  { %v2128_v10 = vpack.c.bf16 %v5337_v57, %v5338_v4  ;;  %v410_v57 = vadd.f32 %v5483_v34, %v4562_v2  ;;  %v412_v4 = vadd.f32 %v5484_v47, %v4562_v2  ;;  %v2362_v59 = vmax.f32 %v2330_v31, 0.0 }
 0x754   :  { %v2233_v28 = vpop.f32.mrf.mxu1  ;;  %v1957_v17 = vpop.permute.xlu1 %1956  ;;  %v2360_v14 = vmax.f32 %v2328_v37, 0.0  ;;  %v2365_v38 = vmax.f32 %v2333_v15, 0.0  ;;  %v5490_v31 = vmax.f32 %v4780_v25, 0.0  ;;  %v5491_v37 = vld [vmem:[#allocation21_spill] sm:$0xff]  ;;  %v5493_v25 = vmax.f32 %v4744_v22, 0.0 }
 0x755   :  { %3026 = vmatmul.msk.bf16.gmra.mxu1 %vm133_vm2, %v2128_v10  ;;  %v4917_v10 = vld [vmem:[%s5256_s8 + $0x2] ss:$0 sm:$0xff]  ;;  %v4921_v24 = vadd.f32 %v2041_v27, %v410_v57  ;;  %v4929_v20 = vadd.f32 %v2042_v41, %v412_v4  ;;  %v5488_v4 = vmax.f32 %v4692_v3, 0.0  ;;  %v2298_v41 = vadd.f32 %v2228_v40, %v5489_v49  ;;  %v1962_v3 = vpop.permute.xlu0 %1961 }
 0x756   :  { %v2393_v34 = vmul.f32 %v4917_v10, %v2359_v33  ;;  %v2392_v0 = vmul.f32 %v4917_v10, %v2358_v5  ;;  %v2391_v57 = vmul.f32 %v4917_v10, %v2357_v39  ;;  %v2361_v5 = vmax.f32 %v2329_v35, 0.0 }
 0x757   :  { %v2105_v47 = vmax.f32 %v4921_v24, 0.0  ;;  %v2106_v27 = vmax.f32 %v4929_v20, 0.0  ;;  %v2297_v33 = vadd.f32 %v2226_v62, %v5488_v4  ;;  %v2396_v18 = vmul.f32 %v4917_v10, %v2362_v59 }
 0x758   :  { %v2332_v62 = vadd.f32 %v4894_v55, %v2298_v41  ;;  %v2043_v40 = vmul.f32 %v4555_v45, %v1957_v17  ;;  %v415_v35 = vadd.f32 %v5491_v37, %v4562_v2  ;;  %v2044_v13 = vmul.f32 %v4555_v45, %v1962_v3 }
 0x759   :  { %v2129_v39 = vpack.c.bf16 %v2106_v27, %v2105_v47  ;;  %v2331_v53 = vadd.f32 %v4894_v55, %v2297_v33  ;;  %v417_v59 = vadd.f32 %v5492_v36, %v4562_v2  ;;  %v2300_v41 = vadd.f32 %v2233_v28, %v5493_v25 }
 0x75a   :  { %v4962_v33 = vadd.f32 %v2043_v40, %v415_v35  ;;  %v2364_v49 = vmax.f32 %v2332_v62, 0.0  ;;  %v2399_v17 = vmul.f32 %v4917_v10, %v2365_v38  ;;  %v5495_v35 = vld [vmem:[#allocation24_spill] sm:$0xff] }
 0x75b   :  { %v2363_v4 = vmax.f32 %v2331_v53, 0.0  ;;  %v2334_v3 = vadd.f32 %v4894_v55, %v2300_v41 }
 0x75c   :  { %v2236_v52 = vpop.f32.mrf.mxu1  ;;  %v2398_v28 = vmul.f32 %v4917_v10, %v2364_v49  ;;  %v1972_v38 = vpop.permute.xlu1 %1971 }
 0x75d   :  { %v2366_v62 = vmax.f32 %v2334_v3, 0.0  ;;  %v5497_v3 = vld [vmem:[#allocation25_spill] sm:$0xff] }
 0x75e   :  { %2427 = vadd.xlane.f32.xlu0 %v2393_v34 }
 0x75f   :  { %v2400_v37 = vmul.f32 %v4917_v10, %v2366_v62 }
 0x762   :  { %2425 = vadd.xlane.f32.xlu1 %v2392_v0  ;;  %2423 = vadd.xlane.f32.xlu2 %v2391_v57  ;;  %v2395_v0 = vmul.f32 %v4917_v10, %v2361_v5  ;;  %v2394_v57 = vmul.f32 %v4917_v10, %v2360_v14  ;;  %v2107_v14 = vmax.f32 %v4962_v33, 0.0 }
 0x764   :  { %v2238_v61 = vpop.f32.mrf.mxu1 }
 0x765   :  { %3027 = vmatmul.msk.bf16.gmra.mxu1 %vm133_vm2, %v2129_v39  ;;  %v2302_v34 = vadd.f32 %v2238_v61, %v5490_v31  ;;  %v5494_v39 = vmax.f32 %v4775_v50, 0.0  ;;  %v2397_v61 = vmul.f32 %v4917_v10, %v2363_v4 }
 0x766   :  { %2433 = vadd.xlane.f32.xlu0 %v2396_v18  ;;  %v4970_v18 = vadd.f32 %v2044_v13, %v417_v59  ;;  %v422_v13 = vadd.f32 %v5495_v35, %v4562_v2  ;;  %v5496_v59 = vld [vmem:[#allocation23_spill] sm:$0xff] }
 0x767   :  { %v2301_v5 = vadd.f32 %v2236_v52, %v5494_v39  ;;  %v2336_v15 = vadd.f32 %v4894_v55, %v2302_v34  ;;  %v1967_v34 = vpop.permute.xlu2 %1966  ;;  %v420_v4 = vadd.f32 %v5496_v59, %v4562_v2 }
 0x768   :  { %v2108_v50 = vmax.f32 %v4970_v18, 0.0  ;;  %v2045_v36 = vmul.f32 %v4555_v45, %v1967_v34  ;;  %v5499_v34 = vmax.f32 %v4853_v11, 0.0 }
 0x769   :  { %v2335_v53 = vadd.f32 %v4894_v55, %v2301_v5  ;;  %v2368_v22 = vmax.f32 %v2336_v15, 0.0  ;;  %v1977_v15 = vpop.permute.xlu0 %1976 }
 0x76a   :  { %2431 = vadd.xlane.f32.xlu1 %v2395_v0  ;;  %2429 = vadd.xlane.f32.xlu2 %v2394_v57  ;;  %v2130_v52 = vpack.c.bf16 %v2108_v50, %v2107_v14  ;;  %v2046_v0 = vmul.f32 %v4555_v45, %v1972_v38  ;;  %v4994_v25 = vadd.f32 %v2045_v36, %v420_v4 }
 0x76b   :  { %v2367_v40 = vmax.f32 %v2335_v53, 0.0  ;;  %v2402_v31 = vmul.f32 %v4917_v10, %v2368_v22  ;;  %v425_v53 = vadd.f32 %v5497_v3, %v4562_v2 }
 0x76c   :  { %v4992_v49 = vadd.f32 %v2046_v0, %v422_v13  ;;  %v2109_v39 = vmax.f32 %v4994_v25, 0.0  ;;  %v1987_v13 = vpop.permute.xlu1 %1986 }
 0x76d   :  { %v2401_v57 = vmul.f32 %v4917_v10, %v2367_v40 }
 0x76e   :  { %2439 = vadd.xlane.f32.xlu0 %v2399_v17  ;;  %v2110_v41 = vmax.f32 %v4992_v49, 0.0 }
 0x76f   :  { %v1982_v17 = vpop.permute.xlu2 %1981 }
 0x770   :  { %v2131_v5 = vpack.c.bf16 %v2110_v41, %v2109_v39  ;;  %v2048_v22 = vmul.f32 %v4555_v45, %v1982_v17 }
 0x771   :  { %v1992_v59 = vpop.permute.xlu0 %1991 }
 0x772   :  { %2437 = vadd.xlane.f32.xlu1 %v2398_v28  ;;  %2435 = vadd.xlane.f32.xlu2 %v2397_v61  ;;  %v2047_v61 = vmul.f32 %v4555_v45, %v1977_v15  ;;  %v5498_v28 = vld [vmem:[#allocation26_spill] sm:$0xff]  ;;  %v5500_v15 = vmax.f32 %v4850_v8, 0.0 }
 0x774   :  { %v5009_v62 = vadd.f32 %v2047_v61, %v425_v53  ;;  %v5501_v61 = vld [vmem:[#allocation27_spill] sm:$0xff]  ;;  %v2050_v53 = vmul.f32 %v4555_v45, %v1992_v59 }
 0x775   :  { %3028 = vmatmul.msk.bf16.gmra.mxu1 %vm133_vm2, %v2130_v52  ;;  %v427_v52 = vadd.f32 %v5498_v28, %v4562_v2  ;;  %v430_v3 = vadd.f32 %v5501_v61, %v4562_v2  ;;  %v5502_v28 = vld [vmem:[#allocation28_spill] sm:$0xff] }
 0x776   :  { %2445 = vadd.xlane.f32.xlu0 %v2402_v31  ;;  %v2111_v38 = vmax.f32 %v5009_v62, 0.0 }
 0x777   :  { %v5011_v40 = vadd.f32 %v2048_v22, %v427_v52  ;;  %v432_v52 = vadd.f32 %v5502_v28, %v4562_v2  ;;  %v1997_v59 = vpop.permute.xlu2 %1996 }
 0x77a   :  { %2443 = vadd.xlane.f32.xlu1 %v2401_v57  ;;  %2441 = vadd.xlane.f32.xlu2 %v2400_v37  ;;  %v2112_v57 = vmax.f32 %v5011_v40, 0.0 }
 0x77c   :  { %v2132_v35 = vpack.c.bf16 %v2112_v57, %v2111_v38 }
 0x785   :  { %3029 = vmatmul.msk.bf16.gmra.mxu1 %vm133_vm2, %v2131_v5  ;;  %v2049_v5 = vmul.f32 %v4555_v45, %v1987_v13 }
 0x78f   :  { %v2241_v31 = vpop.f32.mrf.mxu1 }
 0x790   :  { %v2303_v0 = vadd.f32 %v2241_v31, %v5499_v34  ;;  %v5033_v31 = vadd.f32 %v2049_v5, %v430_v3  ;;  %v5503_v5 = vld [vmem:[#allocation30_spill] sm:$0xff] }
 0x792   :  { %v2337_v37 = vadd.f32 %v4894_v55, %v2303_v0  ;;  %v5035_v0 = vadd.f32 %v2050_v53, %v432_v52  ;;  %v5347_v8 = vmax.f32 %v5033_v31, 0.0 }
 0x794   :  { %v2369_v36 = vmax.f32 %v2337_v37, 0.0 }
 0x795   :  { %3030 = vmatmul.msk.bf16.gmra.mxu1 %vm133_vm2, %v2132_v35  ;;  %v5344_v35 = vmax.f32 %v5035_v0, 0.0 }
 0x796   :  { %v2403_v4 = vmul.f32 %v4917_v10, %v2369_v36  ;;  %v2002_v36 = vpop.permute.xlu1 %2001 }
 0x797   :  { %v2243_v11 = vpop.f32.mrf.mxu1  ;;  %v2133_v13 = vpack.c.bf16 %v5344_v35, %v5347_v8 }
 0x798   :  { %v2304_v17 = vadd.f32 %v2243_v11, %v5500_v15  ;;  %2447 = vadd.xlane.f32.xlu2 %v2403_v4  ;;  %v2052_v4 = vmul.f32 %v4555_v45, %v2002_v36  ;;  %v437_v11 = vadd.f32 %v5503_v5, %v4562_v2  ;;  %v2051_v15 = vmul.f32 %v4555_v45, %v1997_v59  ;;  %v5505_v36 = vld [vmem:[#allocation32_spill] sm:$0xff]  ;;  %v5506_v5 = vld [vmem:[#allocation31_spill] sm:$0xff] }
 0x799   :  { %v442_v59 = vadd.f32 %v5505_v36, %v4562_v2 }
 0x79a   :  { %v2338_v22 = vadd.f32 %v4894_v55, %v2304_v17  ;;  %v5504_v17 = vld [vmem:[#allocation29_spill] sm:$0xff]  ;;  %v5051_v3 = vadd.f32 %v2052_v4, %v437_v11  ;;  %v440_v11 = vadd.f32 %v5506_v5, %v4562_v2  ;;  %v5508_v5 = vld [vmem:[#allocation34_spill] sm:$0xff] }
 0x79b   :  { %v435_v61 = vadd.f32 %v5504_v17, %v4562_v2 }
 0x79c   :  { %v2370_v34 = vmax.f32 %v2338_v22, 0.0  ;;  %v5342_v22 = vmax.f32 %v5051_v3, 0.0 }
 0x79d   :  { %v5053_v53 = vadd.f32 %v2051_v15, %v435_v61 }
 0x79e   :  { %v2404_v37 = vmul.f32 %v4917_v10, %v2370_v34  ;;  %v2012_v34 = vpop.permute.xlu2 %2011 }
 0x79f   :  { %v5343_v28 = vmax.f32 %v5053_v53, 0.0 }
 0x7a0   :  { %2449 = vadd.xlane.f32.xlu1 %v2404_v37  ;;  %v2007_v37 = vpop.permute.xlu0 %2006 }
 0x7a1   :  { %v2134_v52 = vpack.c.bf16 %v5342_v22, %v5343_v28  ;;  %v2053_v4 = vmul.f32 %v4555_v45, %v2007_v37 }
 0x7a3   :  { %v5070_v17 = vadd.f32 %v2053_v4, %v440_v11  ;;  %v447_v11 = vadd.f32 %v5508_v5, %v4562_v2 }
 0x7a5   :  { %3031 = vmatmul.msk.bf16.gmra.mxu1 %vm133_vm2, %v2133_v13  ;;  %v2054_v13 = vmul.f32 %v4555_v45, %v2012_v34  ;;  %v5346_v22 = vmax.f32 %v5070_v17, 0.0 }
 0x7a7   :  { %v5068_v15 = vadd.f32 %v2054_v13, %v442_v59  ;;  %v5507_v13 = vld [vmem:[#allocation33_spill] sm:$0xff] }
 0x7a8   :  { %v2022_v37 = vpop.permute.xlu0 %2021  ;;  %v445_v59 = vadd.f32 %v5507_v13, %v4562_v2  ;;  %v5509_v13 = vmax.f32 %v4882_v19, 0.0 }
 0x7a9   :  { %v5345_v61 = vmax.f32 %v5068_v15, 0.0  ;;  %v2056_v4 = vmul.f32 %v4555_v45, %v2022_v37 }
 0x7aa   :  { %v2017_v34 = vpop.permute.xlu1 %2016 }
 0x7ab   :  { %v2055_v36 = vmul.f32 %v4555_v45, %v2017_v34  ;;  %v5087_v35 = vadd.f32 %v2056_v4, %v447_v11  ;;  %v5510_v4 = vmax.f32 %v4885_v32, 0.0 }
 0x7ad   :  { %v5085_v28 = vadd.f32 %v2055_v36, %v445_v59 }
 0x7b5   :  { %3032 = vmatmul.msk.bf16.gmra.mxu1 %vm133_vm2, %v2134_v52  ;;  %v2135_v52 = vpack.c.bf16 %v5345_v61, %v5346_v22  ;;  %v5349_v61 = vmax.f32 %v5085_v28, 0.0  ;;  %v5348_v22 = vmax.f32 %v5087_v35, 0.0 }
 0x7b7   :  { %v2136_v34 = vpack.c.bf16 %v5348_v22, %v5349_v61 }
 0x7c5   :  { %3033 = vmatmul.msk.bf16.gmra.mxu1 %vm133_vm2, %v2135_v52 }
 0x7d2   :  { %v2246_v52 = vpop.f32.mrf.mxu1 }
 0x7d3   :  { %v2305_v45 = vadd.f32 %v2246_v52, %v5509_v13  ;;  %v5110_v13 = vld [vmem:[%s5257_s9 + $0x2] ss:$0 sm:$0xff]  ;;  %s3113_s9 = smov [#allocation2]  }
 0x7d4   :  { %s2788_s14 = sshll.u32 %s3113_s9, 4  ;;  %s2789_s14 = int_to_ptr.vmem [resolvable:$true] %s2788_s14 }
 0x7d5   :  { %v2339_v37 = vadd.f32 %v4894_v55, %v2305_v45  ;;  %3034 = vmatmul.msk.bf16.gmra.mxu1 %vm133_vm2, %v2136_v34  ;;  %v2424_v34 = vpop.xlane.xlu2 %2423  ;;  %v2426_v24 = vpop.xlane.xlu1 %2425 }
 0x7d6   :  { %v2489_v45 = vadd.f32 %v5110_v13, %v2424_v34 }
 0x7d7   :  { %v2371_v2 = vmax.f32 %v2339_v37, 0.0 }
 0x7d9   :  { %v2405_v36 = vmul.f32 %v4917_v10, %v2371_v2 }
 0x7da   :  { %v2248_v59 = vpop.f32.mrf.mxu1 }
 0x7db   :  { %v2306_v5 = vadd.f32 %v2248_v59, %v5510_v4  ;;  %2451 = vadd.xlane.f32.xlu0 %v2405_v36 }
 0x7dd   :  { %v2340_v11 = vadd.f32 %v4894_v55, %v2306_v5 }
 0x7df   :  { %v2372_v8 = vmax.f32 %v2340_v11, 0.0 }
 0x7e1   :  { %v2406_v22 = vmul.f32 %v4917_v10, %v2372_v8  ;;  %v2521_v8 = vadd.f32 %v2489_v45, %v4488_v48 }
 0x7e2   :  { %v2251_v61 = vpop.f32.mrf.mxu1 }
 0x7e3   :  { %v2307_v19 = vadd.f32 %v2251_v61, %v2105_v47  ;;  %2453 = vadd.xlane.f32.xlu2 %v2406_v22  ;;  %v2490_v47 = vadd.f32 %v5110_v13, %v2426_v24  ;;  %v2428_v61 = vpop.xlane.xlu0 %2427  ;;  %v2432_v24 = vpop.xlane.xlu1 %2431 }
 0x7e4   :  { %v2491_v2 = vadd.f32 %v5110_v13, %v2428_v61 }
 0x7e5   :  { %v2341_v52 = vadd.f32 %v4894_v55, %v2307_v19  ;;  %v2522_v22 = vadd.f32 %v2490_v47, %v4493_v43  ;;  %v2493_v47 = vadd.f32 %v5110_v13, %v2432_v24 }
 0x7e6   :  { %v2523_v36 = vadd.f32 %v2491_v2, %v4498_v16 }
 0x7e7   :  { %v2373_v32 = vmax.f32 %v2341_v52, 0.0  ;;  %v2525_v18 = vadd.f32 %v2493_v47, %v4525_v56 }
 0x7e9   :  { %v2407_v37 = vmul.f32 %v4917_v10, %v2373_v32 }
 0x7ea   :  { %v2253_v59 = vpop.f32.mrf.mxu1 }
 0x7eb   :  { %2455 = vadd.xlane.f32.xlu1 %v2407_v37  ;;  %v2308_v4 = vadd.f32 %v2253_v59, %v2106_v27  ;;  %v2430_v27 = vpop.xlane.xlu2 %2429 }
 0x7ec   :  { %v2492_v37 = vadd.f32 %v5110_v13, %v2430_v27 }
 0x7ed   :  { %v2342_v5 = vadd.f32 %v4894_v55, %v2308_v4 }
 0x7ef   :  { %2555 = vperm.xlu0 %3072, %v2521_v8   ;;  %v2374_v48 = vmax.f32 %v2342_v5, 0.0 }
 0x7f1   :  { %v2408_v43 = vmul.f32 %v4917_v10, %v2374_v48 }
 0x7f2   :  { %v2256_v11 = vpop.f32.mrf.mxu1 }
 0x7f3   :  { %v2309_v19 = vadd.f32 %v2256_v11, %v2107_v14  ;;  %v2524_v14 = vadd.f32 %v2492_v37, %v4515_v30 }
 0x7f5   :  { %v2343_v52 = vadd.f32 %v4894_v55, %v2309_v19 }
 0x7f7   :  { %v2375_v32 = vmax.f32 %v2343_v52, 0.0 }
 0x7f9   :  { %v2409_v20 = vmul.f32 %v4917_v10, %v2375_v32  ;;  %v2438_v32 = vpop.xlane.xlu1 %2437 }
 0x7fa   :  { %v2258_v34 = vpop.f32.mrf.mxu1 }
 0x7fb   :  { %2560 = vperm.xlu2 %3071, %v2522_v22   ;;  %v2310_v16 = vadd.f32 %v2258_v34, %v2108_v50  ;;  %v2436_v50 = vpop.xlane.xlu2 %2435 }
 0x7fc   :  { %v2495_v22 = vadd.f32 %v5110_v13, %v2436_v50 }
 0x7fd   :  { %v2344_v45 = vadd.f32 %v4894_v55, %v2310_v16  ;;  %v2496_v16 = vadd.f32 %v5110_v13, %v2438_v32 }
 0x7fe   :  { %v2527_v61 = vadd.f32 %v2495_v22, %v4586_v46  ;;  %v2434_v46 = vpop.xlane.xlu0 %2433  ;;  %v5512_v22 = vmax.f32 %v5035_v0, 0.0  ;;  %v5513_v0 = vmax.f32 %v5053_v53, 0.0 }
 0x7ff   :  { %v2376_v33 = vmax.f32 %v2344_v45, 0.0  ;;  %v2528_v62 = vadd.f32 %v2496_v16, %v4594_v51  ;;  %v5511_v51 = vmax.f32 %v5033_v31, 0.0 }
 0x801   :  { %v2410_v8 = vmul.f32 %v4917_v10, %v2376_v33 }
 0x802   :  { %v2261_v2 = vpop.f32.mrf.mxu1 }
 0x803   :  { %v2311_v30 = vadd.f32 %v2261_v2, %v2109_v39  ;;  %v2494_v39 = vadd.f32 %v5110_v13, %v2434_v46 }
 0x804   :  { %2565 = vperm.xlu1 %3073, %v2523_v36  }
 0x805   :  { %v2345_v36 = vadd.f32 %v4894_v55, %v2311_v30  ;;  %v2526_v34 = vadd.f32 %v2494_v39, %v4520_v1 }
 0x807   :  { %v2377_v59 = vmax.f32 %v2345_v36, 0.0 }
 0x809   :  { %v2411_v5 = vmul.f32 %v4917_v10, %v2377_v59  ;;  %v2444_v59 = vpop.xlane.xlu1 %2443 }
 0x80a   :  { %v2263_v4 = vpop.f32.mrf.mxu1 }
 0x80b   :  { %v2312_v56 = vadd.f32 %v2263_v4, %v2110_v41  ;;  %v2499_v4 = vadd.f32 %v5110_v13, %v2444_v59 }
 0x80d   :  { %v2346_v48 = vadd.f32 %v4894_v55, %v2312_v56 }
 0x80f   :  { %v2378_v11 = vmax.f32 %v2346_v48, 0.0 }
 0x811   :  { %v2412_v25 = vmul.f32 %v4917_v10, %v2378_v11 }
 0x812   :  { %v2266_v19 = vpop.f32.mrf.mxu1 }
 0x819   :  { %2457 = vadd.xlane.f32.xlu0 %v2408_v43  ;;  %v2313_v43 = vadd.f32 %v2266_v19, %v2111_v38  ;;  %v2442_v38 = vpop.xlane.xlu2 %2441 }
 0x81a   :  { %v2268_v27 = vpop.f32.mrf.mxu1 }
 0x81b   :  { %v2347_v52 = vadd.f32 %v4894_v55, %v2313_v43  ;;  %v2314_v45 = vadd.f32 %v2268_v27, %v2112_v57 }
 0x81d   :  { %v2379_v49 = vmax.f32 %v2347_v52, 0.0  ;;  %v2348_v37 = vadd.f32 %v4894_v55, %v2314_v45  ;;  %v2450_v45 = vpop.xlane.xlu1 %2449 }
 0x81f   :  { %v2413_v41 = vmul.f32 %v4917_v10, %v2379_v49  ;;  %v2380_v33 = vmax.f32 %v2348_v37, 0.0 }
 0x821   :  { %v2448_v48 = vpop.xlane.xlu2 %2447 }
 0x824   :  { %2459 = vadd.xlane.f32.xlu2 %v2409_v20  ;;  %v2498_v20 = vadd.f32 %v5110_v13, %v2442_v38 }
 0x826   :  { %v2530_v1 = vadd.f32 %v2498_v20, %v4653_v7 }
 0x82d   :  { %2570 = vperm.xlu0 %3072, %v2524_v14   ;;  %v2414_v14 = vmul.f32 %v4917_v10, %v2380_v33  ;;  %v5516_v33 = vmax.f32 %v5068_v15, 0.0 }
 0x82e   :  { %2461 = vadd.xlane.f32.xlu1 %v2410_v8  ;;  %v2271_v8 = vpop.f32.mrf.mxu1 }
 0x82f   :  { %v2315_v24 = vadd.f32 %v2271_v8, %v5511_v51 }
 0x831   :  { %v2349_v47 = vadd.f32 %v4894_v55, %v2315_v24 }
 0x833   :  { %v2381_v50 = vmax.f32 %v2349_v47, 0.0 }
 0x835   :  { %v2415_v7 = vmul.f32 %v4917_v10, %v2381_v50 }
 0x836   :  { %v2273_v57 = vpop.f32.mrf.mxu1 }
 0x83c   :  { %2575 = vperm.xlu2 %3071, %v2525_v18   ;;  %v2440_v18 = vpop.xlane.xlu0 %2439 }
 0x83d   :  { %v2497_v40 = vadd.f32 %v5110_v13, %v2440_v18 }
 0x83e   :  { %v2276_v56 = vpop.f32.mrf.mxu1 }
 0x83f   :  { %v2529_v2 = vadd.f32 %v2497_v40, %v4591_v44  ;;  %v2317_v11 = vadd.f32 %v2276_v56, %v5513_v0  ;;  %v2501_v44 = vadd.f32 %v5110_v13, %v2448_v48 }
 0x841   :  { %v2351_v19 = vadd.f32 %v4894_v55, %v2317_v11  ;;  %v2533_v46 = vadd.f32 %v2501_v44, %v4715_v42  ;;  %v5518_v11 = vmax.f32 %v5087_v35, 0.0 }
 0x843   :  { %v2383_v43 = vmax.f32 %v2351_v19, 0.0 }
 0x844   :  { %v2446_v49 = vpop.xlane.xlu0 %2445 }
 0x845   :  { %v2500_v53 = vadd.f32 %v5110_v13, %v2446_v49 }
 0x846   :  { %v2278_v39 = vpop.f32.mrf.mxu1 }
 0x847   :  { %2585 = vperm.xlu1 %3073, %v2527_v61   ;;  %v2316_v61 = vadd.f32 %v2273_v57, %v5512_v22  ;;  %v2532_v32 = vadd.f32 %v2500_v53, %v4659_v54 }
 0x849   :  { %v2350_v30 = vadd.f32 %v4894_v55, %v2316_v61 }
 0x84b   :  { %v2382_v31 = vmax.f32 %v2350_v30, 0.0 }
 0x84d   :  { %v2416_v36 = vmul.f32 %v4917_v10, %v2382_v31 }
 0x84e   :  { %v2281_v42 = vpop.f32.mrf.mxu1  ;;  %v2452_v47 = vpop.xlane.xlu0 %2451 }
 0x84f   :  { %v2503_v30 = vadd.f32 %v5110_v13, %v2452_v47 }
 0x856   :  { %v2283_v54 = vpop.f32.mrf.mxu1 }
 0x857   :  { %2463 = vadd.xlane.f32.xlu0 %v2411_v5  ;;  %v2531_v5 = vadd.f32 %v2499_v4, %v4656_v63  ;;  %v5514_v63 = vmax.f32 %v5051_v3, 0.0 }
 0x859   :  { %v2318_v52 = vadd.f32 %v2278_v39, %v5514_v63 }
 0x85e   :  { %v2456_v22 = vpop.xlane.xlu1 %2455 }
 0x85f   :  { %v2505_v56 = vadd.f32 %v5110_v13, %v2456_v22 }
 0x861   :  { %v2556_v40 = vpop.permute.xlu0 %2555  ;;  %v2537_v0 = vadd.f32 %v2505_v56, %v4749_v21 }
 0x865   :  { %2465 = vadd.xlane.f32.xlu2 %v2412_v25  ;;  %v2417_v25 = vmul.f32 %v4917_v10, %v2383_v43 }
 0x86b   :  { %2580 = vperm.xlu0 %3072, %v2526_v34   ;;  %v2352_v34 = vadd.f32 %v4894_v55, %v2318_v52 }
 0x871   :  { %2467 = vadd.xlane.f32.xlu1 %v2413_v41  ;;  %v2384_v41 = vmax.f32 %v2352_v34, 0.0 }
 0x873   :  { %v2418_v16 = vmul.f32 %v4917_v10, %v2384_v41 }
 0x876   :  { %v2566_v59 = vpop.permute.xlu1 %2565 }
 0x87d   :  { %2590 = vperm.xlu2 %3071, %v2528_v62   ;;  %v5515_v62 = vmax.f32 %v5070_v17, 0.0  ;;  %v2454_v17 = vpop.xlane.xlu2 %2453 }
 0x87e   :  { %v2504_v51 = vadd.f32 %v5110_v13, %v2454_v17 }
 0x87f   :  { %v2319_v38 = vadd.f32 %v2281_v42, %v5515_v62 }
 0x880   :  { %v2536_v18 = vadd.f32 %v2504_v51, %v4778_v29  ;;  %v2535_v29 = vadd.f32 %v2503_v30, %v4718_v58  ;;  %v5522_v51 = vld [vmem:[#allocation6_spill] sm:$0xff] }
 0x881   :  { %v2353_v20 = vadd.f32 %v4894_v55, %v2319_v38 }
 0x883   :  { %v2385_v3 = vmax.f32 %v2353_v20, 0.0 }
 0x885   :  { %v2419_v27 = vmul.f32 %v4917_v10, %v2385_v3  ;;  %v2561_v57 = vpop.permute.xlu2 %2560 }
 0x88a   :  { %2600 = vperm.xlu1 %3073, %v2530_v1   ;;  %v2502_v1 = vadd.f32 %v5110_v13, %v2450_v45  ;;  %v5519_v45 = vld [vmem:[#allocation10_spill] sm:$0xff] }
 0x88c   :  { %v2534_v37 = vadd.f32 %v2502_v1, %v4706_v6  ;;  %v2286_v6 = vpop.f32.mrf.mxu1  ;;  %v2458_v61 = vpop.xlane.xlu0 %2457 }
 0x895   :  { %2469 = vadd.xlane.f32.xlu0 %v2414_v14  ;;  %v2320_v14 = vadd.f32 %v2283_v54, %v5516_v33 }
 0x897   :  { %v2354_v8 = vadd.f32 %v4894_v55, %v2320_v14  ;;  %v2460_v31 = vpop.xlane.xlu2 %2459  ;;  %v5521_v14 = vld [vmem:[#allocation8_spill] sm:$0xff] }
 0x898   :  { %v2507_v58 = vadd.f32 %v5110_v13, %v2460_v31 }
 0x899   :  { %v2386_v24 = vmax.f32 %v2354_v8, 0.0 }
 0x89a   :  { %v2539_v39 = vadd.f32 %v2507_v58, %v4804_v23 }
 0x89b   :  { %v2420_v50 = vmul.f32 %v4917_v10, %v2386_v24 }
 0x89f   :  { %v2571_v4 = vpop.permute.xlu0 %2570  ;;  %v2576_v48 = vpop.permute.xlu2 %2575 }
 0x8a1   :  { %v2462_v19 = vpop.xlane.xlu1 %2461 }
 0x8a6   :  { %2471 = vadd.xlane.f32.xlu2 %v2415_v7  ;;  %v5517_v7 = vmax.f32 %v5085_v28, 0.0  ;;  %v2288_v28 = vpop.f32.mrf.mxu1 }
 0x8a7   :  { %v2322_v44 = vadd.f32 %v2288_v28, %v5518_v11 }
 0x8a8   :  { %v2321_v15 = vadd.f32 %v2286_v6, %v5517_v7  ;;  %v5523_v6 = vld [vmem:[#allocation9_spill] sm:$0xff]  ;;  %v5524_v7 = vld [vmem:[#allocation7_spill] sm:$0xff] }
 0x8a9   :  { %2595 = vperm.xlu0 %3072, %v2529_v2   ;;  %v2356_v43 = vadd.f32 %v4894_v55, %v2322_v44 }
 0x8aa   :  { %v2355_v2 = vadd.f32 %v4894_v55, %v2321_v15 }
 0x8ab   :  { %v2388_v63 = vmax.f32 %v2356_v43, 0.0 }
 0x8ad   :  { %v2422_v21 = vmul.f32 %v4917_v10, %v2388_v63 }
 0x8b4   :  { %2473 = vadd.xlane.f32.xlu1 %v2416_v36  ;;  %v2387_v36 = vmax.f32 %v2355_v2, 0.0  ;;  %v5525_v2 = vld [vmem:[#allocation37_spill] sm:$0xff] }
 0x8b9   :  { %v2586_v52 = vpop.permute.xlu1 %2585 }
 0x8be   :  { %2605 = vperm.xlu2 %3071, %v2531_v5   ;;  %v2421_v5 = vmul.f32 %v4917_v10, %v2387_v36  ;;  %v2506_v10 = vadd.f32 %v5110_v13, %v2458_v61 }
 0x8c0   :  { %v2538_v3 = vadd.f32 %v2506_v10, %v4770_v26 }
 0x8cd   :  { %2615 = vperm.xlu1 %3073, %v2533_v46   ;;  %v2464_v46 = vpop.xlane.xlu0 %2463 }
 0x8ce   :  { %v2509_v49 = vadd.f32 %v5110_v13, %v2464_v46  ;;  %v5528_v46 = vld [vmem:[#allocation35_spill] sm:$0xff] }
 0x8d0   :  { %v2541_v35 = vadd.f32 %v2509_v49, %v4794_v60 }
 0x8d3   :  { %2475 = vadd.xlane.f32.xlu0 %v2417_v25 }
 0x8d8   :  { %v2466_v25 = vpop.xlane.xlu2 %2465 }
 0x8d9   :  { %v2510_v33 = vadd.f32 %v5110_v13, %v2466_v25 }
 0x8db   :  { %v2542_v8 = vadd.f32 %v2510_v33, %v5521_v14 }
 0x8dd   :  { %v2581_v34 = vpop.permute.xlu0 %2580 }
 0x8e0   :  { %v2591_v53 = vpop.permute.xlu2 %2590 }
 0x8e4   :  { %v2468_v41 = vpop.xlane.xlu1 %2467 }
 0x8e5   :  { %v2511_v55 = vadd.f32 %v5110_v13, %v2468_v41 }
 0x8e7   :  { %2610 = vperm.xlu0 %3072, %v2532_v32   ;;  %2477 = vadd.xlane.f32.xlu2 %v2418_v16  ;;  %v2543_v16 = vadd.f32 %v2511_v55, %v4801_v12  ;;  %v2508_v12 = vadd.f32 %v5110_v13, %v2462_v19  ;;  %v2665_v55 = vlaneseq }
 0x8e9   :  { %vm5237_vm3 = vcmp.lt.s32.totalorder %v2665_v55, 128 }
 0x8f7   :  { %2479 = vadd.xlane.f32.xlu1 %v2419_v27 }
 0x8fc   :  { %v2601_v27 = vpop.permute.xlu1 %2600 }
 0x8ff   :  { %2620 = vperm.xlu2 %3071, %v2534_v37   ;;  %v5520_v37 = vld [vmem:[#allocation5_spill] sm:$0xff] }
 0x900   :  { %v2540_v54 = vadd.f32 %v2508_v12, %v5520_v37 }
 0x908   :  { %v2470_v32 = vpop.xlane.xlu0 %2469 }
 0x909   :  { %v2512_v26 = vadd.f32 %v5110_v13, %v2470_v32 }
 0x90b   :  { %v2544_v24 = vadd.f32 %v2512_v26, %v5522_v51 }
 0x910   :  { %2630 = vperm.xlu1 %3073, %v2536_v18  }
 0x911   :  { %2481 = vadd.xlane.f32.xlu0 %v2420_v50 }
 0x919   :  { %v2472_v23 = vpop.xlane.xlu2 %2471 }
 0x91a   :  { %v2513_v62 = vadd.f32 %v5110_v13, %v2472_v23 }
 0x91b   :  { %v2596_v42 = vpop.permute.xlu0 %2595 }
 0x91c   :  { %v2545_v38 = vadd.f32 %v2513_v62, %v4827_v9 }
 0x921   :  { %v2606_v47 = vpop.permute.xlu2 %2605 }
 0x925   :  { %2625 = vperm.xlu0 %3072, %v2535_v29  }
 0x927   :  { %v2474_v9 = vpop.xlane.xlu1 %2473 }
 0x928   :  { %2483 = vadd.xlane.f32.xlu2 %v2421_v5 }
 0x92d   :  { %2672 = vperm.xlu0 %3072, %v2537_v0  }
 0x935   :  { %2682 = vperm.xlu0 %3072, %v2539_v39  }
 0x93a   :  { %2485 = vadd.xlane.f32.xlu1 %v2422_v21 }
 0x93d   :  { %2692 = vperm.xlu0 %3072, %v2541_v35  }
 0x93f   :  { %v2616_v17 = vpop.permute.xlu1 %2615 }
 0x945   :  { %2702 = vperm.xlu0 %3072, %v2543_v16  }
 0x946   :  { %v2476_v20 = vpop.xlane.xlu0 %2475 }
 0x947   :  { %v2515_v60 = vadd.f32 %v5110_v13, %v2476_v20 }
 0x949   :  { %v2547_v1 = vadd.f32 %v2515_v60, %v5519_v45 }
 0x94d   :  { %2712 = vperm.xlu0 %3072, %v2545_v38  }
 0x951   :  { %2633 = vxpose.xlu2.b32.start [1/16] (narrow) %v2556_v40, 8  ;;  %v2514_v40 = vadd.f32 %v5110_v13, %v2474_v9 }
 0x953   :  { %2677 = vperm.xlu1 %3073, %v2538_v3   ;;  %v2546_v15 = vadd.f32 %v2514_v40, %v5524_v7 }
 0x955   :  { %2722 = vperm.xlu0 %3072, %v2547_v1  }
 0x959   :  { %2634 = vxpose.xlu2.b32.cont [2/16] (narrow) %v2561_v57, 8  ;;  %v2611_v31 = vpop.permute.xlu0 %2610 }
 0x95a   :  { %v2478_v22 = vpop.xlane.xlu2 %2477 }
 0x95b   :  { %2687 = vperm.xlu1 %3073, %v2540_v54   ;;  %v2516_v61 = vadd.f32 %v5110_v13, %v2478_v22 }
 0x95d   :  { %v2548_v30 = vadd.f32 %v2516_v61, %v5525_v2 }
 0x961   :  { %2635 = vxpose.xlu2.b32.cont [3/16] (narrow) %v2566_v59, 8  ;;  %v5526_v59 = vld [vmem:[#allocation12_spill] sm:$0xff] }
 0x962   :  { %v2621_v5 = vpop.permute.xlu2 %2620 }
 0x963   :  { %2697 = vperm.xlu1 %3073, %v2542_v8  }
 0x969   :  { %2636 = vxpose.xlu2.b32.cont [4/16] (narrow) %v2571_v4, 8 }
 0x96a   :  { %v2480_v18 = vpop.xlane.xlu1 %2479 }
 0x96b   :  { %v2517_v50 = vadd.f32 %v5110_v13, %v2480_v18  ;;  %2707 = vperm.xlu1 %3073, %v2544_v24  }
 0x96d   :  { %v2549_v57 = vadd.f32 %v2517_v50, %v5523_v6 }
 0x96f   :  { %2732 = vperm.xlu0 %3072, %v2549_v57  }
 0x971   :  { %2637 = vxpose.xlu2.b32.cont [5/16] (narrow) %v2576_v48, 8  ;;  %v5527_v48 = vld [vmem:[#allocation11_spill] sm:$0xff] }
 0x973   :  { %2717 = vperm.xlu1 %3073, %v2546_v15  }
 0x979   :  { %2638 = vxpose.xlu2.b32.cont [6/16] (narrow) %v2581_v34, 8 }
 0x97b   :  { %2727 = vperm.xlu1 %3073, %v2548_v30  }
 0x981   :  { %2639 = vxpose.xlu2.b32.cont [7/16] (narrow) %v2586_v52, 8 }
 0x982   :  { %v2631_v11 = vpop.permute.xlu1 %2630 }
 0x984   :  { %v2482_v36 = vpop.xlane.xlu0 %2481 }
 0x985   :  { %v2518_v29 = vadd.f32 %v5110_v13, %v2482_v36 }
 0x987   :  { %v2550_v4 = vadd.f32 %v2518_v29, %v5526_v59 }
 0x989   :  { %2640 = vxpose.xlu2.b32.cont [8/16] (narrow) %v2591_v53, 8  ;;  %2737 = vperm.xlu1 %3073, %v2550_v4  }
 0x991   :  { %2641 = vxpose.xlu2.b32.cont [9/16] (narrow) %v2596_v42, 8 }
 0x997   :  { %v2626_v43 = vpop.permute.xlu0 %2625 }
 0x999   :  { %2642 = vxpose.xlu2.b32.cont [10/16] (narrow) %v2601_v27, 8 }
 0x99b   :  { %v2484_v56 = vpop.xlane.xlu2 %2483 }
 0x99c   :  { %v2519_v28 = vadd.f32 %v5110_v13, %v2484_v56 }
 0x99e   :  { %v2551_v0 = vadd.f32 %v2519_v28, %v5527_v48 }
 0x99f   :  { %v2673_v25 = vpop.permute.xlu0 %2672 }
 0x9a0   :  { %2742 = vperm.xlu0 %3072, %v2551_v0  }
 0x9a1   :  { %2643 = vxpose.xlu2.b32.cont [11/16] (narrow) %v2606_v47, 8 }
 0x9a7   :  { %v2683_v63 = vpop.permute.xlu0 %2682 }
 0x9a9   :  { %2644 = vxpose.xlu2.b32.cont [12/16] (narrow) %v2611_v31, 8 }
 0x9ad   :  { %v2486_v44 = vpop.xlane.xlu1 %2485 }
 0x9ae   :  { %v2520_v19 = vadd.f32 %v5110_v13, %v2486_v44 }
 0x9af   :  { %v2693_v34 = vpop.permute.xlu0 %2692 }
 0x9b0   :  { %v2552_v58 = vadd.f32 %v2520_v19, %v5528_v46 }
 0x9b1   :  { %2645 = vxpose.xlu2.b32.cont [13/16] (narrow) %v2616_v17, 8 }
 0x9b2   :  { %2747 = vperm.xlu1 %3073, %v2552_v58  }
 0x9b7   :  { %v2703_v13 = vpop.permute.xlu0 %2702 }
 0x9b9   :  { %2646 = vxpose.xlu2.b32.cont [14/16] (narrow) %v2621_v5, 8 }
 0x9bf   :  { %v2713_v35 = vpop.permute.xlu0 %2712 }
 0x9c1   :  { %2647 = vxpose.xlu2.b32.cont [15/16] (narrow) %v2626_v43, 8 }
 0x9c2   :  { %2750 = vxpose.xlu0.b32.start [1/16] (narrow) %v2673_v25, 8 }
 0x9c5   :  { %v2678_v39 = vpop.permute.xlu1 %2677 }
 0x9c7   :  { %v2723_v41 = vpop.permute.xlu0 %2722 }
 0x9c9   :  { %2648 = vxpose.xlu2.b32.end [16/16] (narrow) %v2631_v11, 8 }
 0x9ca   :  { %2751 = vxpose.xlu0.b32.cont [2/16] (narrow) %v2678_v39, 8 }
 0x9cd   :  { %v2688_v52 = vpop.permute.xlu1 %2687 }
 0x9d2   :  { %2752 = vxpose.xlu0.b32.cont [3/16] (narrow) %v2683_v63, 8 }
 0x9d5   :  { %v2698_v49 = vpop.permute.xlu1 %2697 }
 0x9da   :  { %2753 = vxpose.xlu0.b32.cont [4/16] (narrow) %v2688_v52, 8 }
 0x9dd   :  { %v2708_v21 = vpop.permute.xlu1 %2707 }
 0x9e1   :  { %v2733_v42 = vpop.permute.xlu0 %2732 }
 0x9e2   :  { %2754 = vxpose.xlu0.b32.cont [5/16] (narrow) %v2693_v34, 8 }
 0x9e5   :  { %v2718_v53 = vpop.permute.xlu1 %2717 }
 0x9ea   :  { %2755 = vxpose.xlu0.b32.cont [6/16] (narrow) %v2698_v49, 8  ;;  %v2649_v16 = vpop.trf.xlu2 }
 0x9eb   :  { %2669 = vst.msk [vmem:[#allocation2] sm:$0x1] %vm5237_vm3, %v2649_v16 }
 0x9ed   :  { %v2728_v32 = vpop.permute.xlu1 %2727 }
 0x9f2   :  { %2756 = vxpose.xlu0.b32.cont [7/16] (narrow) %v2703_v13, 8 }
 0x9fa   :  { %2757 = vxpose.xlu0.b32.cont [8/16] (narrow) %v2708_v21, 8 }
 0x9fb   :  { %v2738_v62 = vpop.permute.xlu1 %2737 }
 0xa02   :  { %2758 = vxpose.xlu0.b32.cont [9/16] (narrow) %v2713_v35, 8 }
 0xa0a   :  { %2759 = vxpose.xlu0.b32.cont [10/16] (narrow) %v2718_v53, 8 }
 0xa12   :  { %2760 = vxpose.xlu0.b32.cont [11/16] (narrow) %v2723_v41, 8  ;;  %v2743_v38 = vpop.permute.xlu0 %2742 }
 0xa1a   :  { %2761 = vxpose.xlu0.b32.cont [12/16] (narrow) %v2728_v32, 8 }
 0xa22   :  { %2762 = vxpose.xlu0.b32.cont [13/16] (narrow) %v2733_v42, 8 }
 0xa24   :  { %v2748_v20 = vpop.permute.xlu1 %2747 }
 0xa2a   :  { %2763 = vxpose.xlu0.b32.cont [14/16] (narrow) %v2738_v62, 8 }
 0xa32   :  { %2764 = vxpose.xlu0.b32.cont [15/16] (narrow) %v2743_v38, 8 }
 0xa3a   :  { %2765 = vxpose.xlu0.b32.end [16/16] (narrow) %v2748_v20, 8 }
 0xa66   :  { %v2766_v10 = vpop.trf.xlu0 }
 0xa67   :  { %2782 = vst.msk [vmem:[#allocation2 + $0x1] sm:$0x1] %vm5237_vm3, %v2766_v10 }
 0xa68   :  { %2793 = dma.vmem_to_hbm [thread:$0]  %s2789_s14, 32, %s2791_s17, [#allocation3]  }
 0xa69   :  { %3110 = dma.done.wait [#allocation3], 32  }
 0xa6a   :  { %3111 = vsyncadd [#allocation3], 4294967264 }
 0xa6b   :  { %2798 = vsyncpa [#allocation3], 1 }

</bundles_post_ra>
